<compile_context>
chip_gen: v5e
topology: v5e:2x2
jax: 0.10.0
libtpu: 0.0.40
codegen_flags: <defaults>
</compile_context>

<pallas_src>
import numpy as np
import jax
import jax.numpy as jnp
from jax.experimental import pallas as pl
from jax.experimental.pallas import tpu as pltpu

SIG = 1000    # signal_length == hidden_size (implied by fc weight (2000, hidden))
HALF = 500    # only the first 500 frequency bins feed fc3
FPAD = 512    # HALF rounded up to the 128-lane width
OUT = 141     # fc3 output features
OPAD = 256    # OUT rounded up to a lane-aligned store width


def _round_up(a, m):
    return (a + m - 1) // m * m


def fourier_kernel(x_ref, wri_ref, w3_ref, b3_ref, o_ref):
    # Fused hamming+DFT matmul: wri columns [0:512) = hamming-folded cos(theta) for
    # bins 0..499 (zero padded), columns [512:1024) = hamming-folded -sin(theta).
    xb = x_ref[...].astype(jnp.bfloat16)                                   # (tm, SIG)
    slab = jnp.dot(xb, wri_ref[...],
                   preferred_element_type=jnp.float32)                     # (tm, 1024)
    re = slab[:, :FPAD]                                                    # aligned 512 slice
    im = slab[:, FPAD:]
    # fft * conj(fft) is real & nonnegative: |fft*fftconj| == re^2 + im^2 (no sqrt).
    # The 1/SIG^2 normalization is folded into w3 host-side.
    psd = re * re + im * im                                                # (tm, FPAD)
    y = jnp.dot(psd, w3_ref[...], preferred_element_type=jnp.float32) + b3_ref[...]
    o_ref[...] = y.astype(o_ref.dtype)                                     # (tm, OPAD)


def prepare_fourier_params(filters, w_fft, w3, b3):
    """One-time host-side parameter preprocessing.

    filters: (1, SIG) hamming window
    w_fft:   (SIG, 2*SIG) = [cos | -sin]   (frozen fc weight in (in, out) layout)
    w3:      (HALF, OUT)   b3: (OUT,)
    Returns (w_ri bf16 (SIG, 2*FPAD), w3_pad f32 (FPAD, OPAD), b3_pad f32 (1, OPAD)).
    The frozen fc2 weight ([cos | +sin]) is never needed: fft*conj(fft) == |fft|^2.
    """
    cos_h = w_fft[:, :HALF]                                  # (SIG, 500)
    nsin_h = w_fft[:, SIG:SIG + HALF]                        # (SIG, 500) == -sin
    f = filters.reshape(SIG, 1).astype(jnp.float32)
    w_ri = jnp.zeros((SIG, 2 * FPAD), jnp.float32)
    w_ri = w_ri.at[:, :HALF].set(f * cos_h)                  # real-part weights
    w_ri = w_ri.at[:, FPAD:FPAD + HALF].set(f * nsin_h)      # imag-part weights
    w_ri = w_ri.astype(jnp.bfloat16)

    scale = 1.0 / float(SIG * SIG)                           # fold psd normalization
    w3_pad = jnp.zeros((FPAD, OPAD), jnp.float32).at[:HALF, :OUT].set(
        w3.astype(jnp.float32) * scale)
    b3_pad = jnp.zeros((1, OPAD), jnp.float32).at[0, :OUT].set(
        b3.astype(jnp.float32))
    return w_ri, w3_pad, b3_pad


def fourier_forward(x, w_ri, w3_pad, b3_pad):
    """x: (B, 1000) f32.  Pre-processed params from prepare_fourier_params."""
    B = x.shape[0]
    tm = 128 if B >= 128 else _round_up(max(B, 1), 8)
    Bp = _round_up(B, tm)
    if Bp != B:
        x = jnp.pad(x, ((0, Bp - B), (0, 0)))

    out = pl.pallas_call(
        fourier_kernel,
        out_shape=jax.ShapeDtypeStruct((Bp, OPAD), jnp.float32),
        grid_spec=pltpu.PrefetchScalarGridSpec(
            num_scalar_prefetch=0,
            grid=(Bp // tm,),
            in_specs=[
                pl.BlockSpec((tm, SIG), lambda i: (i, 0)),        # activations, batch tiled
                pl.BlockSpec((SIG, 2 * FPAD), lambda i: (0, 0)),  # fused DFT weight, pinned
                pl.BlockSpec((FPAD, OPAD), lambda i: (0, 0)),     # fc3 weight, pinned
                pl.BlockSpec((1, OPAD), lambda i: (0, 0)),        # fc3 bias, pinned
            ],
            out_specs=pl.BlockSpec((tm, OPAD), lambda i: (i, 0)),
        ),
        compiler_params=pltpu.CompilerParams(
            dimension_semantics=("parallel",),
            vmem_limit_bytes=32 << 20,
        ),
    )(x, w_ri, w3_pad, b3_pad)
    return out[:B, :OUT]


def _make_fourier_weights():
    k_vals, n_vals = np.mgrid[0:SIG, 0:SIG]
    theta = 2.0 * np.pi * k_vals * n_vals / SIG
    w_fft = np.hstack([np.cos(theta), -np.sin(theta)]).astype(np.float32)   # fc
    w_conj = np.hstack([np.cos(theta), np.sin(theta)]).astype(np.float32)   # fc2
    return w_fft, w_conj


def _ref_forward(x, filters, w_fft, w_conj, w3, b3):
    # Straight transcription of the original PyTorch forward (no simplification).
    ham = x * filters
    out = ham @ w_fft
    out2 = ham @ w_conj
    fft = out[:, :SIG] + 1j * out[:, SIG:]
    fftc = out2[:, :SIG] + 1j * out2[:, SIG:]
    psd = np.abs(fft * fftc) / (SIG ** 2)
    return psd[:, :HALF] @ w3 + b3


if __name__ == "__main__":
    B = 8

    key = jax.random.PRNGKey(0)
    kx, k3, kb = jax.random.split(key, 3)

    # Parameters (deterministic, built in-script).
    # TODO(synk): original module loads `self.filters` from a .pth checkpoint;
    # we keep the np.hamming(1000) initialization instead.
    filters_np = np.hamming(SIG).astype(np.float32)[None, :]                 # (1, 1000)
    w_fft_np, w_conj_np = _make_fourier_weights()                            # (1000, 2000) each
    w3 = jax.random.normal(k3, (HALF, OUT), dtype=jnp.float32)               # fc3 weight (in, out)
    bound = 1.0 / np.sqrt(HALF)
    b3 = jax.random.uniform(kb, (OUT,), minval=-bound, maxval=bound,
                            dtype=jnp.float32)

    # Input
    x = jax.random.normal(kx, (B, SIG), dtype=jnp.float32)

    # One-time parameter preprocessing (fold hamming + 1/N^2, slice/pad/fuse, bf16).
    w_ri, w3_pad, b3_pad = prepare_fourier_params(
        jnp.asarray(filters_np), jnp.asarray(w_fft_np), w3, b3)

    y = jax.block_until_ready(fourier_forward(x, w_ri, w3_pad, b3_pad))

    y_ref = _ref_forward(np.asarray(x), filters_np, w_fft_np, w_conj_np,
                         np.asarray(w3), np.asarray(b3))
    np.testing.assert_allclose(np.asarray(y), y_ref, rtol=2e-3, atol=2e-3)

    print("KERNEL_OK")
</pallas_src>

<mosaic_0001>
module attributes {stable_mosaic.version = 11 : i64} {
  func.func @fourier_kernel(%arg0: i32, %arg1: memref<8x1000xf32, #tpu.memory_space<vmem>>, %arg2: memref<1000x1024xbf16, #tpu.memory_space<vmem>>, %arg3: memref<512x256xf32, #tpu.memory_space<vmem>>, %arg4: memref<1x256xf32, #tpu.memory_space<vmem>>, %arg5: memref<8x256xf32, #tpu.memory_space<vmem>>) attributes {dimension_semantics = [#tpu.dimension_semantics<parallel>], iteration_bounds = array<i64: 1>, scalar_prefetch = 0 : i64, scratch_operands = 0 : i64, tpu.core_type = #tpu.core_type<tc>, window_params = [{transform_indices = @transform_0, window_bounds = array<i64: 8, 1000>}, {pipeline_mode = #tpu.pipeline_mode<synchronous>, transform_indices = @transform_1, window_bounds = array<i64: 1000, 1024>}, {pipeline_mode = #tpu.pipeline_mode<synchronous>, transform_indices = @transform_2, window_bounds = array<i64: 512, 256>}, {pipeline_mode = #tpu.pipeline_mode<synchronous>, transform_indices = @transform_3, window_bounds = array<i64: 1, 256>}, {transform_indices = @transform_4, window_bounds = array<i64: 8, 256>}]} {
    %c0 = arith.constant 0 : index
    %c0_0 = arith.constant 0 : index
    %0 = vector.load %arg1[%c0, %c0_0] : memref<8x1000xf32, #tpu.memory_space<vmem>>, vector<8x1000xf32>
    %1 = arith.truncf %0 : vector<8x1000xf32> to vector<8x1000xbf16>
    %c0_1 = arith.constant 0 : index
    %c0_2 = arith.constant 0 : index
    %2 = vector.load %arg2[%c0_1, %c0_2] : memref<1000x1024xbf16, #tpu.memory_space<vmem>>, vector<1000x1024xbf16>
    %cst = arith.constant dense<0.000000e+00> : vector<8x1024xf32>
    %3 = tpu.matmul %1, %2, %cst {dimension_numbers = #tpu.dot_dimension_numbers<[1], [0], [0], [1], [0, 0, 1, 1], [], []>} : vector<8x1000xbf16>, vector<1000x1024xbf16>, vector<8x1024xf32> -> vector<8x1024xf32>
    %4 = vector.extract_strided_slice %3 {offsets = [0, 0], sizes = [8, 512], strides = [1, 1]} : vector<8x1024xf32> to vector<8x512xf32>
    %5 = vector.extract_strided_slice %3 {offsets = [0, 512], sizes = [8, 512], strides = [1, 1]} : vector<8x1024xf32> to vector<8x512xf32>
    %6 = arith.mulf %4, %4 : vector<8x512xf32>
    %7 = arith.mulf %5, %5 : vector<8x512xf32>
    %8 = arith.addf %6, %7 : vector<8x512xf32>
    %c0_3 = arith.constant 0 : index
    %c0_4 = arith.constant 0 : index
    %9 = vector.load %arg3[%c0_3, %c0_4] : memref<512x256xf32, #tpu.memory_space<vmem>>, vector<512x256xf32>
    %cst_5 = arith.constant dense<0.000000e+00> : vector<8x256xf32>
    %10 = tpu.matmul %8, %9, %cst_5 {dimension_numbers = #tpu.dot_dimension_numbers<[1], [0], [0], [1], [0, 0, 1, 1], [], []>} : vector<8x512xf32>, vector<512x256xf32>, vector<8x256xf32> -> vector<8x256xf32>
    %c0_6 = arith.constant 0 : index
    %c0_7 = arith.constant 0 : index
    %11 = vector.load %arg4[%c0_6, %c0_7] : memref<1x256xf32, #tpu.memory_space<vmem>>, vector<1x256xf32>
    %12 = vector.broadcast %11 : vector<1x256xf32> to vector<8x256xf32>
    %13 = arith.addf %10, %12 : vector<8x256xf32>
    %c0_8 = arith.constant 0 : index
    %c0_9 = arith.constant 0 : index
    %14 = vector.load %arg5[%c0_8, %c0_9] : memref<8x256xf32, #tpu.memory_space<vmem>>, vector<8x256xf32>
    tpu.vector_store %arg5[%c0_8, %c0_9], %13 {strides = array<i32>} : memref<8x256xf32, #tpu.memory_space<vmem>>, vector<8x256xf32>,
    return
  }
  func.func @transform_0(%arg0: i32) -> (i32, i32) {
    %c0_i32 = arith.constant 0 : i32
    %c0_i32_0 = arith.constant 0 : i32
    return %arg0, %c0_i32 : i32, i32
  }
  func.func @transform_1(%arg0: i32) -> (i32, i32) {
    %c0_i32 = arith.constant 0 : i32
    %c0_i32_0 = arith.constant 0 : i32
    %c0_i32_1 = arith.constant 0 : i32
    return %c0_i32, %c0_i32_0 : i32, i32
  }
  func.func @transform_2(%arg0: i32) -> (i32, i32) {
    %c0_i32 = arith.constant 0 : i32
    %c0_i32_0 = arith.constant 0 : i32
    %c0_i32_1 = arith.constant 0 : i32
    return %c0_i32, %c0_i32_0 : i32, i32
  }
  func.func @transform_3(%arg0: i32) -> (i32, i32) {
    %c0_i32 = arith.constant 0 : i32
    %c0_i32_0 = arith.constant 0 : i32
    %c0_i32_1 = arith.constant 0 : i32
    return %c0_i32, %c0_i32_0 : i32, i32
  }
  func.func @transform_4(%arg0: i32) -> (i32, i32) {
    %c0_i32 = arith.constant 0 : i32
    %c0_i32_0 = arith.constant 0 : i32
    return %arg0, %c0_i32 : i32, i32
  }
}

</mosaic_0001>

<bundles_post_ra>
// kernel: tpu_custom_call.1
= control target key start
LH: loop header
LB: loop body
LE: loop exit
PB: predicated region body
PF: predicated region fallthrough
CT: control target
= control target key end

     0   :  { %9 = vsyncpa [#allocation3], 0  ;;  %s7137_s0 = inlined_call_operand.hbm [shape: f32[8,1000], index: 0, kind: input, shape index: {}]   ;;  %s7138_s1 = inlined_call_operand.hbm [shape: bf16[1000,1024], index: 1, kind: input, shape index: {}]   ;;  %s7139_s2 = inlined_call_operand.hbm [shape: f32[512,256], index: 2, kind: input, shape index: {}]   ;;  %s7140_s3 = inlined_call_operand.hbm [shape: f32[1,256], index: 3, kind: input, shape index: {}]   ;;  %s7141_s4 = inlined_call_operand.hbm [shape: f32[8,256], index: 4, kind: output, shape index: {}]  }
   0x1   :  { %10 = vsyncpa [#allocation6], 0 }
   0x2   :  { %11 = vsyncpa [#allocation9], 0  ;;  %s28_s17 = sshll.u32 %s7138_s1, 4  ;;  %s29_s17 = int_to_ptr.hbm [resolvable:$true] %s28_s17 }
   0x3   :  { %12 = vsyncpa [#allocation4], 0  ;;  %s6907_s18 = smov [#allocation5]   ;;  %s18_s22 = sshll.u32 %s7137_s0, 4  ;;  %s19_s22 = int_to_ptr.hbm [resolvable:$true] %s18_s22 }
   0x4   :  { %s30_s19 = sshll.u32 %s6907_s18, 4  ;;  %s6908_s23 = smov 512   ;;  %s31_s19 = int_to_ptr.vmem [resolvable:$true] %s30_s19 }
   0x5   :  { %s6909_s24 = smov 32   ;;  %s6910_s25 = smov [#allocation2]  }
   0x6   :  { %36 = dma.hbm_to_vmem [thread:$0]  %s29_s17, 64000, %s31_s19, [#allocation6], %s6908_s23, %s6908_s23, %s6909_s24  }
   0x7   :  { %s20_s26 = sshll.u32 %s6910_s25, 4  ;;  %s41_s29 = sshll.u32 %s7139_s2, 4  ;;  %s21_s26 = int_to_ptr.vmem [resolvable:$true] %s20_s26  ;;  %s42_s29 = int_to_ptr.hbm [resolvable:$true] %s41_s29 }
   0x8   :  { %23 = dma.hbm_to_vmem [thread:$0]  %s19_s22, 1024, %s21_s26, [#allocation3]  }
   0x9   :  { %s6911_s1 = smov [#allocation7]   ;;  %s55_s0 = sshll.u32 %s7140_s3, 4  ;;  %s56_s0 = int_to_ptr.hbm [resolvable:$true] %s55_s0 }
   0xa   :  { %s43_s30 = sshll.u32 %s6911_s1, 4  ;;  %s6912_s7 = smov 256   ;;  %s44_s30 = int_to_ptr.vmem [resolvable:$true] %s43_s30 }
   0xb   :  { %s6913_s8 = smov 16   ;;  %s6914_s9 = smov [#allocation8]  }
   0xc   :  { %49 = dma.hbm_to_vmem [thread:$0]  %s42_s29, 16384, %s44_s30, [#allocation6], %s6912_s7, %s6912_s7, %s6913_s8  }
   0xd   :  { %s57_s10 = sshll.u32 %s6914_s9, 4  ;;  %s58_s10 = int_to_ptr.vmem [resolvable:$true] %s57_s10 }
   0xe   :  { %60 = dma.hbm_to_vmem [thread:$0]  %s56_s0, 32, %s58_s10, [#allocation9]  }
   0xf   :  { %6899 = dma.done.wait [#allocation3], 1024  }
  0x10   :  { %6900 = vsyncadd [#allocation3], 4294966272 }
  0x11   :  { %6901 = dma.done.wait [#allocation6], 80384  }
  0x12   :  { %6902 = vsyncadd [#allocation6], 4294886912 }
  0x13   :  { %6903 = dma.done.wait [#allocation9], 32  }
  0x14   :  { %6904 = vsyncadd [#allocation9], 4294967264  ;;  %v4508_v0 = vld [vmem:[#allocation5 + $0x1c0] sm:$0xf]  ;;  %vm3098_vm0 = vcmask 1043456   ;;  %vm3094_vm1 = vcmask 850944  }
  0x15   :  { %v6334_v1 = vld [vmem:[#allocation5 + $0x1dc] sm:$0xf0]  ;;  %s6915_s2 = smov [#allocation10]   ;;  %s4270_s13 = sshll.u32 %s7141_s4, 4  ;;  %s4271_s13 = int_to_ptr.hbm [resolvable:$true] %s4270_s13 }
  0x16   :  { %v4764_v2 = vld [vmem:[#allocation5 + $0x3c0] sm:$0xf]  ;;  %v4509_v3 = vor.u32 %v6334_v1, %v4508_v0  ;;  %s4268_s3 = sshll.u32 %s6915_s2, 4  ;;  %s4269_s3 = int_to_ptr.vmem [resolvable:$true] %s4268_s3 }
  0x17   :  { %v6398_v4 = vld [vmem:[#allocation5 + $0x3dc] sm:$0xf0] }
  0x18   :  { %v5020_v5 = vld [vmem:[#allocation5 + $0x5c0] sm:$0xf]  ;;  %v4765_v7 = vor.u32 %v6398_v4, %v4764_v2  ;;  %3123 = vmatpush.bf16.msra.mxu0 %v4509_v3 }
  0x19   :  { %v6462_v6 = vld [vmem:[#allocation5 + $0x5dc] sm:$0xf0] }
  0x1a   :  { %v5021_v8 = vor.u32 %v6462_v6, %v5020_v5  ;;  %v5276_v9 = vld [vmem:[#allocation5 + $0x7c0] sm:$0xf]  ;;  %3136 = vmatpush.bf16.msra.mxu1 %v4765_v7 }
  0x1b   :  { %v6526_v10 = vld [vmem:[#allocation5 + $0x7dc] sm:$0xf0] }
  0x1c   :  { %v4476_v11 = vld [vmem:[#allocation5 + $0x180] sm:$0xf]  ;;  %v5277_v12 = vor.u32 %v6526_v10, %v5276_v9  ;;  %3149 = vmatpush.bf16.msra.mxu2 %v5021_v8 }
  0x1d   :  { %v6326_v13 = vld [vmem:[#allocation5 + $0x19c] sm:$0xf0] }
  0x1e   :  { %v4732_v14 = vld [vmem:[#allocation5 + $0x380] sm:$0xf]  ;;  %v4477_v16 = vor.u32 %v6326_v13, %v4476_v11  ;;  %3162 = vmatpush.bf16.msra.mxu3 %v5277_v12 }
  0x1f   :  { %v6390_v15 = vld [vmem:[#allocation5 + $0x39c] sm:$0xf0] }
  0x20   :  { %v4733_v17 = vor.u32 %v6390_v15, %v4732_v14  ;;  %v4988_v18 = vld [vmem:[#allocation5 + $0x580] sm:$0xf]  ;;  %3124 = vmatpush.bf16.msra.mxu0 %v4477_v16 }
  0x21   :  { %v6454_v19 = vld [vmem:[#allocation5 + $0x59c] sm:$0xf0] }
  0x22   :  { %v5244_v20 = vld [vmem:[#allocation5 + $0x780] sm:$0xf]  ;;  %v4989_v21 = vor.u32 %v6454_v19, %v4988_v18  ;;  %3137 = vmatpush.bf16.msra.mxu1 %v4733_v17 }
  0x23   :  { %v6518_v22 = vld [vmem:[#allocation5 + $0x79c] sm:$0xf0] }
  0x24   :  { %v4444_v23 = vld [vmem:[#allocation5 + $0x140] sm:$0xf]  ;;  %v5245_v25 = vor.u32 %v6518_v22, %v5244_v20  ;;  %3150 = vmatpush.bf16.msra.mxu2 %v4989_v21 }
  0x25   :  { %v6318_v24 = vld [vmem:[#allocation5 + $0x15c] sm:$0xf0] }
  0x26   :  { %v4700_v26 = vld [vmem:[#allocation5 + $0x340] sm:$0xf]  ;;  %v4445_v29 = vor.u32 %v6318_v24, %v4444_v23  ;;  %3163 = vmatpush.bf16.msra.mxu3 %v5245_v25 }
  0x27   :  { %v6382_v27 = vld [vmem:[#allocation5 + $0x35c] sm:$0xf0] }
  0x28   :  { %v4956_v28 = vld [vmem:[#allocation5 + $0x540] sm:$0xf]  ;;  %v4701_v33 = vor.u32 %v6382_v27, %v4700_v26  ;;  %3125 = vmatpush.bf16.msra.mxu0 %v4445_v29 }
  0x29   :  { %v6446_v30 = vld [vmem:[#allocation5 + $0x55c] sm:$0xf0] }
  0x2a   :  { %v5212_v31 = vld [vmem:[#allocation5 + $0x740] sm:$0xf]  ;;  %v4957_v34 = vor.u32 %v6446_v30, %v4956_v28  ;;  %3138 = vmatpush.bf16.msra.mxu1 %v4701_v33 }
  0x2b   :  { %v6510_v32 = vld [vmem:[#allocation5 + $0x75c] sm:$0xf0] }
  0x2c   :  { %v4412_v35 = vld [vmem:[#allocation5 + $0x100] sm:$0xf]  ;;  %v5213_v38 = vor.u32 %v6510_v32, %v5212_v31  ;;  %3151 = vmatpush.bf16.msra.mxu2 %v4957_v34 }
  0x2d   :  { %v6310_v36 = vld [vmem:[#allocation5 + $0x11c] sm:$0xf0] }
  0x2e   :  { %v4668_v37 = vld [vmem:[#allocation5 + $0x300] sm:$0xf]  ;;  %v4413_v44 = vor.u32 %v6310_v36, %v4412_v35  ;;  %3164 = vmatpush.bf16.msra.mxu3 %v5213_v38 }
  0x2f   :  { %v6374_v39 = vld [vmem:[#allocation5 + $0x31c] sm:$0xf0] }
  0x30   :  { %v4924_v40 = vld [vmem:[#allocation5 + $0x500] sm:$0xf]  ;;  %v4669_v45 = vor.u32 %v6374_v39, %v4668_v37  ;;  %3126 = vmatpush.bf16.msra.mxu0 %v4413_v44 }
  0x31   :  { %v6438_v41 = vld [vmem:[#allocation5 + $0x51c] sm:$0xf0] }
  0x32   :  { %v5180_v42 = vld [vmem:[#allocation5 + $0x700] sm:$0xf]  ;;  %v4925_v46 = vor.u32 %v6438_v41, %v4924_v40  ;;  %3139 = vmatpush.bf16.msra.mxu1 %v4669_v45  ;;  %v80_v40 = vld [vmem:[#allocation2 + $0x10] sm:$0xff] }
  0x33   :  { %v6502_v43 = vld [vmem:[#allocation5 + $0x71c] sm:$0xf0] }
  0x34   :  { %v4380_v47 = vld [vmem:[#allocation5 + $0xc0] sm:$0xf]  ;;  %v5181_v50 = vor.u32 %v6502_v43, %v5180_v42  ;;  %3152 = vmatpush.bf16.msra.mxu2 %v4925_v46 }
  0x35   :  { %v6302_v48 = vld [vmem:[#allocation5 + $0xdc] sm:$0xf0] }
  0x36   :  { %v4636_v49 = vld [vmem:[#allocation5 + $0x2c0] sm:$0xf]  ;;  %v4381_v56 = vor.u32 %v6302_v48, %v4380_v47  ;;  %3165 = vmatpush.bf16.msra.mxu3 %v5181_v50 }
  0x37   :  { %v6366_v51 = vld [vmem:[#allocation5 + $0x2dc] sm:$0xf0] }
  0x38   :  { %v4892_v52 = vld [vmem:[#allocation5 + $0x4c0] sm:$0xf]  ;;  %v4637_v57 = vor.u32 %v6366_v51, %v4636_v49  ;;  %3127 = vmatpush.bf16.msra.mxu0 %v4381_v56  ;;  %v6956_v51 = vpack.c.bf16 %v80_v40, %v80_v40 }
  0x39   :  { %v6430_v53 = vld [vmem:[#allocation5 + $0x4dc] sm:$0xf0] }
  0x3a   :  { %v5148_v54 = vld [vmem:[#allocation5 + $0x6c0] sm:$0xf]  ;;  %v4893_v58 = vor.u32 %v6430_v53, %v4892_v52  ;;  %3140 = vmatpush.bf16.msra.mxu1 %v4637_v57 }
  0x3b   :  { %v6494_v55 = vld [vmem:[#allocation5 + $0x6dc] sm:$0xf0] }
  0x3c   :  { %v4348_v59 = vld [vmem:[#allocation5 + $0x80] sm:$0xf]  ;;  %v5149_v62 = vor.u32 %v6494_v55, %v5148_v54  ;;  %3153 = vmatpush.bf16.msra.mxu2 %v4893_v58 }
  0x3d   :  { %v6294_v60 = vld [vmem:[#allocation5 + $0x9c] sm:$0xf0] }
  0x3e   :  { %v4604_v61 = vld [vmem:[#allocation5 + $0x280] sm:$0xf]  ;;  %v4349_v4 = vor.u32 %v6294_v60, %v4348_v59  ;;  %3166 = vmatpush.bf16.msra.mxu3 %v5149_v62 }
  0x3f   :  { %v6358_v63 = vld [vmem:[#allocation5 + $0x29c] sm:$0xf0] }
  0x40   :  { %v4860_v0 = vld [vmem:[#allocation5 + $0x480] sm:$0xf]  ;;  %v4605_v5 = vor.u32 %v6358_v63, %v4604_v61  ;;  %3128 = vmatpush.bf16.msra.mxu0 %v4349_v4 }
  0x41   :  { %v6422_v1 = vld [vmem:[#allocation5 + $0x49c] sm:$0xf0] }
  0x42   :  { %v5116_v2 = vld [vmem:[#allocation5 + $0x680] sm:$0xf]  ;;  %v4861_v6 = vor.u32 %v6422_v1, %v4860_v0  ;;  %3141 = vmatpush.bf16.msra.mxu1 %v4605_v5 }
  0x43   :  { %v6486_v3 = vld [vmem:[#allocation5 + $0x69c] sm:$0xf0] }
  0x44   :  { %v4316_v7 = vld [vmem:[#allocation5 + $0x40] sm:$0xf]  ;;  %v5117_v10 = vor.u32 %v6486_v3, %v5116_v2  ;;  %3154 = vmatpush.bf16.msra.mxu2 %v4861_v6  ;;  %v81_v3 = vld [vmem:[#allocation2 + $0x18] sm:$0xff] }
  0x45   :  { %v6286_v8 = vld [vmem:[#allocation5 + $0x5c] sm:$0xf0]  ;;  %v6962_v6 = vpack.c.bf16 %v81_v3, %v81_v3 }
  0x46   :  { %v4572_v9 = vld [vmem:[#allocation5 + $0x240] sm:$0xf]  ;;  %v4317_v16 = vor.u32 %v6286_v8, %v4316_v7  ;;  %3167 = vmatpush.bf16.msra.mxu3 %v5117_v10 }
  0x47   :  { %v6350_v11 = vld [vmem:[#allocation5 + $0x25c] sm:$0xf0] }
  0x48   :  { %v4828_v12 = vld [vmem:[#allocation5 + $0x440] sm:$0xf]  ;;  %v4573_v20 = vor.u32 %v6350_v11, %v4572_v9  ;;  %3129 = vmatpush.bf16.msra.mxu0 %v4317_v16 }
  0x49   :  { %v6414_v13 = vld [vmem:[#allocation5 + $0x45c] sm:$0xf0] }
  0x4a   :  { %v5084_v14 = vld [vmem:[#allocation5 + $0x640] sm:$0xf]  ;;  %v4829_v21 = vor.u32 %v6414_v13, %v4828_v12  ;;  %3142 = vmatpush.bf16.msra.mxu1 %v4573_v20  ;;  %v79_v13 = vld [vmem:[#allocation2 + $0x8] sm:$0xff] }
  0x4b   :  { %v6478_v15 = vld [vmem:[#allocation5 + $0x65c] sm:$0xf0] }
  0x4c   :  { %v4284_v17 = vld [vmem:[#allocation5] sm:$0xf]  ;;  %v5085_v26 = vor.u32 %v6478_v15, %v5084_v14  ;;  %3155 = vmatpush.bf16.msra.mxu2 %v4829_v21 }
  0x4d   :  { %v6278_v18 = vld [vmem:[#allocation5 + $0x1c] sm:$0xf0] }
  0x4e   :  { %v6953_v19 = vld [vmem:[#allocation5 + $0xf80] sm:$0xff]  ;;  %v4285_v33 = vor.u32 %v6278_v18, %v4284_v17  ;;  %3168 = vmatpush.bf16.msra.mxu3 %v5085_v26  ;;  %v6965_v18 = vpack.c.bf16 %v79_v13, %v79_v13 }
  0x4f   :  { %v4540_v22 = vld [vmem:[#allocation5 + $0x200] sm:$0xf]  ;;  %v2086_v25 = vunpack.c.l.b16 %v6953_v19  ;;  %v6458_v13 = vld [vmem:[#allocation5 + $0x5c4] sm:$0xf] }
  0x50   :  { %v6342_v23 = vld [vmem:[#allocation5 + $0x21c] sm:$0xf0]  ;;  %3130 = vmatpush.bf16.msra.mxu0 %v4285_v33 }
  0x51   :  { %v4796_v24 = vld [vmem:[#allocation5 + $0x400] sm:$0xf]  ;;  %v4541_v37 = vor.u32 %v6342_v23, %v4540_v22  ;;  %v2590_v39 = vpack.c.b16 %v2086_v25, %v2086_v25 }
  0x52   :  { %v6406_v27 = vld [vmem:[#allocation5 + $0x41c] sm:$0xf0] }
  0x53   :  { %v5052_v28 = vld [vmem:[#allocation5 + $0x600] sm:$0xf]  ;;  %v4797_v38 = vor.u32 %v6406_v27, %v4796_v24  ;;  %3143 = vmatpush.bf16.msra.mxu1 %v4541_v37  ;;  %v3100_v52 = vsel %vm3098_vm0, %v2590_v39, 0 }
  0x54   :  { %v6470_v29 = vld [vmem:[#allocation5 + $0x61c] sm:$0xf0] }
  0x55   :  { %v5532_v30 = vld [vmem:[#allocation5 + $0x9c0] sm:$0xf]  ;;  %v5053_v41 = vor.u32 %v6470_v29, %v5052_v28  ;;  %3156 = vmatpush.bf16.msra.mxu2 %v4797_v38 }
  0x56   :  { %v6590_v31 = vld [vmem:[#allocation5 + $0x9dc] sm:$0xf0]  ;;  %3144 = vmatmul.bf16.vlgmr.msra.gmra.mxu1 %v6965_v18 }
  0x57   :  { %v5788_v32 = vld [vmem:[#allocation5 + $0xbc0] sm:$0xf]  ;;  %v5533_v42 = vor.u32 %v6590_v31, %v5532_v30  ;;  %3169 = vmatpush.bf16.msra.mxu3 %v5053_v41 }
  0x58   :  { %v6654_v34 = vld [vmem:[#allocation5 + $0xbdc] sm:$0xf0]  ;;  %3157 = vmatmul.bf16.vlgmr.msra.gmra.mxu2 %v6956_v51 }
  0x59   :  { %v6044_v35 = vld [vmem:[#allocation5 + $0xdc0] sm:$0xf]  ;;  %v5789_v43 = vor.u32 %v6654_v34, %v5788_v32  ;;  %3175 = vmatpush.bf16.msrb.mxu0 %v5533_v42 }
  0x5a   :  { %v6718_v36 = vld [vmem:[#allocation5 + $0xddc] sm:$0xf0]  ;;  %3170 = vmatmul.bf16.vlgmr.msra.gmra.mxu3 %v6962_v6 }
  0x5b   :  { %v6045_v44 = vor.u32 %v6718_v36, %v6044_v35  ;;  %v5500_v45 = vld [vmem:[#allocation5 + $0x980] sm:$0xf]  ;;  %3188 = vmatpush.bf16.msrb.mxu1 %v5789_v43  ;;  %3215 = vmatpush.bf16.msrb.mxu3 %v3100_v52 }
  0x5c   :  { %v6582_v46 = vld [vmem:[#allocation5 + $0x99c] sm:$0xf0] }
  0x5d   :  { %v5756_v47 = vld [vmem:[#allocation5 + $0xb80] sm:$0xf]  ;;  %v5501_v55 = vor.u32 %v6582_v46, %v5500_v45  ;;  %3201 = vmatpush.bf16.msrb.mxu2 %v6045_v44 }
  0x5e   :  { %v6646_v48 = vld [vmem:[#allocation5 + $0xb9c] sm:$0xf0] }
  0x5f   :  { %v6012_v49 = vld [vmem:[#allocation5 + $0xd80] sm:$0xf]  ;;  %v5757_v58 = vor.u32 %v6646_v48, %v5756_v47  ;;  %3176 = vmatpush.bf16.msrb.mxu0 %v5501_v55 }
  0x60   :  { %v6710_v50 = vld [vmem:[#allocation5 + $0xd9c] sm:$0xf0] }
  0x61   :  { %v6236_v53 = vld [vmem:[#allocation5 + $0xf40] sm:$0xf]  ;;  %v6013_v59 = vor.u32 %v6710_v50, %v6012_v49  ;;  %3189 = vmatpush.bf16.msrb.mxu1 %v5757_v58 }
  0x62   :  { %v6766_v54 = vld [vmem:[#allocation5 + $0xf5c] sm:$0xf0] }
  0x63   :  { %v5468_v56 = vld [vmem:[#allocation5 + $0x940] sm:$0xf]  ;;  %v6237_v63 = vor.u32 %v6766_v54, %v6236_v53  ;;  %3202 = vmatpush.bf16.msrb.mxu2 %v6013_v59  ;;  %v6330_v59 = vld [vmem:[#allocation5 + $0x1c4] sm:$0xf] }
  0x64   :  { %v6574_v57 = vld [vmem:[#allocation5 + $0x95c] sm:$0xf0] }
  0x65   :  { %v5724_v60 = vld [vmem:[#allocation5 + $0xb40] sm:$0xf]  ;;  %v5469_v7 = vor.u32 %v6574_v57, %v5468_v56  ;;  %3216 = vmatpush.bf16.msrb.mxu3 %v6237_v63 }
  0x66   :  { %v6638_v61 = vld [vmem:[#allocation5 + $0xb5c] sm:$0xf0] }
  0x67   :  { %v78_v62 = vld [vmem:[#allocation2] sm:$0xff]  ;;  %v5725_v9 = vor.u32 %v6638_v61, %v5724_v60  ;;  %3177 = vmatpush.bf16.msrb.mxu0 %v5469_v7 }
  0x68   :  { %v5980_v0 = vld [vmem:[#allocation5 + $0xd40] sm:$0xf]  ;;  %v6960_v2 = vpack.c.bf16 %v78_v62, %v78_v62  ;;  %v4510_v61 = vld [vmem:[#allocation5 + $0x1e0] sm:$0xf0] }
  0x69   :  { %v6702_v1 = vld [vmem:[#allocation5 + $0xd5c] sm:$0xf0]  ;;  %3190 = vmatpush.bf16.msrb.mxu1 %v5725_v9  ;;  %v6322_v9 = vld [vmem:[#allocation5 + $0x184] sm:$0xf] }
  0x6a   :  { %v6204_v4 = vld [vmem:[#allocation5 + $0xf00] sm:$0xf]  ;;  %v5981_v10 = vor.u32 %v6702_v1, %v5980_v0  ;;  %3131 = vmatmul.bf16.vlgmr.msra.gmra.mxu0 %v6960_v2 }
  0x6b   :  { %v6758_v5 = vld [vmem:[#allocation5 + $0xf1c] sm:$0xf0] }
  0x6c   :  { %v5436_v8 = vld [vmem:[#allocation5 + $0x900] sm:$0xf]  ;;  %v6205_v14 = vor.u32 %v6758_v5, %v6204_v4  ;;  %3203 = vmatpush.bf16.msrb.mxu2 %v5981_v10  ;;  %v6394_v10 = vld [vmem:[#allocation5 + $0x3c4] sm:$0xf] }
  0x6d   :  { %v6566_v11 = vld [vmem:[#allocation5 + $0x91c] sm:$0xf0] }
  0x6e   :  { %v5692_v12 = vld [vmem:[#allocation5 + $0xb00] sm:$0xf]  ;;  %v5437_v22 = vor.u32 %v6566_v11, %v5436_v8  ;;  %3217 = vmatpush.bf16.msrb.mxu3 %v6205_v14  ;;  %v4513_v11 = vor.u32 %v6330_v59, %v4510_v61  ;;  %v5022_v14 = vld [vmem:[#allocation5 + $0x5e0] sm:$0xf0] }
  0x6f   :  { %v6630_v15 = vld [vmem:[#allocation5 + $0xb1c] sm:$0xf0]  ;;  %v6370_v59 = vld [vmem:[#allocation5 + $0x304] sm:$0xf] }
  0x70   :  { %v5948_v16 = vld [vmem:[#allocation5 + $0xd00] sm:$0xf]  ;;  %v5693_v23 = vor.u32 %v6630_v15, %v5692_v12  ;;  %3178 = vmatpush.bf16.msrb.mxu0 %v5437_v22  ;;  %v4766_v12 = vld [vmem:[#allocation5 + $0x3e0] sm:$0xf0] }
  0x71   :  { %v6694_v17 = vld [vmem:[#allocation5 + $0xd1c] sm:$0xf0] }
  0x72   :  { %v6172_v20 = vld [vmem:[#allocation5 + $0xec0] sm:$0xf]  ;;  %v5949_v24 = vor.u32 %v6694_v17, %v5948_v16  ;;  %3191 = vmatpush.bf16.msrb.mxu1 %v5693_v23  ;;  %v4478_v16 = vld [vmem:[#allocation5 + $0x1a0] sm:$0xf0]  ;;  %v84_v23 = vld [vmem:[#allocation2 + $0x30] sm:$0xff] }
  0x73   :  { %v6750_v21 = vld [vmem:[#allocation5 + $0xedc] sm:$0xf0]  ;;  %v6522_v17 = vld [vmem:[#allocation5 + $0x7c4] sm:$0xf] }
  0x74   :  { %v5404_v25 = vld [vmem:[#allocation5 + $0x8c0] sm:$0xf]  ;;  %v6173_v28 = vor.u32 %v6750_v21, %v6172_v20  ;;  %3204 = vmatpush.bf16.msrb.mxu2 %v5949_v24  ;;  %v5278_v20 = vld [vmem:[#allocation5 + $0x7e0] sm:$0xf0] }
  0x75   :  { %v6558_v26 = vld [vmem:[#allocation5 + $0x8dc] sm:$0xf0] }
  0x76   :  { %v5660_v27 = vld [vmem:[#allocation5 + $0xac0] sm:$0xf]  ;;  %v5405_v34 = vor.u32 %v6558_v26, %v5404_v25  ;;  %3218 = vmatpush.bf16.msrb.mxu3 %v6173_v28  ;;  %v4769_v25 = vor.u32 %v6394_v10, %v4766_v12  ;;  %v5025_v26 = vor.u32 %v6458_v13, %v5022_v14  ;;  %v6386_v28 = vld [vmem:[#allocation5 + $0x384] sm:$0xf] }
  0x77   :  { %v6622_v29 = vld [vmem:[#allocation5 + $0xadc] sm:$0xf0]  ;;  %v4638_v12 = vld [vmem:[#allocation5 + $0x2e0] sm:$0xf0] }
  0x78   :  { %v5916_v30 = vld [vmem:[#allocation5 + $0xcc0] sm:$0xf]  ;;  %v5661_v35 = vor.u32 %v6622_v29, %v5660_v27  ;;  %3179 = vmatpush.bf16.msrb.mxu0 %v5405_v34  ;;  %v6314_v27 = vld [vmem:[#allocation5 + $0x144] sm:$0xf]  ;;  %v85_v29 = vld [vmem:[#allocation2 + $0x38] sm:$0xff] }
  0x79   :  { %v6686_v31 = vld [vmem:[#allocation5 + $0xcdc] sm:$0xf0]  ;;  %v6450_v34 = vld [vmem:[#allocation5 + $0x584] sm:$0xf] }
  0x7a   :  { %v6140_v32 = vld [vmem:[#allocation5 + $0xe80] sm:$0xf]  ;;  %v5917_v36 = vor.u32 %v6686_v31, %v5916_v30  ;;  %3192 = vmatpush.bf16.msrb.mxu1 %v5661_v35  ;;  %v83_v30 = vld [vmem:[#allocation2 + $0x28] sm:$0xff]  ;;  %v4481_v31 = vor.u32 %v6322_v9, %v4478_v16  ;;  %v4990_v35 = vld [vmem:[#allocation5 + $0x5a0] sm:$0xf0] }
  0x7b   :  { %v6742_v33 = vld [vmem:[#allocation5 + $0xe9c] sm:$0xf0]  ;;  %v6362_v9 = vld [vmem:[#allocation5 + $0x2c4] sm:$0xf] }
  0x7c   :  { %v5372_v37 = vld [vmem:[#allocation5 + $0x880] sm:$0xf]  ;;  %v6141_v40 = vor.u32 %v6742_v33, %v6140_v32  ;;  %3205 = vmatpush.bf16.msrb.mxu2 %v5917_v36  ;;  %v5281_v32 = vor.u32 %v6522_v17, %v5278_v20  ;;  %v4734_v33 = vld [vmem:[#allocation5 + $0x3a0] sm:$0xf0]  ;;  %v6969_v36 = vpack.c.bf16 %v84_v23, %v84_v23  ;;  %v4641_v20 = vor.u32 %v6362_v9, %v4638_v12 }
  0x7d   :  { %v6550_v38 = vld [vmem:[#allocation5 + $0x89c] sm:$0xf0]  ;;  %v6426_v13 = vld [vmem:[#allocation5 + $0x4c4] sm:$0xf] }
  0x7e   :  { %v5628_v39 = vld [vmem:[#allocation5 + $0xa80] sm:$0xf]  ;;  %v5373_v46 = vor.u32 %v6550_v38, %v5372_v37  ;;  %3219 = vmatpush.bf16.msrb.mxu3 %v6141_v40  ;;  %v4446_v37 = vld [vmem:[#allocation5 + $0x160] sm:$0xf0] }
  0x7f   :  { %v6614_v41 = vld [vmem:[#allocation5 + $0xa9c] sm:$0xf0]  ;;  %v6514_v38 = vld [vmem:[#allocation5 + $0x784] sm:$0xf] }
  0x80   :  { %v5884_v42 = vld [vmem:[#allocation5 + $0xc80] sm:$0xf]  ;;  %v5629_v47 = vor.u32 %v6614_v41, %v5628_v39  ;;  %3180 = vmatpush.bf16.msrb.mxu0 %v5373_v46  ;;  %v5246_v39 = vld [vmem:[#allocation5 + $0x7a0] sm:$0xf0]  ;;  %v6973_v41 = vpack.c.bf16 %v85_v29, %v85_v29 }
  0x81   :  { %v6678_v43 = vld [vmem:[#allocation5 + $0xc9c] sm:$0xf0]  ;;  %v6378_v46 = vld [vmem:[#allocation5 + $0x344] sm:$0xf] }
  0x82   :  { %v6108_v44 = vld [vmem:[#allocation5 + $0xe40] sm:$0xf]  ;;  %v5885_v48 = vor.u32 %v6678_v43, %v5884_v42  ;;  %3193 = vmatpush.bf16.msrb.mxu1 %v5629_v47  ;;  %v6975_v42 = vpack.c.bf16 %v83_v30, %v83_v30  ;;  %v4737_v43 = vor.u32 %v6386_v28, %v4734_v33  ;;  %v4449_v47 = vor.u32 %v6314_v27, %v4446_v37  ;;  %v4894_v14 = vld [vmem:[#allocation5 + $0x4e0] sm:$0xf0] }
  0x83   :  { %v6734_v45 = vld [vmem:[#allocation5 + $0xe5c] sm:$0xf0]  ;;  %v6490_v16 = vld [vmem:[#allocation5 + $0x6c4] sm:$0xf] }
  0x84   :  { %v5340_v49 = vld [vmem:[#allocation5 + $0x840] sm:$0xf]  ;;  %v6109_v53 = vor.u32 %v6734_v45, %v6108_v44  ;;  %3206 = vmatpush.bf16.msrb.mxu2 %v5885_v48  ;;  %v4993_v44 = vor.u32 %v6450_v34, %v4990_v35  ;;  %v6306_v45 = vld [vmem:[#allocation5 + $0x104] sm:$0xf]  ;;  %v5249_v48 = vor.u32 %v6514_v38, %v5246_v39 }
  0x85   :  { %v6542_v50 = vld [vmem:[#allocation5 + $0x85c] sm:$0xf0]  ;;  %v5150_v17 = vld [vmem:[#allocation5 + $0x6e0] sm:$0xf0] }
  0x86   :  { %v5596_v52 = vld [vmem:[#allocation5 + $0xa40] sm:$0xf]  ;;  %v5341_v60 = vor.u32 %v6542_v50, %v5340_v49  ;;  %3220 = vmatpush.bf16.msrb.mxu3 %v6109_v53  ;;  %v4702_v49 = vld [vmem:[#allocation5 + $0x360] sm:$0xf0] }
  0x87   :  { %v6606_v54 = vld [vmem:[#allocation5 + $0xa5c] sm:$0xf0]  ;;  %v6442_v50 = vld [vmem:[#allocation5 + $0x544] sm:$0xf] }
  0x88   :  { %v5852_v55 = vld [vmem:[#allocation5 + $0xc40] sm:$0xf]  ;;  %v5597_v0 = vor.u32 %v6606_v54, %v5596_v52  ;;  %3181 = vmatpush.bf16.msrb.mxu0 %v5341_v60  ;;  %v4958_v52 = vld [vmem:[#allocation5 + $0x560] sm:$0xf0] }
  0x89   :  { %v6670_v56 = vld [vmem:[#allocation5 + $0xc5c] sm:$0xf0]  ;;  %v4414_v53 = vld [vmem:[#allocation5 + $0x120] sm:$0xf0] }
  0x8a   :  { %v6076_v57 = vld [vmem:[#allocation5 + $0xe00] sm:$0xf]  ;;  %v5853_v1 = vor.u32 %v6670_v56, %v5852_v55  ;;  %3194 = vmatpush.bf16.msrb.mxu1 %v5597_v0  ;;  %v6506_v54 = vld [vmem:[#allocation5 + $0x744] sm:$0xf]  ;;  %v4705_v56 = vor.u32 %v6378_v46, %v4702_v49  ;;  %v4417_v60 = vor.u32 %v6306_v45, %v4414_v53 }
  0x8b   :  { %v6726_v58 = vld [vmem:[#allocation5 + $0xe1c] sm:$0xf0]  ;;  %v5214_v55 = vld [vmem:[#allocation5 + $0x760] sm:$0xf0] }
  0x8c   :  { %v5308_v62 = vld [vmem:[#allocation5 + $0x800] sm:$0xf]  ;;  %v6077_v7 = vor.u32 %v6726_v58, %v6076_v57  ;;  %3207 = vmatpush.bf16.msrb.mxu2 %v5853_v1  ;;  %v4961_v57 = vor.u32 %v6442_v50, %v4958_v52  ;;  %v6298_v58 = vld [vmem:[#allocation5 + $0xc4] sm:$0xf]  ;;  %v5217_v61 = vor.u32 %v6506_v54, %v5214_v55  ;;  %v2087_v50 = vunpack.c.h.b16 %v6953_v19 }
  0x8d   :  { %v6534_v63 = vld [vmem:[#allocation5 + $0x81c] sm:$0xf0]  ;;  %v4926_v0 = vld [vmem:[#allocation5 + $0x520] sm:$0xf0] }
  0x8e   :  { %v5564_v3 = vld [vmem:[#allocation5 + $0xa00] sm:$0xf]  ;;  %v5309_v15 = vor.u32 %v6534_v63, %v5308_v62  ;;  %3221 = vmatpush.bf16.msrb.mxu3 %v6077_v7  ;;  %v4670_v62 = vld [vmem:[#allocation5 + $0x320] sm:$0xf0] }
  0x8f   :  { %v6598_v4 = vld [vmem:[#allocation5 + $0xa1c] sm:$0xf0]  ;;  %v6434_v63 = vld [vmem:[#allocation5 + $0x504] sm:$0xf] }
  0x90   :  { %v5820_v5 = vld [vmem:[#allocation5 + $0xc00] sm:$0xf]  ;;  %v5565_v21 = vor.u32 %v6598_v4, %v5564_v3  ;;  %3182 = vmatpush.bf16.msrb.mxu0 %v5309_v15  ;;  %v4382_v1 = vld [vmem:[#allocation5 + $0xe0] sm:$0xf0]  ;;  %v4929_v7 = vor.u32 %v6434_v63, %v4926_v0 }
  0x91   :  { %v6662_v8 = vld [vmem:[#allocation5 + $0xc1c] sm:$0xf0]  ;;  %6266 = vmatmul.msk.bf16.vlgmr.msrb.gmra.mxu3 %vm3094_vm1, %v6973_v41  ;;  %v6498_v3 = vld [vmem:[#allocation5 + $0x704] sm:$0xf]  ;;  %v4385_v10 = vor.u32 %v6298_v58, %v4382_v1 }
  0x92   :  { %v5821_v22 = vor.u32 %v6662_v8, %v5820_v5  ;;  %v82_v24 = vld [vmem:[#allocation2 + $0x20] sm:$0xff]  ;;  %3227 = vmatpush.bf16.msra.mxu3 %v4513_v11  ;;  %3195 = vmatpush.bf16.msrb.mxu1 %v5565_v21  ;;  %v4673_v5 = vor.u32 %v6370_v59, %v4670_v62  ;;  %v4897_v21 = vor.u32 %v6426_v13, %v4894_v14 }
  0x93   :  { %v6971_v40 = vpack.c.bf16 %v82_v24, %v82_v24  ;;  %v5182_v4 = vld [vmem:[#allocation5 + $0x720] sm:$0xf0] }
  0x94   :  { %3208 = vmatpush.bf16.msrb.mxu2 %v5821_v22  ;;  %3240 = vmatpush.bf16.msra.mxu0 %v4769_v25  ;;  %v6290_v8 = vld [vmem:[#allocation5 + $0x84] sm:$0xf]  ;;  %v5185_v11 = vor.u32 %v6498_v3, %v5182_v4  ;;  %v5153_v25 = vor.u32 %v6490_v16, %v5150_v17 }
  0x95   :  { %3183 = vmatmul.bf16.vlgmr.msrb.gmra.mxu0 %v6971_v40  ;;  %3196 = vmatmul.bf16.vlgmr.msrb.gmra.mxu1 %v6975_v42  ;;  %v4350_v15 = vld [vmem:[#allocation5 + $0xa0] sm:$0xf0] }
  0x96   :  { %3253 = vmatpush.bf16.msra.mxu1 %v5025_v26  ;;  %3228 = vmatpush.bf16.msra.mxu3 %v4481_v31  ;;  %v6282_v22 = vld [vmem:[#allocation5 + $0x44] sm:$0xf]  ;;  %v4353_v24 = vor.u32 %v6290_v8, %v4350_v15  ;;  %v2591_v8 = vpack.c.b16 %v2087_v50, %v2087_v50 }
  0x97   :  { %3209 = vmatmul.bf16.vlgmr.msrb.gmra.mxu2 %v6969_v36  ;;  %v6354_v23 = vld [vmem:[#allocation5 + $0x284] sm:$0xf] }
  0x98   :  { %3266 = vmatpush.bf16.msra.mxu2 %v5281_v32  ;;  %3241 = vmatpush.bf16.msra.mxu0 %v4737_v43  ;;  %v4606_v26 = vld [vmem:[#allocation5 + $0x2a0] sm:$0xf0] }
  0x99   :  { %v6418_v27 = vld [vmem:[#allocation5 + $0x484] sm:$0xf]  ;;  %v4609_v32 = vor.u32 %v6354_v23, %v4606_v26 }
  0x9a   :  { %3254 = vmatpush.bf16.msra.mxu1 %v4993_v44  ;;  %3229 = vmatpush.bf16.msra.mxu3 %v4449_v47  ;;  %v4862_v28 = vld [vmem:[#allocation5 + $0x4a0] sm:$0xf0] }
  0x9b   :  { %v4318_v29 = vld [vmem:[#allocation5 + $0x60] sm:$0xf0]  ;;  %v4865_v33 = vor.u32 %v6418_v27, %v4862_v28 }
  0x9c   :  { %3267 = vmatpush.bf16.msra.mxu2 %v5249_v48  ;;  %3242 = vmatpush.bf16.msra.mxu0 %v4705_v56  ;;  %v6482_v30 = vld [vmem:[#allocation5 + $0x684] sm:$0xf]  ;;  %v4321_v37 = vor.u32 %v6282_v22, %v4318_v29 }
  0x9d   :  { %v5118_v31 = vld [vmem:[#allocation5 + $0x6a0] sm:$0xf0] }
  0x9e   :  { %3255 = vmatpush.bf16.msra.mxu1 %v4961_v57  ;;  %3230 = vmatpush.bf16.msra.mxu3 %v4417_v60  ;;  %v6274_v34 = vld [vmem:[#allocation5 + $0x4] sm:$0xf]  ;;  %v5121_v38 = vor.u32 %v6482_v30, %v5118_v31 }
  0x9f   :  { %v6346_v35 = vld [vmem:[#allocation5 + $0x244] sm:$0xf] }
  0xa0   :  { %3268 = vmatpush.bf16.msra.mxu2 %v5217_v61  ;;  %3243 = vmatpush.bf16.msra.mxu0 %v4673_v5  ;;  %v4574_v39 = vld [vmem:[#allocation5 + $0x260] sm:$0xf0] }
  0xa1   :  { %v6410_v43 = vld [vmem:[#allocation5 + $0x444] sm:$0xf]  ;;  %v4577_v52 = vor.u32 %v6346_v35, %v4574_v39 }
  0xa2   :  { %3256 = vmatpush.bf16.msra.mxu1 %v4929_v7  ;;  %3231 = vmatpush.bf16.msra.mxu3 %v4385_v10  ;;  %v4830_v44 = vld [vmem:[#allocation5 + $0x460] sm:$0xf0] }
  0xa3   :  { %v4286_v45 = vld [vmem:[#allocation5 + $0x20] sm:$0xf0]  ;;  %v4833_v53 = vor.u32 %v6410_v43, %v4830_v44 }
  0xa4   :  { %3269 = vmatpush.bf16.msra.mxu2 %v5185_v11  ;;  %3244 = vmatpush.bf16.msra.mxu0 %v4641_v20  ;;  %v6474_v46 = vld [vmem:[#allocation5 + $0x644] sm:$0xf]  ;;  %v4289_v57 = vor.u32 %v6274_v34, %v4286_v45 }
  0xa5   :  { %v5086_v47 = vld [vmem:[#allocation5 + $0x660] sm:$0xf0] }
  0xa6   :  { %3257 = vmatpush.bf16.msra.mxu1 %v4897_v21  ;;  %3232 = vmatpush.bf16.msra.mxu3 %v4353_v24  ;;  %v6586_v48 = vld [vmem:[#allocation5 + $0x9c4] sm:$0xf]  ;;  %v5089_v58 = vor.u32 %v6474_v46, %v5086_v47  ;;  %v3103_v21 = vsel %vm3098_vm0, %v2591_v8, 0 }
  0xa7   :  { %v5534_v49 = vld [vmem:[#allocation5 + $0x9e0] sm:$0xf0] }
  0xa8   :  { %3270 = vmatpush.bf16.msra.mxu2 %v5153_v25  ;;  %3245 = vmatpush.bf16.msra.mxu0 %v4609_v32  ;;  %v6338_v54 = vld [vmem:[#allocation5 + $0x204] sm:$0xf]  ;;  %v5537_v62 = vor.u32 %v6586_v48, %v5534_v49 }
  0xa9   :  { %v4542_v55 = vld [vmem:[#allocation5 + $0x220] sm:$0xf0] }
  0xaa   :  { %3258 = vmatpush.bf16.msra.mxu1 %v4865_v33  ;;  %v6402_v56 = vld [vmem:[#allocation5 + $0x404] sm:$0xf]  ;;  %3233 = vmatpush.bf16.msra.mxu3 %v4321_v37  ;;  %v4545_v5 = vor.u32 %v6338_v54, %v4542_v55 }
  0xab   :  { %v4798_v59 = vld [vmem:[#allocation5 + $0x420] sm:$0xf0] }
  0xac   :  { %3271 = vmatpush.bf16.msra.mxu2 %v5121_v38  ;;  %v6466_v60 = vld [vmem:[#allocation5 + $0x604] sm:$0xf]  ;;  %3246 = vmatpush.bf16.msra.mxu0 %v4577_v52  ;;  %v4801_v7 = vor.u32 %v6402_v56, %v4798_v59 }
  0xad   :  { %v5054_v61 = vld [vmem:[#allocation5 + $0x620] sm:$0xf0] }
  0xae   :  { %v6578_v63 = vld [vmem:[#allocation5 + $0x984] sm:$0xf]  ;;  %3259 = vmatpush.bf16.msra.mxu1 %v4833_v53  ;;  %3234 = vmatpush.bf16.msra.mxu3 %v4289_v57  ;;  %v5057_v9 = vor.u32 %v6466_v60, %v5054_v61 }
  0xaf   :  { %v6650_v0 = vld [vmem:[#allocation5 + $0xbc4] sm:$0xf] }
  0xb0   :  { %v5790_v1 = vld [vmem:[#allocation5 + $0xbe0] sm:$0xf0]  ;;  %3272 = vmatpush.bf16.msra.mxu2 %v5089_v58  ;;  %3247 = vmatpush.bf16.msra.mxu0 %v4545_v5 }
  0xb1   :  { %v5502_v3 = vld [vmem:[#allocation5 + $0x9a0] sm:$0xf0]  ;;  %v5793_v10 = vor.u32 %v6650_v0, %v5790_v1  ;;  %3235 = vmatmul.bf16.vlgmr.msra.gmra.mxu3 %v6960_v2 }
  0xb2   :  { %v6714_v19 = vld [vmem:[#allocation5 + $0xdc4] sm:$0xf]  ;;  %3279 = vmatpush.bf16.msrb.mxu3 %v5537_v62  ;;  %v5505_v11 = vor.u32 %v6578_v63, %v5502_v3  ;;  %3260 = vmatpush.bf16.msra.mxu1 %v4801_v7 }
  0xb3   :  { %v6046_v4 = vld [vmem:[#allocation5 + $0xde0] sm:$0xf0]  ;;  %3248 = vmatmul.bf16.vlgmr.msra.gmra.mxu0 %v6965_v18 }
  0xb4   :  { %v6049_v12 = vor.u32 %v6714_v19, %v6046_v4  ;;  %v6570_v13 = vld [vmem:[#allocation5 + $0x944] sm:$0xf]  ;;  %3273 = vmatpush.bf16.msra.mxu2 %v5057_v9  ;;  %3292 = vmatpush.bf16.msrb.mxu0 %v5793_v10 }
  0xb5   :  { %v6642_v14 = vld [vmem:[#allocation5 + $0xb84] sm:$0xf]  ;;  %3261 = vmatmul.bf16.vlgmr.msra.gmra.mxu1 %v6956_v51 }
  0xb6   :  { %v5758_v15 = vld [vmem:[#allocation5 + $0xba0] sm:$0xf0]  ;;  %3280 = vmatpush.bf16.msrb.mxu3 %v5505_v11  ;;  %3305 = vmatpush.bf16.msrb.mxu1 %v6049_v12 }
  0xb7   :  { %v5470_v16 = vld [vmem:[#allocation5 + $0x960] sm:$0xf0]  ;;  %v5761_v24 = vor.u32 %v6642_v14, %v5758_v15  ;;  %3274 = vmatmul.bf16.vlgmr.msra.gmra.mxu2 %v6962_v6 }
  0xb8   :  { %v6706_v17 = vld [vmem:[#allocation5 + $0xd84] sm:$0xf]  ;;  %v5473_v25 = vor.u32 %v6570_v13, %v5470_v16  ;;  %3319 = vmatpush.bf16.msrb.mxu2 %v3103_v21 }
  0xb9   :  { %v6014_v20 = vld [vmem:[#allocation5 + $0xda0] sm:$0xf0]  ;;  %3293 = vmatpush.bf16.msrb.mxu0 %v5761_v24 }
  0xba   :  { %v6762_v22 = vld [vmem:[#allocation5 + $0xf44] sm:$0xf]  ;;  %v6017_v26 = vor.u32 %v6706_v17, %v6014_v20  ;;  %3281 = vmatpush.bf16.msrb.mxu3 %v5473_v25 }
  0xbb   :  { %v6238_v23 = vld [vmem:[#allocation5 + $0xf60] sm:$0xf0] }
  0xbc   :  { %v6562_v27 = vld [vmem:[#allocation5 + $0x904] sm:$0xf]  ;;  %v6241_v30 = vor.u32 %v6762_v22, %v6238_v23  ;;  %3306 = vmatpush.bf16.msrb.mxu1 %v6017_v26 }
  0xbd   :  { %v6634_v28 = vld [vmem:[#allocation5 + $0xb44] sm:$0xf] }
  0xbe   :  { %v5726_v29 = vld [vmem:[#allocation5 + $0xb60] sm:$0xf0]  ;;  %3320 = vmatpush.bf16.msrb.mxu2 %v6241_v30 }
  0xbf   :  { %v5438_v31 = vld [vmem:[#allocation5 + $0x920] sm:$0xf0]  ;;  %v5729_v37 = vor.u32 %v6634_v28, %v5726_v29  ;;  %v4772_v28 = vld [vmem:[#allocation5 + $0x3c8] sm:$0xf] }
  0xc0   :  { %v6698_v32 = vld [vmem:[#allocation5 + $0xd44] sm:$0xf]  ;;  %v5441_v38 = vor.u32 %v6562_v27, %v5438_v31  ;;  %v6399_v29 = vld [vmem:[#allocation5 + $0x3e4] sm:$0xf0] }
  0xc1   :  { %v5982_v33 = vld [vmem:[#allocation5 + $0xd60] sm:$0xf0]  ;;  %3294 = vmatpush.bf16.msrb.mxu0 %v5729_v37  ;;  %v4516_v31 = vld [vmem:[#allocation5 + $0x1c8] sm:$0xf] }
  0xc2   :  { %v6754_v34 = vld [vmem:[#allocation5 + $0xf04] sm:$0xf]  ;;  %v5985_v39 = vor.u32 %v6698_v32, %v5982_v33  ;;  %3282 = vmatpush.bf16.msrb.mxu3 %v5441_v38  ;;  %v6335_v32 = vld [vmem:[#allocation5 + $0x1e4] sm:$0xf0] }
  0xc3   :  { %v6206_v35 = vld [vmem:[#allocation5 + $0xf20] sm:$0xf0] }
  0xc4   :  { %v6554_v43 = vld [vmem:[#allocation5 + $0x8c4] sm:$0xf]  ;;  %v6209_v46 = vor.u32 %v6754_v34, %v6206_v35  ;;  %3307 = vmatpush.bf16.msrb.mxu1 %v5985_v39 }
  0xc5   :  { %v6626_v44 = vld [vmem:[#allocation5 + $0xb04] sm:$0xf] }
  0xc6   :  { %v5694_v45 = vld [vmem:[#allocation5 + $0xb20] sm:$0xf0]  ;;  %3321 = vmatpush.bf16.msrb.mxu2 %v6209_v46  ;;  %v5028_v46 = vld [vmem:[#allocation5 + $0x5c8] sm:$0xf] }
  0xc7   :  { %v5406_v47 = vld [vmem:[#allocation5 + $0x8e0] sm:$0xf0]  ;;  %v5697_v53 = vor.u32 %v6626_v44, %v5694_v45  ;;  %v4773_v44 = vor.u32 %v6399_v29, %v4772_v28  ;;  %v4740_v45 = vld [vmem:[#allocation5 + $0x388] sm:$0xf] }
  0xc8   :  { %v6690_v48 = vld [vmem:[#allocation5 + $0xd04] sm:$0xf]  ;;  %v5409_v54 = vor.u32 %v6554_v43, %v5406_v47  ;;  %v6463_v47 = vld [vmem:[#allocation5 + $0x5e4] sm:$0xf0] }
  0xc9   :  { %v5950_v49 = vld [vmem:[#allocation5 + $0xd20] sm:$0xf0]  ;;  %3295 = vmatpush.bf16.msrb.mxu0 %v5697_v53  ;;  %v5188_v28 = vld [vmem:[#allocation5 + $0x708] sm:$0xf] }
  0xca   :  { %v6746_v50 = vld [vmem:[#allocation5 + $0xec4] sm:$0xf]  ;;  %v5953_v55 = vor.u32 %v6690_v48, %v5950_v49  ;;  %3283 = vmatpush.bf16.msrb.mxu3 %v5409_v54  ;;  %v4517_v48 = vor.u32 %v6335_v32, %v4516_v31  ;;  %v6391_v49 = vld [vmem:[#allocation5 + $0x3a4] sm:$0xf0] }
  0xcb   :  { %v6174_v52 = vld [vmem:[#allocation5 + $0xee0] sm:$0xf0]  ;;  %v4484_v54 = vld [vmem:[#allocation5 + $0x188] sm:$0xf] }
  0xcc   :  { %v6546_v56 = vld [vmem:[#allocation5 + $0x884] sm:$0xf]  ;;  %v6177_v59 = vor.u32 %v6746_v50, %v6174_v52  ;;  %3308 = vmatpush.bf16.msrb.mxu1 %v5953_v55  ;;  %v5284_v50 = vld [vmem:[#allocation5 + $0x7c8] sm:$0xf] }
  0xcd   :  { %v6618_v57 = vld [vmem:[#allocation5 + $0xac4] sm:$0xf]  ;;  %v6527_v52 = vld [vmem:[#allocation5 + $0x7e4] sm:$0xf0] }
  0xce   :  { %v5662_v58 = vld [vmem:[#allocation5 + $0xae0] sm:$0xf0]  ;;  %3322 = vmatpush.bf16.msrb.mxu2 %v6177_v59  ;;  %v6327_v55 = vld [vmem:[#allocation5 + $0x1a4] sm:$0xf0]  ;;  %v5285_v59 = vor.u32 %v6527_v52, %v5284_v50 }
  0xcf   :  { %v5374_v60 = vld [vmem:[#allocation5 + $0x8a0] sm:$0xf0]  ;;  %v5665_v1 = vor.u32 %v6618_v57, %v5662_v58  ;;  %v5029_v57 = vor.u32 %v6463_v47, %v5028_v46  ;;  %v4741_v58 = vor.u32 %v6391_v49, %v4740_v45  ;;  %v6503_v29 = vld [vmem:[#allocation5 + $0x724] sm:$0xf0] }
  0xd0   :  { %v6682_v61 = vld [vmem:[#allocation5 + $0xcc4] sm:$0xf]  ;;  %v5377_v3 = vor.u32 %v6546_v56, %v5374_v60  ;;  %v4708_v60 = vld [vmem:[#allocation5 + $0x348] sm:$0xf] }
  0xd1   :  { %v5918_v62 = vld [vmem:[#allocation5 + $0xce0] sm:$0xf0]  ;;  %3296 = vmatpush.bf16.msrb.mxu0 %v5665_v1  ;;  %v5252_v1 = vld [vmem:[#allocation5 + $0x788] sm:$0xf] }
  0xd2   :  { %v6738_v63 = vld [vmem:[#allocation5 + $0xe84] sm:$0xf]  ;;  %v5921_v19 = vor.u32 %v6682_v61, %v5918_v62  ;;  %3284 = vmatpush.bf16.msrb.mxu3 %v5377_v3  ;;  %v4996_v61 = vld [vmem:[#allocation5 + $0x588] sm:$0xf] }
  0xd3   :  { %v6142_v0 = vld [vmem:[#allocation5 + $0xea0] sm:$0xf0]  ;;  %v6455_v62 = vld [vmem:[#allocation5 + $0x5a4] sm:$0xf0] }
  0xd4   :  { %v6538_v4 = vld [vmem:[#allocation5 + $0x844] sm:$0xf]  ;;  %v6145_v8 = vor.u32 %v6738_v63, %v6142_v0  ;;  %3309 = vmatpush.bf16.msrb.mxu1 %v5921_v19  ;;  %v4485_v63 = vor.u32 %v6327_v55, %v4484_v54  ;;  %v6383_v0 = vld [vmem:[#allocation5 + $0x364] sm:$0xf0] }
  0xd5   :  { %v6610_v5 = vld [vmem:[#allocation5 + $0xa84] sm:$0xf]  ;;  %v6519_v3 = vld [vmem:[#allocation5 + $0x7a4] sm:$0xf0] }
  0xd6   :  { %v5630_v7 = vld [vmem:[#allocation5 + $0xaa0] sm:$0xf0]  ;;  %3323 = vmatpush.bf16.msrb.mxu2 %v6145_v8  ;;  %v4452_v19 = vld [vmem:[#allocation5 + $0x148] sm:$0xf]  ;;  %v5253_v8 = vor.u32 %v6519_v3, %v5252_v1 }
  0xd7   :  { %v5342_v9 = vld [vmem:[#allocation5 + $0x860] sm:$0xf0]  ;;  %v5633_v14 = vor.u32 %v6610_v5, %v5630_v7  ;;  %v4997_v5 = vor.u32 %v6455_v62, %v4996_v61  ;;  %v4709_v7 = vor.u32 %v6383_v0, %v4708_v60  ;;  %v6303_v31 = vld [vmem:[#allocation5 + $0xe4] sm:$0xf0] }
  0xd8   :  { %v6674_v10 = vld [vmem:[#allocation5 + $0xc84] sm:$0xf]  ;;  %v5345_v16 = vor.u32 %v6538_v4, %v5342_v9  ;;  %v6319_v4 = vld [vmem:[#allocation5 + $0x164] sm:$0xf0] }
  0xd9   :  { %v5886_v11 = vld [vmem:[#allocation5 + $0xca0] sm:$0xf0]  ;;  %3297 = vmatpush.bf16.msrb.mxu0 %v5633_v14  ;;  %v4676_v9 = vld [vmem:[#allocation5 + $0x308] sm:$0xf] }
  0xda   :  { %v6730_v12 = vld [vmem:[#allocation5 + $0xe44] sm:$0xf]  ;;  %v5889_v17 = vor.u32 %v6674_v10, %v5886_v11  ;;  %3285 = vmatpush.bf16.msrb.mxu3 %v5345_v16  ;;  %v4964_v10 = vld [vmem:[#allocation5 + $0x548] sm:$0xf] }
  0xdb   :  { %v6110_v13 = vld [vmem:[#allocation5 + $0xe60] sm:$0xf0]  ;;  %v6447_v11 = vld [vmem:[#allocation5 + $0x564] sm:$0xf0] }
  0xdc   :  { %v6530_v15 = vld [vmem:[#allocation5 + $0x804] sm:$0xf]  ;;  %v6113_v23 = vor.u32 %v6730_v12, %v6110_v13  ;;  %3310 = vmatpush.bf16.msrb.mxu1 %v5889_v17  ;;  %v4453_v12 = vor.u32 %v6319_v4, %v4452_v19  ;;  %v6375_v13 = vld [vmem:[#allocation5 + $0x324] sm:$0xf0] }
  0xdd   :  { %v5310_v20 = vld [vmem:[#allocation5 + $0x820] sm:$0xf0]  ;;  %v5220_v14 = vld [vmem:[#allocation5 + $0x748] sm:$0xf] }
  0xde   :  { %v6602_v21 = vld [vmem:[#allocation5 + $0xa44] sm:$0xf]  ;;  %v5313_v34 = vor.u32 %v6530_v15, %v5310_v20  ;;  %3324 = vmatpush.bf16.msrb.mxu2 %v6113_v23  ;;  %v6511_v15 = vld [vmem:[#allocation5 + $0x764] sm:$0xf0]  ;;  %v4965_v20 = vor.u32 %v6447_v11, %v4964_v10 }
  0xdf   :  { %v5598_v22 = vld [vmem:[#allocation5 + $0xa60] sm:$0xf0]  ;;  %v4420_v16 = vld [vmem:[#allocation5 + $0x108] sm:$0xf] }
  0xe0   :  { %v6666_v24 = vld [vmem:[#allocation5 + $0xc44] sm:$0xf]  ;;  %v5601_v30 = vor.u32 %v6602_v21, %v5598_v22  ;;  %3286 = vmatpush.bf16.msrb.mxu3 %v5313_v34  ;;  %v6311_v17 = vld [vmem:[#allocation5 + $0x124] sm:$0xf0]  ;;  %v4677_v21 = vor.u32 %v6375_v13, %v4676_v9  ;;  %v5221_v22 = vor.u32 %v6511_v15, %v5220_v14  ;;  %v5189_v34 = vor.u32 %v6503_v29, %v5188_v28 }
  0xe1   :  { %v5854_v25 = vld [vmem:[#allocation5 + $0xc60] sm:$0xf0]  ;;  %v4644_v23 = vld [vmem:[#allocation5 + $0x2c8] sm:$0xf] }
  0xe2   :  { %v6722_v26 = vld [vmem:[#allocation5 + $0xe04] sm:$0xf]  ;;  %v5857_v35 = vor.u32 %v6666_v24, %v5854_v25  ;;  %3298 = vmatpush.bf16.msrb.mxu0 %v5601_v30  ;;  %v4932_v24 = vld [vmem:[#allocation5 + $0x508] sm:$0xf] }
  0xe3   :  { %v6078_v27 = vld [vmem:[#allocation5 + $0xe20] sm:$0xf0]  ;;  %3287 = vmatmul.bf16.vlgmr.msrb.gmra.mxu3 %v6971_v40  ;;  %v6439_v25 = vld [vmem:[#allocation5 + $0x524] sm:$0xf0] }
  0xe4   :  { %v6594_v33 = vld [vmem:[#allocation5 + $0xa04] sm:$0xf]  ;;  %v6081_v43 = vor.u32 %v6722_v26, %v6078_v27  ;;  %3311 = vmatpush.bf16.msrb.mxu1 %v5857_v35  ;;  %3344 = vmatpush.bf16.msra.mxu3 %v4773_v44  ;;  %v4421_v26 = vor.u32 %v6311_v17, %v4420_v16  ;;  %v6367_v27 = vld [vmem:[#allocation5 + $0x2e4] sm:$0xf0]  ;;  %v4933_v32 = vor.u32 %v6439_v25, %v4932_v24 }
  0xe5   :  { %v5566_v37 = vld [vmem:[#allocation5 + $0xa20] sm:$0xf0]  ;;  %v4388_v30 = vld [vmem:[#allocation5 + $0xc8] sm:$0xf] }
  0xe6   :  { %v6658_v38 = vld [vmem:[#allocation5 + $0xc04] sm:$0xf]  ;;  %v5569_v53 = vor.u32 %v6594_v33, %v5566_v37  ;;  %3325 = vmatpush.bf16.msrb.mxu2 %v6081_v43  ;;  %v4645_v33 = vor.u32 %v6367_v27, %v4644_v23  ;;  %v4612_v35 = vld [vmem:[#allocation5 + $0x288] sm:$0xf] }
  0xe7   :  { %v5822_v39 = vld [vmem:[#allocation5 + $0xc20] sm:$0xf0]  ;;  %v4900_v37 = vld [vmem:[#allocation5 + $0x4c8] sm:$0xf] }
  0xe8   :  { %v5825_v56 = vor.u32 %v6658_v38, %v5822_v39  ;;  %3299 = vmatpush.bf16.msrb.mxu0 %v5569_v53  ;;  %3345 = vmatpush.bf16.msra.mxu3 %v4741_v58  ;;  %v6431_v38 = vld [vmem:[#allocation5 + $0x4e4] sm:$0xf0]  ;;  %v4389_v39 = vor.u32 %v6303_v31, %v4388_v30 }
  0xe9   :  { %6267 = vmatmul.msk.bf16.vlgmr.msrb.gmra.mxu2 %vm3094_vm1, %v6973_v41  ;;  %v6359_v43 = vld [vmem:[#allocation5 + $0x2a4] sm:$0xf0] }
  0xea   :  { %3331 = vmatpush.bf16.msra.mxu2 %v4517_v48  ;;  %3312 = vmatpush.bf16.msrb.mxu1 %v5825_v56  ;;  %v5156_v44 = vld [vmem:[#allocation5 + $0x6c8] sm:$0xf]  ;;  %v4901_v48 = vor.u32 %v6431_v38, %v4900_v37  ;;  %v4613_v50 = vor.u32 %v6359_v43, %v4612_v35 }
  0xeb   :  { %3300 = vmatmul.bf16.vlgmr.msrb.gmra.mxu0 %v6975_v42  ;;  %v6495_v45 = vld [vmem:[#allocation5 + $0x6e4] sm:$0xf0] }
  0xec   :  { %3357 = vmatpush.bf16.msra.mxu0 %v5029_v57  ;;  %3346 = vmatpush.bf16.msra.mxu3 %v4709_v7  ;;  %v4356_v46 = vld [vmem:[#allocation5 + $0x88] sm:$0xf]  ;;  %v5157_v52 = vor.u32 %v6495_v45, %v5156_v44 }
  0xed   :  { %3313 = vmatmul.bf16.vlgmr.msrb.gmra.mxu1 %v6969_v36  ;;  %v6295_v47 = vld [vmem:[#allocation5 + $0xa4] sm:$0xf0] }
  0xee   :  { %3370 = vmatpush.bf16.msra.mxu1 %v5285_v59  ;;  %3332 = vmatpush.bf16.msra.mxu2 %v4485_v63  ;;  %v4580_v49 = vld [vmem:[#allocation5 + $0x248] sm:$0xf]  ;;  %v4357_v56 = vor.u32 %v6295_v47, %v4356_v46 }
  0xef   :  { %v6351_v53 = vld [vmem:[#allocation5 + $0x264] sm:$0xf0] }
  0xf0   :  { %3358 = vmatpush.bf16.msra.mxu0 %v4997_v5  ;;  %3347 = vmatpush.bf16.msra.mxu3 %v4677_v21  ;;  %v4868_v54 = vld [vmem:[#allocation5 + $0x488] sm:$0xf]  ;;  %v4581_v63 = vor.u32 %v6351_v53, %v4580_v49 }
  0xf1   :  { %v6423_v55 = vld [vmem:[#allocation5 + $0x4a4] sm:$0xf0] }
  0xf2   :  { %3371 = vmatpush.bf16.msra.mxu1 %v5253_v8  ;;  %3333 = vmatpush.bf16.msra.mxu2 %v4453_v12  ;;  %v5124_v57 = vld [vmem:[#allocation5 + $0x688] sm:$0xf]  ;;  %v4869_v62 = vor.u32 %v6423_v55, %v4868_v54 }
  0xf3   :  { %v6487_v58 = vld [vmem:[#allocation5 + $0x6a4] sm:$0xf0] }
  0xf4   :  { %3359 = vmatpush.bf16.msra.mxu0 %v4965_v20  ;;  %3348 = vmatpush.bf16.msra.mxu3 %v4645_v33  ;;  %v6993_v59 = vld [vmem:[#allocation5 + $0xf88] sm:$0xff]  ;;  %v5125_v0 = vor.u32 %v6487_v58, %v5124_v57 }
  0xf5   :  { %v4324_v60 = vld [vmem:[#allocation5 + $0x48] sm:$0xf]  ;;  %v2088_v5 = vunpack.c.l.b16 %v6993_v59 }
  0xf6   :  { %3372 = vmatpush.bf16.msra.mxu1 %v5221_v22  ;;  %3334 = vmatpush.bf16.msra.mxu2 %v4421_v26  ;;  %v6287_v61 = vld [vmem:[#allocation5 + $0x64] sm:$0xf0] }
  0xf7   :  { %v4292_v1 = vld [vmem:[#allocation5 + $0x8] sm:$0xf]  ;;  %v4325_v7 = vor.u32 %v6287_v61, %v4324_v60  ;;  %v2592_v24 = vpack.c.b16 %v2088_v5, %v2088_v5 }
  0xf8   :  { %3360 = vmatpush.bf16.msra.mxu0 %v4933_v32  ;;  %3349 = vmatpush.bf16.msra.mxu3 %v4613_v50  ;;  %v4548_v3 = vld [vmem:[#allocation5 + $0x208] sm:$0xf] }
  0xf9   :  { %v4836_v19 = vld [vmem:[#allocation5 + $0x448] sm:$0xf] }
  0xfa   :  { %3373 = vmatpush.bf16.msra.mxu1 %v5189_v34  ;;  %3335 = vmatpush.bf16.msra.mxu2 %v4389_v39  ;;  %v6415_v4 = vld [vmem:[#allocation5 + $0x464] sm:$0xf0]  ;;  %v3106_v39 = vsel %vm3098_vm0, %v2592_v24, 0 }
  0xfb   :  { %v6343_v8 = vld [vmem:[#allocation5 + $0x224] sm:$0xf0]  ;;  %v4837_v14 = vor.u32 %v6415_v4, %v4836_v19 }
  0xfc   :  { %3361 = vmatpush.bf16.msra.mxu0 %v4901_v48  ;;  %v5092_v9 = vld [vmem:[#allocation5 + $0x648] sm:$0xf]  ;;  %3350 = vmatpush.bf16.msra.mxu3 %v4581_v63  ;;  %v4549_v17 = vor.u32 %v6343_v8, %v4548_v3 }
  0xfd   :  { %v6479_v10 = vld [vmem:[#allocation5 + $0x664] sm:$0xf0] }
  0xfe   :  { %3374 = vmatpush.bf16.msra.mxu1 %v5157_v52  ;;  %3336 = vmatpush.bf16.msra.mxu2 %v4357_v56  ;;  %v6279_v11 = vld [vmem:[#allocation5 + $0x24] sm:$0xf0]  ;;  %v5093_v20 = vor.u32 %v6479_v10, %v5092_v9 }
  0xff   :  { %v5796_v12 = vld [vmem:[#allocation5 + $0xbc8] sm:$0xf]  ;;  %v4293_v25 = vor.u32 %v6279_v11, %v4292_v1 }
 0x100   :  { %v6655_v13 = vld [vmem:[#allocation5 + $0xbe4] sm:$0xf0]  ;;  %3362 = vmatpush.bf16.msra.mxu0 %v4869_v62  ;;  %3351 = vmatpush.bf16.msra.mxu3 %v4549_v17 }
 0x101   :  { %v5540_v15 = vld [vmem:[#allocation5 + $0x9c8] sm:$0xf]  ;;  %v5797_v26 = vor.u32 %v6655_v13, %v5796_v12 }
 0x102   :  { %v6591_v16 = vld [vmem:[#allocation5 + $0x9e4] sm:$0xf0]  ;;  %3375 = vmatpush.bf16.msra.mxu1 %v5125_v0  ;;  %3337 = vmatpush.bf16.msra.mxu2 %v4325_v7 }
 0x103   :  { %v4804_v21 = vld [vmem:[#allocation5 + $0x408] sm:$0xf]  ;;  %v5541_v30 = vor.u32 %v6591_v16, %v5540_v15  ;;  %3352 = vmatmul.bf16.vlgmr.msra.gmra.mxu3 %v6965_v18 }
 0x104   :  { %v6407_v22 = vld [vmem:[#allocation5 + $0x424] sm:$0xf0]  ;;  %3363 = vmatpush.bf16.msra.mxu0 %v4837_v14  ;;  %3396 = vmatpush.bf16.msrb.mxu3 %v5797_v26 }
 0x105   :  { %v5060_v23 = vld [vmem:[#allocation5 + $0x608] sm:$0xf]  ;;  %v4805_v33 = vor.u32 %v6407_v22, %v4804_v21 }
 0x106   :  { %v6471_v27 = vld [vmem:[#allocation5 + $0x624] sm:$0xf0]  ;;  %3376 = vmatpush.bf16.msra.mxu1 %v5093_v20  ;;  %3338 = vmatpush.bf16.msra.mxu2 %v4293_v25 }
 0x107   :  { %v6052_v28 = vld [vmem:[#allocation5 + $0xdc8] sm:$0xf]  ;;  %v5061_v37 = vor.u32 %v6471_v27, %v5060_v23 }
 0x108   :  { %v6719_v29 = vld [vmem:[#allocation5 + $0xde4] sm:$0xf0]  ;;  %3364 = vmatpush.bf16.msra.mxu0 %v4805_v33 }
 0x109   :  { %v5764_v31 = vld [vmem:[#allocation5 + $0xb88] sm:$0xf]  ;;  %v6053_v38 = vor.u32 %v6719_v29, %v6052_v28  ;;  %3339 = vmatmul.bf16.vlgmr.msra.gmra.mxu2 %v6960_v2 }
 0x10a   :  { %v6647_v32 = vld [vmem:[#allocation5 + $0xba4] sm:$0xf0]  ;;  %3383 = vmatpush.bf16.msrb.mxu2 %v5541_v30  ;;  %3377 = vmatpush.bf16.msra.mxu1 %v5061_v37 }
 0x10b   :  { %v5508_v34 = vld [vmem:[#allocation5 + $0x988] sm:$0xf]  ;;  %v5765_v43 = vor.u32 %v6647_v32, %v5764_v31  ;;  %3365 = vmatmul.bf16.vlgmr.msra.gmra.mxu0 %v6956_v51 }
 0x10c   :  { %v6583_v35 = vld [vmem:[#allocation5 + $0x9a4] sm:$0xf0]  ;;  %3409 = vmatpush.bf16.msrb.mxu0 %v6053_v38 }
 0x10d   :  { %v5732_v44 = vld [vmem:[#allocation5 + $0xb48] sm:$0xf]  ;;  %v5509_v47 = vor.u32 %v6583_v35, %v5508_v34  ;;  %3397 = vmatpush.bf16.msrb.mxu3 %v5765_v43  ;;  %3378 = vmatmul.bf16.vlgmr.msra.gmra.mxu1 %v6962_v6 }
 0x10e   :  { %v6020_v45 = vld [vmem:[#allocation5 + $0xd88] sm:$0xf]  ;;  %3423 = vmatpush.bf16.msrb.mxu1 %v3106_v39 }
 0x10f   :  { %v6711_v46 = vld [vmem:[#allocation5 + $0xda4] sm:$0xf0]  ;;  %3384 = vmatpush.bf16.msrb.mxu2 %v5509_v47 }
 0x110   :  { %v6639_v48 = vld [vmem:[#allocation5 + $0xb64] sm:$0xf0]  ;;  %v6021_v54 = vor.u32 %v6711_v46, %v6020_v45 }
 0x111   :  { %v6244_v49 = vld [vmem:[#allocation5 + $0xf48] sm:$0xf]  ;;  %v5733_v55 = vor.u32 %v6639_v48, %v5732_v44  ;;  %v3132_v44 = vpop.f32.mrf.mxu0  ;;  %v3145_v48 = vpop.f32.mrf.mxu1 }
 0x112   :  { %v6767_v50 = vld [vmem:[#allocation5 + $0xf64] sm:$0xf0]  ;;  %3410 = vmatpush.bf16.msrb.mxu0 %v6021_v54 }
 0x113   :  { %v5476_v52 = vld [vmem:[#allocation5 + $0x948] sm:$0xf]  ;;  %v6245_v56 = vor.u32 %v6767_v50, %v6244_v49  ;;  %3398 = vmatpush.bf16.msrb.mxu3 %v5733_v55  ;;  %v3158_v49 = vpop.f32.mrf.mxu2 }
 0x114   :  { %v6575_v53 = vld [vmem:[#allocation5 + $0x964] sm:$0xf0] }
 0x115   :  { %v5700_v57 = vld [vmem:[#allocation5 + $0xb08] sm:$0xf]  ;;  %v5477_v61 = vor.u32 %v6575_v53, %v5476_v52  ;;  %3424 = vmatpush.bf16.msrb.mxu1 %v6245_v56 }
 0x116   :  { %v5988_v58 = vld [vmem:[#allocation5 + $0xd48] sm:$0xf] }
 0x117   :  { %v6703_v60 = vld [vmem:[#allocation5 + $0xd64] sm:$0xf0]  ;;  %3385 = vmatpush.bf16.msrb.mxu2 %v5477_v61 }
 0x118   :  { %v6631_v62 = vld [vmem:[#allocation5 + $0xb24] sm:$0xf0]  ;;  %v5989_v19 = vor.u32 %v6703_v60, %v5988_v58  ;;  %v3146_v58 = vadd.f32 %v3145_v48, %v3132_v44  ;;  %v4454_v44 = vld [vmem:[#allocation5 + $0x168] sm:$0xf0] }
 0x119   :  { %v6212_v63 = vld [vmem:[#allocation5 + $0xf08] sm:$0xf]  ;;  %v5701_v4 = vor.u32 %v6631_v62, %v5700_v57  ;;  %v4966_v48 = vld [vmem:[#allocation5 + $0x568] sm:$0xf0] }
 0x11a   :  { %v6759_v0 = vld [vmem:[#allocation5 + $0xf24] sm:$0xf0]  ;;  %3411 = vmatpush.bf16.msrb.mxu0 %v5989_v19  ;;  %v3159_v19 = vadd.f32 %v3158_v49, %v3146_v58  ;;  %v4422_v58 = vld [vmem:[#allocation5 + $0x128] sm:$0xf0] }
 0x11b   :  { %v5444_v1 = vld [vmem:[#allocation5 + $0x908] sm:$0xf]  ;;  %v6213_v5 = vor.u32 %v6759_v0, %v6212_v63  ;;  %3399 = vmatpush.bf16.msrb.mxu3 %v5701_v4  ;;  %v6331_v0 = vld [vmem:[#allocation5 + $0x1cc] sm:$0xf] }
 0x11c   :  { %v6567_v3 = vld [vmem:[#allocation5 + $0x924] sm:$0xf0] }
 0x11d   :  { %v5668_v7 = vld [vmem:[#allocation5 + $0xac8] sm:$0xf]  ;;  %v5445_v10 = vor.u32 %v6567_v3, %v5444_v1  ;;  %3425 = vmatpush.bf16.msrb.mxu1 %v6213_v5  ;;  %v4518_v1 = vld [vmem:[#allocation5 + $0x1e8] sm:$0xf0] }
 0x11e   :  { %v5956_v8 = vld [vmem:[#allocation5 + $0xd08] sm:$0xf]  ;;  %v6395_v3 = vld [vmem:[#allocation5 + $0x3cc] sm:$0xf] }
 0x11f   :  { %v6695_v9 = vld [vmem:[#allocation5 + $0xd24] sm:$0xf0]  ;;  %3386 = vmatpush.bf16.msrb.mxu2 %v5445_v10  ;;  %v4774_v5 = vld [vmem:[#allocation5 + $0x3e8] sm:$0xf0] }
 0x120   :  { %v6623_v11 = vld [vmem:[#allocation5 + $0xae4] sm:$0xf0]  ;;  %v5957_v16 = vor.u32 %v6695_v9, %v5956_v8  ;;  %v5030_v8 = vld [vmem:[#allocation5 + $0x5e8] sm:$0xf0] }
 0x121   :  { %v6180_v12 = vld [vmem:[#allocation5 + $0xec8] sm:$0xf]  ;;  %v5669_v17 = vor.u32 %v6623_v11, %v5668_v7  ;;  %v6459_v7 = vld [vmem:[#allocation5 + $0x5cc] sm:$0xf] }
 0x122   :  { %v6751_v13 = vld [vmem:[#allocation5 + $0xee4] sm:$0xf0]  ;;  %3412 = vmatpush.bf16.msrb.mxu0 %v5957_v16  ;;  %v6523_v16 = vld [vmem:[#allocation5 + $0x7cc] sm:$0xf] }
 0x123   :  { %v5412_v14 = vld [vmem:[#allocation5 + $0x8c8] sm:$0xf]  ;;  %v6181_v20 = vor.u32 %v6751_v13, %v6180_v12  ;;  %3400 = vmatpush.bf16.msrb.mxu3 %v5669_v17  ;;  %v3171_v13 = vpop.f32.mrf.mxu3  ;;  %v5286_v17 = vld [vmem:[#allocation5 + $0x7e8] sm:$0xf0] }
 0x124   :  { %v6559_v15 = vld [vmem:[#allocation5 + $0x8e4] sm:$0xf0] }
 0x125   :  { %v5636_v21 = vld [vmem:[#allocation5 + $0xa88] sm:$0xf]  ;;  %v5413_v24 = vor.u32 %v6559_v15, %v5412_v14  ;;  %3426 = vmatpush.bf16.msrb.mxu1 %v6181_v20  ;;  %v4521_v15 = vor.u32 %v6331_v0, %v4518_v1  ;;  %v7001_v20 = vadd.f32 %v3171_v13, %v3159_v19  ;;  %v5190_v19 = vld [vmem:[#allocation5 + $0x728] sm:$0xf0] }
 0x126   :  { %v5924_v22 = vld [vmem:[#allocation5 + $0xcc8] sm:$0xf] }
 0x127   :  { %v6687_v23 = vld [vmem:[#allocation5 + $0xce4] sm:$0xf0]  ;;  %3387 = vmatpush.bf16.msrb.mxu2 %v5413_v24  ;;  %v6323_v24 = vld [vmem:[#allocation5 + $0x18c] sm:$0xf] }
 0x128   :  { %v6615_v25 = vld [vmem:[#allocation5 + $0xaa4] sm:$0xf0]  ;;  %v5925_v30 = vor.u32 %v6687_v23, %v5924_v22  ;;  %v4777_v22 = vor.u32 %v6395_v3, %v4774_v5  ;;  %v5033_v23 = vor.u32 %v6459_v7, %v5030_v8  ;;  %v6499_v3 = vld [vmem:[#allocation5 + $0x70c] sm:$0xf] }
 0x129   :  { %v6148_v26 = vld [vmem:[#allocation5 + $0xe88] sm:$0xf]  ;;  %v5637_v31 = vor.u32 %v6615_v25, %v5636_v21  ;;  %v3134_v21 = vpop.f32.mrf.mxu0  ;;  %v4486_v25 = vld [vmem:[#allocation5 + $0x1a8] sm:$0xf0]  ;;  %v5193_v13 = vor.u32 %v6499_v3, %v5190_v19 }
 0x12a   :  { %v6743_v27 = vld [vmem:[#allocation5 + $0xea4] sm:$0xf0]  ;;  %3413 = vmatpush.bf16.msrb.mxu0 %v5925_v30  ;;  %v4998_v30 = vld [vmem:[#allocation5 + $0x5a8] sm:$0xf0] }
 0x12b   :  { %v5380_v28 = vld [vmem:[#allocation5 + $0x888] sm:$0xf]  ;;  %v6149_v32 = vor.u32 %v6743_v27, %v6148_v26  ;;  %3401 = vmatpush.bf16.msrb.mxu3 %v5637_v31  ;;  %v6387_v26 = vld [vmem:[#allocation5 + $0x38c] sm:$0xf]  ;;  %v3147_v31 = vpop.f32.mrf.mxu1 }
 0x12c   :  { %v6551_v29 = vld [vmem:[#allocation5 + $0x8a4] sm:$0xf0]  ;;  %v6299_v7 = vld [vmem:[#allocation5 + $0xcc] sm:$0xf] }
 0x12d   :  { %v5604_v33 = vld [vmem:[#allocation5 + $0xa48] sm:$0xf]  ;;  %v5381_v37 = vor.u32 %v6551_v29, %v5380_v28  ;;  %3427 = vmatpush.bf16.msrb.mxu1 %v6149_v32  ;;  %v4742_v28 = vld [vmem:[#allocation5 + $0x3a8] sm:$0xf0]  ;;  %v3160_v32 = vpop.f32.mrf.mxu2 }
 0x12e   :  { %v5892_v34 = vld [vmem:[#allocation5 + $0xc88] sm:$0xf]  ;;  %v6451_v29 = vld [vmem:[#allocation5 + $0x58c] sm:$0xf] }
 0x12f   :  { %v6679_v35 = vld [vmem:[#allocation5 + $0xca4] sm:$0xf0]  ;;  %3388 = vmatpush.bf16.msrb.mxu2 %v5381_v37  ;;  %v5254_v37 = vld [vmem:[#allocation5 + $0x7a8] sm:$0xf0] }
 0x130   :  { %v6607_v38 = vld [vmem:[#allocation5 + $0xa64] sm:$0xf0]  ;;  %v5893_v47 = vor.u32 %v6679_v35, %v5892_v34  ;;  %v4489_v34 = vor.u32 %v6323_v24, %v4486_v25  ;;  %v6515_v35 = vld [vmem:[#allocation5 + $0x78c] sm:$0xf] }
 0x131   :  { %v6116_v39 = vld [vmem:[#allocation5 + $0xe48] sm:$0xf]  ;;  %v5605_v50 = vor.u32 %v6607_v38, %v5604_v33  ;;  %v5289_v33 = vor.u32 %v6523_v16, %v5286_v17  ;;  %v4745_v38 = vor.u32 %v6387_v26, %v4742_v28  ;;  %v5257_v49 = vor.u32 %v6515_v35, %v5254_v37  ;;  %v4390_v8 = vld [vmem:[#allocation5 + $0xe8] sm:$0xf0]  ;;  %v3184_v25 = vpop.f32.mrf.mxu0 }
 0x132   :  { %v6735_v43 = vld [vmem:[#allocation5 + $0xe64] sm:$0xf0]  ;;  %3414 = vmatpush.bf16.msrb.mxu0 %v5893_v47  ;;  %v6443_v47 = vld [vmem:[#allocation5 + $0x54c] sm:$0xf] }
 0x133   :  { %v5348_v45 = vld [vmem:[#allocation5 + $0x848] sm:$0xf]  ;;  %v6117_v52 = vor.u32 %v6735_v43, %v6116_v39  ;;  %3402 = vmatpush.bf16.msrb.mxu3 %v5605_v50  ;;  %v5001_v39 = vor.u32 %v6451_v29, %v4998_v30  ;;  %v6315_v43 = vld [vmem:[#allocation5 + $0x14c] sm:$0xf]  ;;  %v3173_v50 = vpop.f32.mrf.mxu3  ;;  %v3185_v29 = vadd.f32 %v3184_v25, %v7001_v20  ;;  %v3197_v31 = vpop.f32.mrf.mxu1 }
 0x134   :  { %v6543_v46 = vld [vmem:[#allocation5 + $0x864] sm:$0xf0]  ;;  %v5158_v16 = vld [vmem:[#allocation5 + $0x6e8] sm:$0xf0] }
 0x135   :  { %v5316_v53 = vld [vmem:[#allocation5 + $0x808] sm:$0xf]  ;;  %v5349_v60 = vor.u32 %v6543_v46, %v5348_v45  ;;  %3428 = vmatpush.bf16.msrb.mxu1 %v6117_v52  ;;  %v6379_v45 = vld [vmem:[#allocation5 + $0x34c] sm:$0xf]  ;;  %v4457_v52 = vor.u32 %v6315_v43, %v4454_v44 }
 0x136   :  { %v6535_v54 = vld [vmem:[#allocation5 + $0x824] sm:$0xf0]  ;;  %v4710_v46 = vld [vmem:[#allocation5 + $0x368] sm:$0xf0] }
 0x137   :  { %v5572_v55 = vld [vmem:[#allocation5 + $0xa08] sm:$0xf]  ;;  %3389 = vmatpush.bf16.msrb.mxu2 %v5349_v60  ;;  %v5317_v14 = vor.u32 %v6535_v54, %v5316_v53  ;;  %v6507_v53 = vld [vmem:[#allocation5 + $0x74c] sm:$0xf] }
 0x138   :  { %v5860_v56 = vld [vmem:[#allocation5 + $0xc48] sm:$0xf]  ;;  %v5222_v54 = vld [vmem:[#allocation5 + $0x768] sm:$0xf0] }
 0x139   :  { %v6671_v57 = vld [vmem:[#allocation5 + $0xc64] sm:$0xf0]  ;;  %v6371_v60 = vld [vmem:[#allocation5 + $0x30c] sm:$0xf]  ;;  %v5225_v0 = vor.u32 %v6507_v53, %v5222_v54  ;;  %v3186_v19 = vpop.f32.mrf.mxu0 }
 0x13a   :  { %v6599_v61 = vld [vmem:[#allocation5 + $0xa24] sm:$0xf0]  ;;  %v5861_v4 = vor.u32 %v6671_v57, %v5860_v56  ;;  %v4969_v56 = vor.u32 %v6443_v47, %v4966_v48  ;;  %v6307_v57 = vld [vmem:[#allocation5 + $0x10c] sm:$0xf] }
 0x13b   :  { %v6084_v62 = vld [vmem:[#allocation5 + $0xe08] sm:$0xf]  ;;  %v5573_v9 = vor.u32 %v6599_v61, %v5572_v55  ;;  %3390 = vmatpush.bf16.msrb.mxu2 %v5317_v14  ;;  %v4713_v55 = vor.u32 %v6379_v45, %v4710_v46  ;;  %v4678_v61 = vld [vmem:[#allocation5 + $0x328] sm:$0xf0]  ;;  %v4425_v1 = vor.u32 %v6307_v57, %v4422_v58  ;;  %v4393_v14 = vor.u32 %v6299_v7, %v4390_v8  ;;  %v3223_v58 = vpop.f32.mrf.mxu3 }
 0x13c   :  { %v6727_v63 = vld [vmem:[#allocation5 + $0xe24] sm:$0xf0]  ;;  %3415 = vmatpush.bf16.msrb.mxu0 %v5861_v4  ;;  %v4681_v4 = vor.u32 %v6371_v60, %v4678_v61  ;;  %v6355_v24 = vld [vmem:[#allocation5 + $0x28c] sm:$0xf] }
 0x13d   :  { %v6085_v10 = vor.u32 %v6727_v63, %v6084_v62  ;;  %v5828_v11 = vld [vmem:[#allocation5 + $0xc08] sm:$0xf]  ;;  %3403 = vmatpush.bf16.msrb.mxu3 %v5573_v9  ;;  %v6435_v62 = vld [vmem:[#allocation5 + $0x50c] sm:$0xf] }
 0x13e   :  { %v6663_v12 = vld [vmem:[#allocation5 + $0xc24] sm:$0xf0]  ;;  %3391 = vmatmul.bf16.vlgmr.msrb.gmra.mxu2 %v6971_v40  ;;  %v4934_v63 = vld [vmem:[#allocation5 + $0x528] sm:$0xf0] }
 0x13f   :  { %v5829_v27 = vor.u32 %v6663_v12, %v5828_v11  ;;  %3429 = vmatpush.bf16.msrb.mxu1 %v6085_v10  ;;  %3448 = vmatpush.bf16.msra.mxu2 %v4777_v22  ;;  %v4937_v5 = vor.u32 %v6435_v62, %v4934_v63  ;;  %v6363_v9 = vld [vmem:[#allocation5 + $0x2cc] sm:$0xf]  ;;  %v2089_v63 = vunpack.c.h.b16 %v6993_v59 }
 0x140   :  { %3404 = vmatmul.bf16.vlgmr.msrb.gmra.mxu3 %v6975_v42  ;;  %v4646_v10 = vld [vmem:[#allocation5 + $0x2e8] sm:$0xf0] }
 0x141   :  { %3461 = vmatpush.bf16.msra.mxu3 %v5033_v23  ;;  %3416 = vmatpush.bf16.msrb.mxu0 %v5829_v27  ;;  %v6427_v11 = vld [vmem:[#allocation5 + $0x4cc] sm:$0xf]  ;;  %v4649_v17 = vor.u32 %v6363_v9, %v4646_v10  ;;  %v3199_v10 = vpop.f32.mrf.mxu1 }
 0x142   :  { %6268 = vmatmul.msk.bf16.vlgmr.msrb.gmra.mxu1 %vm3094_vm1, %v6973_v41  ;;  %v4902_v12 = vld [vmem:[#allocation5 + $0x4e8] sm:$0xf0] }
 0x143   :  { %3435 = vmatpush.bf16.msra.mxu1 %v4521_v15  ;;  %3449 = vmatpush.bf16.msra.mxu2 %v4745_v38  ;;  %v6491_v15 = vld [vmem:[#allocation5 + $0x6cc] sm:$0xf]  ;;  %v4905_v21 = vor.u32 %v6427_v11, %v4902_v12  ;;  %v3198_v38 = vadd.f32 %v3197_v31, %v3185_v29 }
 0x144   :  { %3417 = vmatmul.bf16.vlgmr.msrb.gmra.mxu0 %v6969_v36  ;;  %v6291_v22 = vld [vmem:[#allocation5 + $0x8c] sm:$0xf]  ;;  %v5161_v30 = vor.u32 %v6491_v15, %v5158_v16  ;;  %v2593_v16 = vpack.c.b16 %v2089_v63, %v2089_v63 }
 0x145   :  { %3474 = vmatpush.bf16.msra.mxu0 %v5289_v33  ;;  %3462 = vmatpush.bf16.msra.mxu3 %v5001_v39  ;;  %v4358_v23 = vld [vmem:[#allocation5 + $0xa8] sm:$0xf0] }
 0x146   :  { %v4614_v26 = vld [vmem:[#allocation5 + $0x2a8] sm:$0xf0]  ;;  %v4361_v32 = vor.u32 %v6291_v22, %v4358_v23  ;;  %v3109_v31 = vsel %vm3098_vm0, %v2593_v16, 0 }
 0x147   :  { %3436 = vmatpush.bf16.msra.mxu1 %v4489_v34  ;;  %3450 = vmatpush.bf16.msra.mxu2 %v4713_v55  ;;  %v6419_v27 = vld [vmem:[#allocation5 + $0x48c] sm:$0xf]  ;;  %v4617_v35 = vor.u32 %v6355_v24, %v4614_v26 }
 0x148   :  { %v4870_v28 = vld [vmem:[#allocation5 + $0x4a8] sm:$0xf0] }
 0x149   :  { %3475 = vmatpush.bf16.msra.mxu0 %v5257_v49  ;;  %3463 = vmatpush.bf16.msra.mxu3 %v4969_v56  ;;  %v6483_v33 = vld [vmem:[#allocation5 + $0x68c] sm:$0xf]  ;;  %v4873_v37 = vor.u32 %v6419_v27, %v4870_v28  ;;  %v3210_v49 = vpop.f32.mrf.mxu2 }
 0x14a   :  { %v5126_v34 = vld [vmem:[#allocation5 + $0x6a8] sm:$0xf0]  ;;  %v3211_v55 = vadd.f32 %v3210_v49, %v3198_v38 }
 0x14b   :  { %3437 = vmatpush.bf16.msra.mxu1 %v4457_v52  ;;  %3451 = vmatpush.bf16.msra.mxu2 %v4681_v4  ;;  %v6283_v39 = vld [vmem:[#allocation5 + $0x4c] sm:$0xf]  ;;  %v5129_v48 = vor.u32 %v6483_v33, %v5126_v34  ;;  %v3225_v34 = vpop.f32.mrf.mxu3 }
 0x14c   :  { %v4326_v43 = vld [vmem:[#allocation5 + $0x68] sm:$0xf0]  ;;  %v7010_v4 = vadd.f32 %v3223_v58, %v3211_v55 }
 0x14d   :  { %3476 = vmatpush.bf16.msra.mxu0 %v5225_v0  ;;  %3464 = vmatpush.bf16.msra.mxu3 %v4937_v5  ;;  %v6347_v44 = vld [vmem:[#allocation5 + $0x24c] sm:$0xf]  ;;  %v4329_v50 = vor.u32 %v6283_v39, %v4326_v43 }
 0x14e   :  { %v4582_v45 = vld [vmem:[#allocation5 + $0x268] sm:$0xf0] }
 0x14f   :  { %3438 = vmatpush.bf16.msra.mxu1 %v4425_v1  ;;  %3452 = vmatpush.bf16.msra.mxu2 %v4649_v17  ;;  %v6411_v46 = vld [vmem:[#allocation5 + $0x44c] sm:$0xf]  ;;  %v4585_v56 = vor.u32 %v6347_v44, %v4582_v45 }
 0x150   :  { %v4838_v47 = vld [vmem:[#allocation5 + $0x468] sm:$0xf0] }
 0x151   :  { %3477 = vmatpush.bf16.msra.mxu0 %v5193_v13  ;;  %3465 = vmatpush.bf16.msra.mxu3 %v4905_v21  ;;  %v6275_v20 = vld [vmem:[#allocation5 + $0xc] sm:$0xf]  ;;  %v4841_v57 = vor.u32 %v6411_v46, %v4838_v47 }
 0x152   :  { %v4294_v52 = vld [vmem:[#allocation5 + $0x28] sm:$0xf0] }
 0x153   :  { %3439 = vmatpush.bf16.msra.mxu1 %v4393_v14  ;;  %v6475_v53 = vld [vmem:[#allocation5 + $0x64c] sm:$0xf]  ;;  %3453 = vmatpush.bf16.msra.mxu2 %v4617_v35  ;;  %v4297_v11 = vor.u32 %v6275_v20, %v4294_v52 }
 0x154   :  { %v5094_v54 = vld [vmem:[#allocation5 + $0x668] sm:$0xf0] }
 0x155   :  { %3478 = vmatpush.bf16.msra.mxu0 %v5161_v30  ;;  %3466 = vmatpush.bf16.msra.mxu3 %v4873_v37  ;;  %v6339_v60 = vld [vmem:[#allocation5 + $0x20c] sm:$0xf]  ;;  %v5097_v5 = vor.u32 %v6475_v53, %v5094_v54  ;;  %v3212_v30 = vpop.f32.mrf.mxu2 }
 0x156   :  { %v4550_v61 = vld [vmem:[#allocation5 + $0x228] sm:$0xf0] }
 0x157   :  { %3440 = vmatpush.bf16.msra.mxu1 %v4361_v32  ;;  %v6403_v62 = vld [vmem:[#allocation5 + $0x40c] sm:$0xf]  ;;  %3454 = vmatpush.bf16.msra.mxu2 %v4585_v56  ;;  %v4553_v59 = vor.u32 %v6339_v60, %v4550_v61 }
 0x158   :  { %v4806_v0 = vld [vmem:[#allocation5 + $0x428] sm:$0xf0] }
 0x159   :  { %v6587_v1 = vld [vmem:[#allocation5 + $0x9cc] sm:$0xf]  ;;  %3479 = vmatpush.bf16.msra.mxu0 %v5129_v48  ;;  %3467 = vmatpush.bf16.msra.mxu3 %v4841_v57  ;;  %v4809_v15 = vor.u32 %v6403_v62, %v4806_v0 }
 0x15a   :  { %v5542_v3 = vld [vmem:[#allocation5 + $0x9e8] sm:$0xf0] }
 0x15b   :  { %v6651_v7 = vld [vmem:[#allocation5 + $0xbcc] sm:$0xf]  ;;  %3441 = vmatpush.bf16.msra.mxu1 %v4329_v50  ;;  %v5545_v17 = vor.u32 %v6587_v1, %v5542_v3  ;;  %3455 = vmatpush.bf16.msra.mxu2 %v4553_v59 }
 0x15c   :  { %v5798_v8 = vld [vmem:[#allocation5 + $0xbe8] sm:$0xf0] }
 0x15d   :  { %v6715_v9 = vld [vmem:[#allocation5 + $0xdcc] sm:$0xf]  ;;  %v5801_v21 = vor.u32 %v6651_v7, %v5798_v8  ;;  %3480 = vmatpush.bf16.msra.mxu0 %v5097_v5  ;;  %3468 = vmatpush.bf16.msra.mxu3 %v4809_v15 }
 0x15e   :  { %v6054_v12 = vld [vmem:[#allocation5 + $0xde8] sm:$0xf0]  ;;  %3456 = vmatmul.bf16.vlgmr.msra.gmra.mxu2 %v6965_v18 }
 0x15f   :  { %v6467_v13 = vld [vmem:[#allocation5 + $0x60c] sm:$0xf]  ;;  %v6057_v23 = vor.u32 %v6715_v9, %v6054_v12  ;;  %3442 = vmatpush.bf16.msra.mxu1 %v4297_v11  ;;  %3500 = vmatpush.bf16.msrb.mxu2 %v5801_v21 }
 0x160   :  { %v5062_v14 = vld [vmem:[#allocation5 + $0x628] sm:$0xf0]  ;;  %3469 = vmatmul.bf16.vlgmr.msra.gmra.mxu3 %v6956_v51 }
 0x161   :  { %v6579_v22 = vld [vmem:[#allocation5 + $0x98c] sm:$0xf]  ;;  %v5065_v24 = vor.u32 %v6467_v13, %v5062_v14  ;;  %3513 = vmatpush.bf16.msrb.mxu3 %v6057_v23 }
 0x162   :  { %v5510_v25 = vld [vmem:[#allocation5 + $0x9a8] sm:$0xf0]  ;;  %3443 = vmatmul.bf16.vlgmr.msra.gmra.mxu1 %v6960_v2 }
 0x163   :  { %v6643_v26 = vld [vmem:[#allocation5 + $0xb8c] sm:$0xf]  ;;  %3487 = vmatpush.bf16.msrb.mxu1 %v5545_v17  ;;  %v5513_v35 = vor.u32 %v6579_v22, %v5510_v25  ;;  %3481 = vmatpush.bf16.msra.mxu0 %v5065_v24 }
 0x164   :  { %v5766_v27 = vld [vmem:[#allocation5 + $0xba8] sm:$0xf0] }
 0x165   :  { %v6707_v28 = vld [vmem:[#allocation5 + $0xd8c] sm:$0xf]  ;;  %v5769_v37 = vor.u32 %v6643_v26, %v5766_v27  ;;  %v3249_v26 = vpop.f32.mrf.mxu0 }
 0x166   :  { %v6022_v29 = vld [vmem:[#allocation5 + $0xda8] sm:$0xf0]  ;;  %3482 = vmatmul.bf16.vlgmr.msra.gmra.mxu0 %v6962_v6 }
 0x167   :  { %v6763_v32 = vld [vmem:[#allocation5 + $0xf4c] sm:$0xf]  ;;  %v6025_v39 = vor.u32 %v6707_v28, %v6022_v29  ;;  %3527 = vmatpush.bf16.msrb.mxu0 %v3109_v31  ;;  %3488 = vmatpush.bf16.msrb.mxu1 %v5513_v35  ;;  %v3262_v29 = vpop.f32.mrf.mxu1 }
 0x168   :  { %v6246_v33 = vld [vmem:[#allocation5 + $0xf68] sm:$0xf0]  ;;  %3501 = vmatpush.bf16.msrb.mxu2 %v5769_v37 }
 0x169   :  { %v6571_v38 = vld [vmem:[#allocation5 + $0x94c] sm:$0xf]  ;;  %v6249_v48 = vor.u32 %v6763_v32, %v6246_v33  ;;  %3514 = vmatpush.bf16.msrb.mxu3 %v6025_v39 }
 0x16a   :  { %v5478_v43 = vld [vmem:[#allocation5 + $0x968] sm:$0xf0] }
 0x16b   :  { %v6635_v44 = vld [vmem:[#allocation5 + $0xb4c] sm:$0xf]  ;;  %v5481_v50 = vor.u32 %v6571_v38, %v5478_v43  ;;  %3528 = vmatpush.bf16.msrb.mxu0 %v6249_v48  ;;  %v3236_v48 = vpop.f32.mrf.mxu3 }
 0x16c   :  { %v5734_v45 = vld [vmem:[#allocation5 + $0xb68] sm:$0xf0] }
 0x16d   :  { %v6699_v46 = vld [vmem:[#allocation5 + $0xd4c] sm:$0xf]  ;;  %v5737_v52 = vor.u32 %v6635_v44, %v5734_v45  ;;  %3489 = vmatpush.bf16.msrb.mxu1 %v5481_v50 }
 0x16e   :  { %v5990_v47 = vld [vmem:[#allocation5 + $0xd68] sm:$0xf0] }
 0x16f   :  { %v6755_v20 = vld [vmem:[#allocation5 + $0xf0c] sm:$0xf]  ;;  %v5993_v54 = vor.u32 %v6699_v46, %v5990_v47  ;;  %3502 = vmatpush.bf16.msrb.mxu2 %v5737_v52  ;;  %v4524_v52 = vld [vmem:[#allocation5 + $0x1d0] sm:$0xf] }
 0x170   :  { %v6214_v49 = vld [vmem:[#allocation5 + $0xf28] sm:$0xf0] }
 0x171   :  { %v6563_v53 = vld [vmem:[#allocation5 + $0x90c] sm:$0xf]  ;;  %v6217_v61 = vor.u32 %v6755_v20, %v6214_v49  ;;  %3515 = vmatpush.bf16.msrb.mxu3 %v5993_v54  ;;  %v3250_v54 = vadd.f32 %v3249_v26, %v3236_v48  ;;  %v5260_v26 = vld [vmem:[#allocation5 + $0x790] sm:$0xf] }
 0x172   :  { %v5446_v55 = vld [vmem:[#allocation5 + $0x928] sm:$0xf0] }
 0x173   :  { %v6627_v56 = vld [vmem:[#allocation5 + $0xb0c] sm:$0xf]  ;;  %v5449_v0 = vor.u32 %v6563_v53, %v5446_v55  ;;  %3529 = vmatpush.bf16.msrb.mxu0 %v6217_v61  ;;  %v6336_v53 = vld [vmem:[#allocation5 + $0x1ec] sm:$0xf0]  ;;  %v3275_v55 = vpop.f32.mrf.mxu2 }
 0x174   :  { %v5702_v57 = vld [vmem:[#allocation5 + $0xb28] sm:$0xf0] }
 0x175   :  { %v6691_v58 = vld [vmem:[#allocation5 + $0xd0c] sm:$0xf]  ;;  %v5705_v1 = vor.u32 %v6627_v56, %v5702_v57  ;;  %3490 = vmatpush.bf16.msrb.mxu1 %v5449_v0  ;;  %v5036_v0 = vld [vmem:[#allocation5 + $0x5d0] sm:$0xf] }
 0x176   :  { %v5958_v60 = vld [vmem:[#allocation5 + $0xd28] sm:$0xf0] }
 0x177   :  { %v6747_v62 = vld [vmem:[#allocation5 + $0xecc] sm:$0xf]  ;;  %v5961_v19 = vor.u32 %v6691_v58, %v5958_v60  ;;  %3503 = vmatpush.bf16.msrb.mxu2 %v5705_v1  ;;  %v3263_v1 = vadd.f32 %v3262_v29, %v3250_v54  ;;  %v4460_v29 = vld [vmem:[#allocation5 + $0x150] sm:$0xf] }
 0x178   :  { %v6182_v63 = vld [vmem:[#allocation5 + $0xee8] sm:$0xf0] }
 0x179   :  { %v6555_v3 = vld [vmem:[#allocation5 + $0x8cc] sm:$0xf]  ;;  %v6185_v11 = vor.u32 %v6747_v62, %v6182_v63  ;;  %3516 = vmatpush.bf16.msrb.mxu3 %v5961_v19  ;;  %v4780_v62 = vld [vmem:[#allocation5 + $0x3d0] sm:$0xf]  ;;  %v4525_v19 = vor.u32 %v6336_v53, %v4524_v52 }
 0x17a   :  { %v5414_v5 = vld [vmem:[#allocation5 + $0x8e8] sm:$0xf0]  ;;  %v6400_v63 = vld [vmem:[#allocation5 + $0x3ec] sm:$0xf0] }
 0x17b   :  { %v6619_v7 = vld [vmem:[#allocation5 + $0xacc] sm:$0xf]  ;;  %v5417_v14 = vor.u32 %v6555_v3, %v5414_v5  ;;  %3530 = vmatpush.bf16.msrb.mxu0 %v6185_v11  ;;  %v3251_v3 = vpop.f32.mrf.mxu0  ;;  %v6464_v5 = vld [vmem:[#allocation5 + $0x5ec] sm:$0xf0] }
 0x17c   :  { %v5670_v8 = vld [vmem:[#allocation5 + $0xae8] sm:$0xf0]  ;;  %v6376_v52 = vld [vmem:[#allocation5 + $0x32c] sm:$0xf0] }
 0x17d   :  { %v6683_v9 = vld [vmem:[#allocation5 + $0xccc] sm:$0xf]  ;;  %v5673_v59 = vor.u32 %v6619_v7, %v5670_v8  ;;  %3491 = vmatpush.bf16.msrb.mxu1 %v5417_v14  ;;  %v5292_v7 = vld [vmem:[#allocation5 + $0x7d0] sm:$0xf]  ;;  %v7017_v14 = vadd.f32 %v3275_v55, %v3263_v1 }
 0x17e   :  { %v5926_v10 = vld [vmem:[#allocation5 + $0xce8] sm:$0xf0]  ;;  %v6528_v8 = vld [vmem:[#allocation5 + $0x7ec] sm:$0xf0] }
 0x17f   :  { %v6739_v12 = vld [vmem:[#allocation5 + $0xe8c] sm:$0xf]  ;;  %v5929_v16 = vor.u32 %v6683_v9, %v5926_v10  ;;  %3504 = vmatpush.bf16.msrb.mxu2 %v5673_v59  ;;  %v3264_v9 = vpop.f32.mrf.mxu1  ;;  %v4940_v53 = vld [vmem:[#allocation5 + $0x510] sm:$0xf] }
 0x180   :  { %v6150_v13 = vld [vmem:[#allocation5 + $0xea8] sm:$0xf0]  ;;  %v6440_v55 = vld [vmem:[#allocation5 + $0x52c] sm:$0xf0] }
 0x181   :  { %v6547_v15 = vld [vmem:[#allocation5 + $0x88c] sm:$0xf]  ;;  %v6153_v25 = vor.u32 %v6739_v12, %v6150_v13  ;;  %3517 = vmatpush.bf16.msrb.mxu3 %v5929_v16  ;;  %v4492_v12 = vld [vmem:[#allocation5 + $0x190] sm:$0xf]  ;;  %v5037_v16 = vor.u32 %v6464_v5, %v5036_v0 }
 0x182   :  { %v5382_v17 = vld [vmem:[#allocation5 + $0x8a8] sm:$0xf0]  ;;  %v6328_v13 = vld [vmem:[#allocation5 + $0x1ac] sm:$0xf0] }
 0x183   :  { %v6611_v21 = vld [vmem:[#allocation5 + $0xa8c] sm:$0xf]  ;;  %v5385_v30 = vor.u32 %v6547_v15, %v5382_v17  ;;  %3531 = vmatpush.bf16.msrb.mxu0 %v6153_v25  ;;  %v4781_v15 = vor.u32 %v6400_v63, %v4780_v62  ;;  %v5293_v17 = vor.u32 %v6528_v8, %v5292_v7  ;;  %v6456_v25 = vld [vmem:[#allocation5 + $0x5ac] sm:$0xf0]  ;;  %v4941_v62 = vor.u32 %v6440_v55, %v4940_v53 }
 0x184   :  { %v5638_v22 = vld [vmem:[#allocation5 + $0xaa8] sm:$0xf0]  ;;  %v4652_v0 = vld [vmem:[#allocation5 + $0x2d0] sm:$0xf] }
 0x185   :  { %v6675_v23 = vld [vmem:[#allocation5 + $0xc8c] sm:$0xf]  ;;  %v5641_v31 = vor.u32 %v6611_v21, %v5638_v22  ;;  %3492 = vmatpush.bf16.msrb.mxu1 %v5385_v30  ;;  %v4748_v21 = vld [vmem:[#allocation5 + $0x390] sm:$0xf] }
 0x186   :  { %v5894_v24 = vld [vmem:[#allocation5 + $0xca8] sm:$0xf0]  ;;  %v6392_v22 = vld [vmem:[#allocation5 + $0x3ac] sm:$0xf0] }
 0x187   :  { %v6731_v27 = vld [vmem:[#allocation5 + $0xe4c] sm:$0xf]  ;;  %v5897_v33 = vor.u32 %v6675_v23, %v5894_v24  ;;  %3505 = vmatpush.bf16.msrb.mxu2 %v5641_v31  ;;  %v5004_v23 = vld [vmem:[#allocation5 + $0x590] sm:$0xf]  ;;  %v4493_v24 = vor.u32 %v6328_v13, %v4492_v12  ;;  %v3277_v31 = vpop.f32.mrf.mxu2 }
 0x188   :  { %v6118_v28 = vld [vmem:[#allocation5 + $0xe68] sm:$0xf0]  ;;  %v6320_v30 = vld [vmem:[#allocation5 + $0x16c] sm:$0xf0] }
 0x189   :  { %v6539_v32 = vld [vmem:[#allocation5 + $0x84c] sm:$0xf]  ;;  %v6121_v43 = vor.u32 %v6731_v27, %v6118_v28  ;;  %3518 = vmatpush.bf16.msrb.mxu3 %v5897_v33  ;;  %v6520_v27 = vld [vmem:[#allocation5 + $0x7ac] sm:$0xf0]  ;;  %v3238_v28 = vpop.f32.mrf.mxu3  ;;  %v5005_v33 = vor.u32 %v6456_v25, %v5004_v23  ;;  %v3314_v25 = vpop.f32.mrf.mxu1 }
 0x18a   :  { %v5350_v34 = vld [vmem:[#allocation5 + $0x868] sm:$0xf0]  ;;  %v6368_v1 = vld [vmem:[#allocation5 + $0x2ec] sm:$0xf0] }
 0x18b   :  { %v6603_v35 = vld [vmem:[#allocation5 + $0xa4c] sm:$0xf]  ;;  %v5353_v20 = vor.u32 %v6539_v32, %v5350_v34  ;;  %3532 = vmatpush.bf16.msrb.mxu0 %v6121_v43  ;;  %v4749_v32 = vor.u32 %v6392_v22, %v4748_v21  ;;  %v5261_v34 = vor.u32 %v6520_v27, %v5260_v26  ;;  %v6448_v43 = vld [vmem:[#allocation5 + $0x56c] sm:$0xf0] }
 0x18c   :  { %v5606_v37 = vld [vmem:[#allocation5 + $0xa68] sm:$0xf0]  ;;  %v4908_v3 = vld [vmem:[#allocation5 + $0x4d0] sm:$0xf] }
 0x18d   :  { %v6667_v38 = vld [vmem:[#allocation5 + $0xc4c] sm:$0xf]  ;;  %v5609_v49 = vor.u32 %v6603_v35, %v5606_v37  ;;  %3493 = vmatpush.bf16.msrb.mxu1 %v5353_v20  ;;  %v4716_v35 = vld [vmem:[#allocation5 + $0x350] sm:$0xf] }
 0x18e   :  { %v5862_v39 = vld [vmem:[#allocation5 + $0xc68] sm:$0xf0]  ;;  %v6384_v37 = vld [vmem:[#allocation5 + $0x36c] sm:$0xf0] }
 0x18f   :  { %v6531_v44 = vld [vmem:[#allocation5 + $0x80c] sm:$0xf]  ;;  %v5865_v56 = vor.u32 %v6667_v38, %v5862_v39  ;;  %3506 = vmatpush.bf16.msrb.mxu2 %v5609_v49  ;;  %v4972_v38 = vld [vmem:[#allocation5 + $0x550] sm:$0xf]  ;;  %v4461_v39 = vor.u32 %v6320_v30, %v4460_v29  ;;  %v4717_v48 = vor.u32 %v6384_v37, %v4716_v35 }
 0x190   :  { %v5318_v45 = vld [vmem:[#allocation5 + $0x828] sm:$0xf0]  ;;  %v4973_v20 = vor.u32 %v6448_v43, %v4972_v38  ;;  %v6432_v5 = vld [vmem:[#allocation5 + $0x4ec] sm:$0xf0] }
 0x191   :  { %v6723_v46 = vld [vmem:[#allocation5 + $0xe0c] sm:$0xf]  ;;  %v5321_v10 = vor.u32 %v6531_v44, %v5318_v45  ;;  %3519 = vmatpush.bf16.msrb.mxu3 %v5865_v56  ;;  %v5228_v44 = vld [vmem:[#allocation5 + $0x750] sm:$0xf]  ;;  %v4909_v12 = vor.u32 %v6432_v5, %v4908_v3  ;;  %v3288_v29 = vpop.f32.mrf.mxu3  ;;  %v3316_v3 = vpop.f32.mrf.mxu1 }
 0x192   :  { %v6086_v47 = vld [vmem:[#allocation5 + $0xe28] sm:$0xf0]  ;;  %v6512_v45 = vld [vmem:[#allocation5 + $0x76c] sm:$0xf0]  ;;  %v3289_v31 = vadd.f32 %v3288_v29, %v7017_v14 }
 0x193   :  { %v6595_v50 = vld [vmem:[#allocation5 + $0xa0c] sm:$0xf]  ;;  %v6089_v61 = vor.u32 %v6723_v46, %v6086_v47  ;;  %3494 = vmatpush.bf16.msrb.mxu1 %v5321_v10  ;;  %v4428_v46 = vld [vmem:[#allocation5 + $0x110] sm:$0xf]  ;;  %v5229_v49 = vor.u32 %v6512_v45, %v5228_v44 }
 0x194   :  { %v5574_v57 = vld [vmem:[#allocation5 + $0xa28] sm:$0xf0]  ;;  %v6312_v47 = vld [vmem:[#allocation5 + $0x12c] sm:$0xf0] }
 0x195   :  { %v6659_v58 = vld [vmem:[#allocation5 + $0xc0c] sm:$0xf]  ;;  %v5577_v11 = vor.u32 %v6595_v50, %v5574_v57  ;;  %3533 = vmatpush.bf16.msrb.mxu0 %v6089_v61  ;;  %v4684_v50 = vld [vmem:[#allocation5 + $0x310] sm:$0xf]  ;;  %v4429_v54 = vor.u32 %v6312_v47, %v4428_v46 }
 0x196   :  { %v5830_v60 = vld [vmem:[#allocation5 + $0xc28] sm:$0xf0]  ;;  %3495 = vmatmul.bf16.vlgmr.msrb.gmra.mxu1 %v6971_v40  ;;  %v5196_v56 = vld [vmem:[#allocation5 + $0x710] sm:$0xf]  ;;  %v4685_v61 = vor.u32 %v6376_v52, %v4684_v50 }
 0x197   :  { %v5833_v59 = vor.u32 %v6659_v58, %v5830_v60  ;;  %3507 = vmatpush.bf16.msrb.mxu2 %v5577_v11  ;;  %3552 = vmatpush.bf16.msra.mxu1 %v4781_v15  ;;  %v6504_v57 = vld [vmem:[#allocation5 + $0x72c] sm:$0xf0]  ;;  %v4653_v11 = vor.u32 %v6368_v1, %v4652_v0 }
 0x198   :  { %6269 = vmatmul.msk.bf16.vlgmr.msrb.gmra.mxu0 %vm3094_vm1, %v6973_v41  ;;  %v4396_v58 = vld [vmem:[#allocation5 + $0xd0] sm:$0xf]  ;;  %v5197_v63 = vor.u32 %v6504_v57, %v5196_v56 }
 0x199   :  { %3539 = vmatpush.bf16.msra.mxu0 %v4525_v19  ;;  %3520 = vmatpush.bf16.msrb.mxu3 %v5833_v59  ;;  %v6304_v60 = vld [vmem:[#allocation5 + $0xec] sm:$0xf0]  ;;  %v3301_v59 = vpop.f32.mrf.mxu0 }
 0x19a   :  { %3508 = vmatmul.bf16.vlgmr.msrb.gmra.mxu2 %v6975_v42  ;;  %v4397_v19 = vor.u32 %v6304_v60, %v4396_v58  ;;  %v5164_v7 = vld [vmem:[#allocation5 + $0x6d0] sm:$0xf]  ;;  %v3302_v46 = vadd.f32 %v3301_v59, %v3289_v31 }
 0x19b   :  { %3565 = vmatpush.bf16.msra.mxu2 %v5037_v16  ;;  %3553 = vmatpush.bf16.msra.mxu1 %v4749_v32  ;;  %v6496_v8 = vld [vmem:[#allocation5 + $0x6ec] sm:$0xf0] }
 0x19c   :  { %3521 = vmatmul.bf16.vlgmr.msrb.gmra.mxu3 %v6969_v36  ;;  %v4364_v9 = vld [vmem:[#allocation5 + $0x90] sm:$0xf]  ;;  %v5165_v13 = vor.u32 %v6496_v8, %v5164_v7  ;;  %v3315_v53 = vadd.f32 %v3314_v25, %v3302_v46 }
 0x19d   :  { %3578 = vmatpush.bf16.msra.mxu3 %v5293_v17  ;;  %3540 = vmatpush.bf16.msra.mxu0 %v4493_v24  ;;  %v6296_v10 = vld [vmem:[#allocation5 + $0xac] sm:$0xf0] }
 0x19e   :  { %v4620_v15 = vld [vmem:[#allocation5 + $0x290] sm:$0xf]  ;;  %v4365_v21 = vor.u32 %v6296_v10, %v4364_v9 }
 0x19f   :  { %3566 = vmatpush.bf16.msra.mxu2 %v5005_v33  ;;  %3554 = vmatpush.bf16.msra.mxu1 %v4717_v48  ;;  %v6360_v16 = vld [vmem:[#allocation5 + $0x2ac] sm:$0xf0] }
 0x1a0   :  { %v4876_v17 = vld [vmem:[#allocation5 + $0x490] sm:$0xf]  ;;  %v4621_v30 = vor.u32 %v6360_v16, %v4620_v15 }
 0x1a1   :  { %3579 = vmatpush.bf16.msra.mxu3 %v5261_v34  ;;  %3541 = vmatpush.bf16.msra.mxu0 %v4461_v39  ;;  %v6424_v22 = vld [vmem:[#allocation5 + $0x4ac] sm:$0xf0]  ;;  %v3303_v60 = vpop.f32.mrf.mxu0 }
 0x1a2   :  { %v5132_v23 = vld [vmem:[#allocation5 + $0x690] sm:$0xf]  ;;  %v4877_v32 = vor.u32 %v6424_v22, %v4876_v17 }
 0x1a3   :  { %3567 = vmatpush.bf16.msra.mxu2 %v4973_v20  ;;  %3555 = vmatpush.bf16.msra.mxu1 %v4685_v61  ;;  %v6488_v24 = vld [vmem:[#allocation5 + $0x6ac] sm:$0xf0]  ;;  %v3327_v20 = vpop.f32.mrf.mxu2 }
 0x1a4   :  { %v4332_v26 = vld [vmem:[#allocation5 + $0x50] sm:$0xf]  ;;  %v5133_v33 = vor.u32 %v6488_v24, %v5132_v23 }
 0x1a5   :  { %3580 = vmatpush.bf16.msra.mxu3 %v5229_v49  ;;  %3542 = vmatpush.bf16.msra.mxu0 %v4429_v54  ;;  %v6288_v27 = vld [vmem:[#allocation5 + $0x6c] sm:$0xf0] }
 0x1a6   :  { %v7024_v28 = vld [vmem:[#allocation5 + $0xf90] sm:$0xff]  ;;  %v4333_v38 = vor.u32 %v6288_v27, %v4332_v26 }
 0x1a7   :  { %3568 = vmatpush.bf16.msra.mxu2 %v4941_v62  ;;  %3556 = vmatpush.bf16.msra.mxu1 %v4653_v11  ;;  %v4588_v34 = vld [vmem:[#allocation5 + $0x250] sm:$0xf]  ;;  %v2090_v45 = vunpack.c.l.b16 %v7024_v28 }
 0x1a8   :  { %v6352_v35 = vld [vmem:[#allocation5 + $0x26c] sm:$0xf0] }
 0x1a9   :  { %3581 = vmatpush.bf16.msra.mxu3 %v5197_v63  ;;  %3543 = vmatpush.bf16.msra.mxu0 %v4397_v19  ;;  %v4844_v37 = vld [vmem:[#allocation5 + $0x450] sm:$0xf]  ;;  %v4589_v49 = vor.u32 %v6352_v35, %v4588_v34  ;;  %v2594_v1 = vpack.c.b16 %v2090_v45, %v2090_v45  ;;  %v7028_v19 = vadd.f32 %v3327_v20, %v3315_v53 }
 0x1aa   :  { %v6416_v39 = vld [vmem:[#allocation5 + $0x46c] sm:$0xf0] }
 0x1ab   :  { %3569 = vmatpush.bf16.msra.mxu2 %v4909_v12  ;;  %v5100_v43 = vld [vmem:[#allocation5 + $0x650] sm:$0xf]  ;;  %3557 = vmatpush.bf16.msra.mxu1 %v4621_v30  ;;  %v4845_v54 = vor.u32 %v6416_v39, %v4844_v37 }
 0x1ac   :  { %v6480_v44 = vld [vmem:[#allocation5 + $0x66c] sm:$0xf0] }
 0x1ad   :  { %3582 = vmatpush.bf16.msra.mxu3 %v5165_v13  ;;  %3544 = vmatpush.bf16.msra.mxu0 %v4365_v21  ;;  %v4300_v47 = vld [vmem:[#allocation5 + $0x10] sm:$0xf]  ;;  %v5101_v55 = vor.u32 %v6480_v44, %v5100_v43  ;;  %v3290_v13 = vpop.f32.mrf.mxu3  ;;  %v3112_v21 = vsel %vm3098_vm0, %v2594_v1, 0 }
 0x1ae   :  { %v6280_v48 = vld [vmem:[#allocation5 + $0x2c] sm:$0xf0] }
 0x1af   :  { %v4556_v50 = vld [vmem:[#allocation5 + $0x210] sm:$0xf]  ;;  %3570 = vmatpush.bf16.msra.mxu2 %v4877_v32  ;;  %v4301_v61 = vor.u32 %v6280_v48, %v4300_v47  ;;  %3558 = vmatpush.bf16.msra.mxu1 %v4589_v49  ;;  %v3329_v32 = vpop.f32.mrf.mxu2 }
 0x1b0   :  { %v5548_v14 = vld [vmem:[#allocation5 + $0x9d0] sm:$0xf] }
 0x1b1   :  { %v6592_v52 = vld [vmem:[#allocation5 + $0x9ec] sm:$0xf0]  ;;  %3583 = vmatpush.bf16.msra.mxu3 %v5133_v33  ;;  %3545 = vmatpush.bf16.msra.mxu0 %v4333_v38 }
 0x1b2   :  { %v6344_v56 = vld [vmem:[#allocation5 + $0x22c] sm:$0xf0]  ;;  %v5549_v5 = vor.u32 %v6592_v52, %v5548_v14 }
 0x1b3   :  { %v4812_v57 = vld [vmem:[#allocation5 + $0x410] sm:$0xf]  ;;  %v4557_v10 = vor.u32 %v6344_v56, %v4556_v50  ;;  %3571 = vmatpush.bf16.msra.mxu2 %v4845_v54 }
 0x1b4   :  { %v6408_v58 = vld [vmem:[#allocation5 + $0x42c] sm:$0xf0] }
 0x1b5   :  { %v5068_v62 = vld [vmem:[#allocation5 + $0x610] sm:$0xf]  ;;  %3584 = vmatpush.bf16.msra.mxu3 %v5101_v55  ;;  %v4813_v59 = vor.u32 %v6408_v58, %v4812_v57  ;;  %3546 = vmatpush.bf16.msra.mxu0 %v4301_v61 }
 0x1b6   :  { %v6472_v63 = vld [vmem:[#allocation5 + $0x62c] sm:$0xf0]  ;;  %3559 = vmatpush.bf16.msra.mxu1 %v4557_v10 }
 0x1b7   :  { %v5804_v0 = vld [vmem:[#allocation5 + $0xbd0] sm:$0xf]  ;;  %v5069_v15 = vor.u32 %v6472_v63, %v5068_v62  ;;  %3572 = vmatpush.bf16.msra.mxu2 %v4813_v59 }
 0x1b8   :  { %v6656_v7 = vld [vmem:[#allocation5 + $0xbec] sm:$0xf0]  ;;  %3547 = vmatmul.bf16.vlgmr.msra.gmra.mxu0 %v6960_v2 }
 0x1b9   :  { %v6060_v8 = vld [vmem:[#allocation5 + $0xdd0] sm:$0xf]  ;;  %v5805_v16 = vor.u32 %v6656_v7, %v5804_v0  ;;  %3591 = vmatpush.bf16.msrb.mxu0 %v5549_v5  ;;  %3585 = vmatpush.bf16.msra.mxu3 %v5069_v15 }
 0x1ba   :  { %v6720_v9 = vld [vmem:[#allocation5 + $0xdec] sm:$0xf0]  ;;  %3573 = vmatmul.bf16.vlgmr.msra.gmra.mxu2 %v6956_v51  ;;  %3560 = vmatmul.bf16.vlgmr.msra.gmra.mxu1 %v6965_v18 }
 0x1bb   :  { %v5516_v11 = vld [vmem:[#allocation5 + $0x990] sm:$0xf]  ;;  %v6061_v17 = vor.u32 %v6720_v9, %v6060_v8  ;;  %3604 = vmatpush.bf16.msrb.mxu1 %v5805_v16  ;;  %v7035_v16 = vpop.f32.mrf.mxu0 }
 0x1bc   :  { %v6584_v12 = vld [vmem:[#allocation5 + $0x9ac] sm:$0xf0]  ;;  %3586 = vmatmul.bf16.vlgmr.msra.gmra.mxu3 %v6962_v6 }
 0x1bd   :  { %v5772_v22 = vld [vmem:[#allocation5 + $0xb90] sm:$0xf]  ;;  %v5517_v24 = vor.u32 %v6584_v12, %v5516_v11  ;;  %3617 = vmatpush.bf16.msrb.mxu2 %v6061_v17  ;;  %3631 = vmatpush.bf16.msrb.mxu3 %v3112_v21 }
 0x1be   :  { %v6648_v23 = vld [vmem:[#allocation5 + $0xbac] sm:$0xf0] }
 0x1bf   :  { %v6028_v25 = vld [vmem:[#allocation5 + $0xd90] sm:$0xf]  ;;  %v5773_v33 = vor.u32 %v6648_v23, %v5772_v22  ;;  %3592 = vmatpush.bf16.msrb.mxu0 %v5517_v24 }
 0x1c0   :  { %v6712_v26 = vld [vmem:[#allocation5 + $0xdac] sm:$0xf0] }
 0x1c1   :  { %v6252_v27 = vld [vmem:[#allocation5 + $0xf50] sm:$0xf]  ;;  %v6029_v34 = vor.u32 %v6712_v26, %v6028_v25  ;;  %3605 = vmatpush.bf16.msrb.mxu1 %v5773_v33  ;;  %v7037_v25 = vpop.f32.mrf.mxu1 }
 0x1c2   :  { %v6768_v29 = vld [vmem:[#allocation5 + $0xf6c] sm:$0xf0] }
 0x1c3   :  { %v5484_v30 = vld [vmem:[#allocation5 + $0x950] sm:$0xf]  ;;  %v6253_v38 = vor.u32 %v6768_v29, %v6252_v27  ;;  %3618 = vmatpush.bf16.msrb.mxu2 %v6029_v34 }
 0x1c4   :  { %v6576_v31 = vld [vmem:[#allocation5 + $0x96c] sm:$0xf0] }
 0x1c5   :  { %v5740_v35 = vld [vmem:[#allocation5 + $0xb50] sm:$0xf]  ;;  %v5485_v39 = vor.u32 %v6576_v31, %v5484_v30  ;;  %3632 = vmatpush.bf16.msrb.mxu3 %v6253_v38  ;;  %v7039_v30 = vpop.f32.mrf.mxu3 }
 0x1c6   :  { %v6640_v37 = vld [vmem:[#allocation5 + $0xb6c] sm:$0xf0] }
 0x1c7   :  { %v5996_v43 = vld [vmem:[#allocation5 + $0xd50] sm:$0xf]  ;;  %v5741_v20 = vor.u32 %v6640_v37, %v5740_v35  ;;  %3593 = vmatpush.bf16.msrb.mxu0 %v5485_v39 }
 0x1c8   :  { %v6704_v44 = vld [vmem:[#allocation5 + $0xd6c] sm:$0xf0] }
 0x1c9   :  { %v6220_v45 = vld [vmem:[#allocation5 + $0xf10] sm:$0xf]  ;;  %v5997_v49 = vor.u32 %v6704_v44, %v5996_v43  ;;  %3606 = vmatpush.bf16.msrb.mxu1 %v5741_v20  ;;  %v6396_v20 = vld [vmem:[#allocation5 + $0x3d4] sm:$0xf] }
 0x1ca   :  { %v6760_v46 = vld [vmem:[#allocation5 + $0xf2c] sm:$0xf0] }
 0x1cb   :  { %v5452_v47 = vld [vmem:[#allocation5 + $0x910] sm:$0xf]  ;;  %v6221_v52 = vor.u32 %v6760_v46, %v6220_v45  ;;  %3619 = vmatpush.bf16.msrb.mxu2 %v5997_v49  ;;  %v6332_v45 = vld [vmem:[#allocation5 + $0x1d4] sm:$0xf] }
 0x1cc   :  { %v6568_v48 = vld [vmem:[#allocation5 + $0x92c] sm:$0xf0]  ;;  %v4782_v49 = vld [vmem:[#allocation5 + $0x3f0] sm:$0xf0] }
 0x1cd   :  { %v5708_v50 = vld [vmem:[#allocation5 + $0xb10] sm:$0xf]  ;;  %v5453_v53 = vor.u32 %v6568_v48, %v5452_v47  ;;  %3633 = vmatpush.bf16.msrb.mxu3 %v6221_v52  ;;  %v4526_v48 = vld [vmem:[#allocation5 + $0x1f0] sm:$0xf0] }
 0x1ce   :  { %v6632_v14 = vld [vmem:[#allocation5 + $0xb2c] sm:$0xf0] }
 0x1cf   :  { %v5964_v54 = vld [vmem:[#allocation5 + $0xd10] sm:$0xf]  ;;  %v5709_v61 = vor.u32 %v6632_v14, %v5708_v50  ;;  %3594 = vmatpush.bf16.msrb.mxu0 %v5453_v53  ;;  %v7041_v50 = vpop.f32.mrf.mxu2 }
 0x1d0   :  { %v6696_v55 = vld [vmem:[#allocation5 + $0xd2c] sm:$0xf0] }
 0x1d1   :  { %v6188_v56 = vld [vmem:[#allocation5 + $0xed0] sm:$0xf]  ;;  %v5965_v62 = vor.u32 %v6696_v55, %v5964_v54  ;;  %3607 = vmatpush.bf16.msrb.mxu1 %v5709_v61  ;;  %v3368_v55 = vpop.f32.mrf.mxu0  ;;  %v6460_v61 = vld [vmem:[#allocation5 + $0x5d4] sm:$0xf] }
 0x1d2   :  { %v6752_v57 = vld [vmem:[#allocation5 + $0xeec] sm:$0xf0]  ;;  %v6500_v55 = vld [vmem:[#allocation5 + $0x714] sm:$0xf] }
 0x1d3   :  { %v5420_v58 = vld [vmem:[#allocation5 + $0x8d0] sm:$0xf]  ;;  %v6189_v1 = vor.u32 %v6752_v57, %v6188_v56  ;;  %3620 = vmatpush.bf16.msrb.mxu2 %v5965_v62  ;;  %v3381_v62 = vpop.f32.mrf.mxu1 }
 0x1d4   :  { %v6560_v60 = vld [vmem:[#allocation5 + $0x8ec] sm:$0xf0] }
 0x1d5   :  { %v5676_v63 = vld [vmem:[#allocation5 + $0xad0] sm:$0xf]  ;;  %v5421_v3 = vor.u32 %v6560_v60, %v5420_v58  ;;  %3634 = vmatpush.bf16.msrb.mxu3 %v6189_v1  ;;  %v5038_v1 = vld [vmem:[#allocation5 + $0x5f0] sm:$0xf0] }
 0x1d6   :  { %v6624_v0 = vld [vmem:[#allocation5 + $0xaec] sm:$0xf0] }
 0x1d7   :  { %v5932_v5 = vld [vmem:[#allocation5 + $0xcd0] sm:$0xf]  ;;  %v5677_v12 = vor.u32 %v6624_v0, %v5676_v63  ;;  %3595 = vmatpush.bf16.msrb.mxu0 %v5421_v3  ;;  %v4529_v63 = vor.u32 %v6332_v45, %v4526_v48  ;;  %v4785_v0 = vor.u32 %v6396_v20, %v4782_v49  ;;  %v6524_v3 = vld [vmem:[#allocation5 + $0x7d4] sm:$0xf] }
 0x1d8   :  { %v6688_v7 = vld [vmem:[#allocation5 + $0xcec] sm:$0xf0]  ;;  %v6308_v45 = vld [vmem:[#allocation5 + $0x114] sm:$0xf] }
 0x1d9   :  { %v6156_v8 = vld [vmem:[#allocation5 + $0xe90] sm:$0xf]  ;;  %v5933_v13 = vor.u32 %v6688_v7, %v5932_v5  ;;  %3608 = vmatpush.bf16.msrb.mxu1 %v5677_v12  ;;  %v5294_v5 = vld [vmem:[#allocation5 + $0x7f0] sm:$0xf0]  ;;  %v5041_v12 = vor.u32 %v6460_v61, %v5038_v1 }
 0x1da   :  { %v6744_v9 = vld [vmem:[#allocation5 + $0xeac] sm:$0xf0]  ;;  %v6324_v7 = vld [vmem:[#allocation5 + $0x194] sm:$0xf] }
 0x1db   :  { %v5388_v10 = vld [vmem:[#allocation5 + $0x890] sm:$0xf]  ;;  %v6157_v17 = vor.u32 %v6744_v9, %v6156_v8  ;;  %3621 = vmatpush.bf16.msrb.mxu2 %v5933_v13  ;;  %v4494_v8 = vld [vmem:[#allocation5 + $0x1b0] sm:$0xf0]  ;;  %v3355_v9 = vpop.f32.mrf.mxu3  ;;  %v5297_v13 = vor.u32 %v6524_v3, %v5294_v5 }
 0x1dc   :  { %v6552_v11 = vld [vmem:[#allocation5 + $0x8ac] sm:$0xf0]  ;;  %v6372_v49 = vld [vmem:[#allocation5 + $0x314] sm:$0xf] }
 0x1dd   :  { %v5644_v59 = vld [vmem:[#allocation5 + $0xa90] sm:$0xf]  ;;  %v5389_v21 = vor.u32 %v6552_v11, %v5388_v10  ;;  %3635 = vmatpush.bf16.msrb.mxu3 %v6157_v17  ;;  %v6452_v17 = vld [vmem:[#allocation5 + $0x594] sm:$0xf] }
 0x1de   :  { %v6616_v15 = vld [vmem:[#allocation5 + $0xaac] sm:$0xf0]  ;;  %v4654_v1 = vld [vmem:[#allocation5 + $0x2f0] sm:$0xf0] }
 0x1df   :  { %v5900_v22 = vld [vmem:[#allocation5 + $0xc90] sm:$0xf]  ;;  %v5645_v31 = vor.u32 %v6616_v15, %v5644_v59  ;;  %3596 = vmatpush.bf16.msrb.mxu0 %v5389_v21  ;;  %v6388_v59 = vld [vmem:[#allocation5 + $0x394] sm:$0xf]  ;;  %v4497_v21 = vor.u32 %v6324_v7, %v4494_v8 }
 0x1e0   :  { %v6680_v23 = vld [vmem:[#allocation5 + $0xcac] sm:$0xf0]  ;;  %v4750_v15 = vld [vmem:[#allocation5 + $0x3b0] sm:$0xf0] }
 0x1e1   :  { %v6124_v24 = vld [vmem:[#allocation5 + $0xe50] sm:$0xf]  ;;  %v5901_v32 = vor.u32 %v6680_v23, %v5900_v22  ;;  %3609 = vmatpush.bf16.msrb.mxu1 %v5645_v31  ;;  %v5006_v22 = vld [vmem:[#allocation5 + $0x5b0] sm:$0xf0]  ;;  %v4753_v31 = vor.u32 %v6388_v59, %v4750_v15 }
 0x1e2   :  { %v6736_v26 = vld [vmem:[#allocation5 + $0xe6c] sm:$0xf0]  ;;  %v6516_v23 = vld [vmem:[#allocation5 + $0x794] sm:$0xf] }
 0x1e3   :  { %v5356_v27 = vld [vmem:[#allocation5 + $0x850] sm:$0xf]  ;;  %v6125_v37 = vor.u32 %v6736_v26, %v6124_v24  ;;  %3622 = vmatpush.bf16.msrb.mxu2 %v5901_v32  ;;  %v5262_v24 = vld [vmem:[#allocation5 + $0x7b0] sm:$0xf0]  ;;  %v5009_v32 = vor.u32 %v6452_v17, %v5006_v22 }
 0x1e4   :  { %v6544_v29 = vld [vmem:[#allocation5 + $0x86c] sm:$0xf0]  ;;  %v6316_v26 = vld [vmem:[#allocation5 + $0x154] sm:$0xf] }
 0x1e5   :  { %v5612_v33 = vld [vmem:[#allocation5 + $0xa50] sm:$0xf]  ;;  %v5357_v38 = vor.u32 %v6544_v29, %v5356_v27  ;;  %3636 = vmatpush.bf16.msrb.mxu3 %v6125_v37  ;;  %v4462_v27 = vld [vmem:[#allocation5 + $0x170] sm:$0xf0]  ;;  %v3342_v29 = vpop.f32.mrf.mxu2 }
 0x1e6   :  { %v6608_v34 = vld [vmem:[#allocation5 + $0xa6c] sm:$0xf0]  ;;  %v6444_v37 = vld [vmem:[#allocation5 + $0x554] sm:$0xf] }
 0x1e7   :  { %v5868_v35 = vld [vmem:[#allocation5 + $0xc50] sm:$0xf]  ;;  %v5613_v14 = vor.u32 %v6608_v34, %v5612_v33  ;;  %3597 = vmatpush.bf16.msrb.mxu0 %v5357_v38  ;;  %v5265_v33 = vor.u32 %v6516_v23, %v5262_v24  ;;  %v6380_v34 = vld [vmem:[#allocation5 + $0x354] sm:$0xf]  ;;  %v4465_v38 = vor.u32 %v6316_v26, %v4462_v27  ;;  %v3418_v26 = vpop.f32.mrf.mxu0  ;;  %v3431_v27 = vpop.f32.mrf.mxu1 }
 0x1e8   :  { %v6672_v39 = vld [vmem:[#allocation5 + $0xc6c] sm:$0xf0]  ;;  %v6428_v3 = vld [vmem:[#allocation5 + $0x4d4] sm:$0xf] }
 0x1e9   :  { %v6092_v43 = vld [vmem:[#allocation5 + $0xe10] sm:$0xf]  ;;  %v5869_v52 = vor.u32 %v6672_v39, %v5868_v35  ;;  %3610 = vmatpush.bf16.msrb.mxu1 %v5613_v14  ;;  %v4718_v35 = vld [vmem:[#allocation5 + $0x370] sm:$0xf0] }
 0x1ea   :  { %v6728_v44 = vld [vmem:[#allocation5 + $0xe2c] sm:$0xf0]  ;;  %v4974_v39 = vld [vmem:[#allocation5 + $0x570] sm:$0xf0] }
 0x1eb   :  { %v5324_v46 = vld [vmem:[#allocation5 + $0x810] sm:$0xf]  ;;  %v6093_v56 = vor.u32 %v6728_v44, %v6092_v43  ;;  %3623 = vmatpush.bf16.msrb.mxu2 %v5869_v52  ;;  %v6508_v43 = vld [vmem:[#allocation5 + $0x754] sm:$0xf]  ;;  %v4977_v48 = vor.u32 %v6444_v37, %v4974_v39 }
 0x1ec   :  { %v6536_v47 = vld [vmem:[#allocation5 + $0x82c] sm:$0xf0]  ;;  %v5230_v44 = vld [vmem:[#allocation5 + $0x770] sm:$0xf0] }
 0x1ed   :  { %v5580_v53 = vld [vmem:[#allocation5 + $0xa10] sm:$0xf]  ;;  %v5325_v57 = vor.u32 %v6536_v47, %v5324_v46  ;;  %3637 = vmatpush.bf16.msrb.mxu3 %v6093_v56  ;;  %v4430_v46 = vld [vmem:[#allocation5 + $0x130] sm:$0xf0]  ;;  %v4721_v47 = vor.u32 %v6380_v34, %v4718_v35  ;;  %v5233_v20 = vor.u32 %v6508_v43, %v5230_v44  ;;  %v3392_v34 = vpop.f32.mrf.mxu2 }
 0x1ee   :  { %v6600_v54 = vld [vmem:[#allocation5 + $0xa2c] sm:$0xf0]  ;;  %v4686_v14 = vld [vmem:[#allocation5 + $0x330] sm:$0xf0] }
 0x1ef   :  { %v5836_v58 = vld [vmem:[#allocation5 + $0xc10] sm:$0xf]  ;;  %v5581_v10 = vor.u32 %v6600_v54, %v5580_v53  ;;  %3598 = vmatpush.bf16.msrb.mxu0 %v5325_v57  ;;  %v6436_v52 = vld [vmem:[#allocation5 + $0x514] sm:$0xf]  ;;  %v4433_v53 = vor.u32 %v6308_v45, %v4430_v46  ;;  %v4689_v61 = vor.u32 %v6372_v49, %v4686_v14 }
 0x1f0   :  { %v6664_v60 = vld [vmem:[#allocation5 + $0xc2c] sm:$0xf0]  ;;  %6270 = vmatmul.msk.bf16.vlgmr.msrb.gmra.mxu3 %vm3094_vm1, %v6973_v41  ;;  %v4942_v54 = vld [vmem:[#allocation5 + $0x530] sm:$0xf0] }
 0x1f1   :  { %v5837_v11 = vor.u32 %v6664_v60, %v5836_v58  ;;  %3643 = vmatpush.bf16.msra.mxu3 %v4529_v63  ;;  %3611 = vmatpush.bf16.msrb.mxu1 %v5581_v10  ;;  %v5198_v56 = vld [vmem:[#allocation5 + $0x730] sm:$0xf0]  ;;  %v3354_v60 = vadd.f32 %v7039_v30, %v7041_v50  ;;  %v4945_v62 = vor.u32 %v6436_v52, %v4942_v54 }
 0x1f2   :  { %3599 = vmatmul.bf16.vlgmr.msrb.gmra.mxu0 %v6971_v40  ;;  %v6300_v57 = vld [vmem:[#allocation5 + $0xd4] sm:$0xf]  ;;  %v5201_v63 = vor.u32 %v6500_v55, %v5198_v56 }
 0x1f3   :  { %3656 = vmatpush.bf16.msra.mxu0 %v4785_v0  ;;  %3624 = vmatpush.bf16.msrb.mxu2 %v5837_v11  ;;  %v4398_v58 = vld [vmem:[#allocation5 + $0xf0] sm:$0xf0] }
 0x1f4   :  { %3612 = vmatmul.bf16.vlgmr.msrb.gmra.mxu1 %v6975_v42  ;;  %v6364_v0 = vld [vmem:[#allocation5 + $0x2d4] sm:$0xf]  ;;  %v4401_v5 = vor.u32 %v6300_v57, %v4398_v58 }
 0x1f5   :  { %3669 = vmatpush.bf16.msra.mxu1 %v5041_v12  ;;  %3644 = vmatpush.bf16.msra.mxu3 %v4497_v21  ;;  %v4910_v7 = vld [vmem:[#allocation5 + $0x4f0] sm:$0xf0]  ;;  %v3367_v12 = vadd.f32 %v7035_v16, %v3354_v60  ;;  %v4657_v30 = vor.u32 %v6364_v0, %v4654_v1 }
 0x1f6   :  { %3625 = vmatmul.bf16.vlgmr.msrb.gmra.mxu2 %v6969_v36  ;;  %v6492_v8 = vld [vmem:[#allocation5 + $0x6d4] sm:$0xf]  ;;  %v4913_v50 = vor.u32 %v6428_v3, %v4910_v7  ;;  %v3420_v7 = vpop.f32.mrf.mxu0 }
 0x1f7   :  { %3682 = vmatpush.bf16.msra.mxu2 %v5297_v13  ;;  %3657 = vmatpush.bf16.msra.mxu0 %v4753_v31  ;;  %v5166_v9 = vld [vmem:[#allocation5 + $0x6f0] sm:$0xf0]  ;;  %v3380_v16 = vadd.f32 %v7037_v25, %v3367_v12 }
 0x1f8   :  { %v6292_v10 = vld [vmem:[#allocation5 + $0x94] sm:$0xf]  ;;  %v5169_v13 = vor.u32 %v6492_v8, %v5166_v9 }
 0x1f9   :  { %3670 = vmatpush.bf16.msra.mxu1 %v5009_v32  ;;  %3645 = vmatpush.bf16.msra.mxu3 %v4465_v38  ;;  %v4366_v11 = vld [vmem:[#allocation5 + $0xb0] sm:$0xf0]  ;;  %v3405_v32 = vpop.f32.mrf.mxu3  ;;  %v3393_v44 = vadd.f32 %v3392_v34, %v3380_v16 }
 0x1fa   :  { %v6356_v59 = vld [vmem:[#allocation5 + $0x294] sm:$0xf]  ;;  %v4369_v21 = vor.u32 %v6292_v10, %v4366_v11 }
 0x1fb   :  { %3683 = vmatpush.bf16.msra.mxu2 %v5265_v33  ;;  %3658 = vmatpush.bf16.msra.mxu0 %v4721_v47  ;;  %v4622_v15 = vld [vmem:[#allocation5 + $0x2b0] sm:$0xf0]  ;;  %v3406_v14 = vadd.f32 %v3405_v32, %v3393_v44 }
 0x1fc   :  { %v6420_v17 = vld [vmem:[#allocation5 + $0x494] sm:$0xf]  ;;  %v4625_v33 = vor.u32 %v6356_v59, %v4622_v15 }
 0x1fd   :  { %3671 = vmatpush.bf16.msra.mxu1 %v4977_v48  ;;  %3646 = vmatpush.bf16.msra.mxu3 %v4433_v53  ;;  %v4878_v22 = vld [vmem:[#allocation5 + $0x4b0] sm:$0xf0] }
 0x1fe   :  { %v6484_v23 = vld [vmem:[#allocation5 + $0x694] sm:$0xf]  ;;  %v4881_v35 = vor.u32 %v6420_v17, %v4878_v22 }
 0x1ff   :  { %3684 = vmatpush.bf16.msra.mxu2 %v5233_v20  ;;  %3659 = vmatpush.bf16.msra.mxu0 %v4689_v61  ;;  %v5134_v24 = vld [vmem:[#allocation5 + $0x6b0] sm:$0xf0]  ;;  %v2091_v20 = vunpack.c.h.b16 %v7024_v28 }
 0x200   :  { %v6284_v29 = vld [vmem:[#allocation5 + $0x54] sm:$0xf]  ;;  %v5137_v37 = vor.u32 %v6484_v23, %v5134_v24 }
 0x201   :  { %3672 = vmatpush.bf16.msra.mxu1 %v4945_v62  ;;  %3647 = vmatpush.bf16.msra.mxu3 %v4401_v5  ;;  %v4334_v31 = vld [vmem:[#allocation5 + $0x70] sm:$0xf0]  ;;  %v3419_v62 = vadd.f32 %v3418_v26, %v3406_v14  ;;  %v2595_v3 = vpack.c.b16 %v2091_v20, %v2091_v20  ;;  %v3433_v5 = vpop.f32.mrf.mxu1  ;;  %v3407_v59 = vpop.f32.mrf.mxu3 }
 0x202   :  { %v6348_v38 = vld [vmem:[#allocation5 + $0x254] sm:$0xf]  ;;  %v4337_v45 = vor.u32 %v6284_v29, %v4334_v31 }
 0x203   :  { %3685 = vmatpush.bf16.msra.mxu2 %v5201_v63  ;;  %3660 = vmatpush.bf16.msra.mxu0 %v4657_v30  ;;  %v4590_v39 = vld [vmem:[#allocation5 + $0x270] sm:$0xf0]  ;;  %v7053_v12 = vadd.f32 %v3431_v27, %v3419_v62  ;;  %v3115_v24 = vsel %vm3098_vm0, %v2595_v3, 0 }
 0x204   :  { %v6412_v43 = vld [vmem:[#allocation5 + $0x454] sm:$0xf]  ;;  %v4593_v52 = vor.u32 %v6348_v38, %v4590_v39 }
 0x205   :  { %3673 = vmatpush.bf16.msra.mxu1 %v4913_v50  ;;  %3648 = vmatpush.bf16.msra.mxu3 %v4369_v21  ;;  %v4846_v46 = vld [vmem:[#allocation5 + $0x470] sm:$0xf0]  ;;  %v3394_v21 = vpop.f32.mrf.mxu2 }
 0x206   :  { %v6476_v47 = vld [vmem:[#allocation5 + $0x654] sm:$0xf]  ;;  %v4849_v56 = vor.u32 %v6412_v43, %v4846_v46 }
 0x207   :  { %3686 = vmatpush.bf16.msra.mxu2 %v5169_v13  ;;  %v5102_v48 = vld [vmem:[#allocation5 + $0x670] sm:$0xf0]  ;;  %3661 = vmatpush.bf16.msra.mxu0 %v4625_v33 }
 0x208   :  { %v6276_v25 = vld [vmem:[#allocation5 + $0x14] sm:$0xf]  ;;  %v5105_v57 = vor.u32 %v6476_v47, %v5102_v48 }
 0x209   :  { %v4302_v49 = vld [vmem:[#allocation5 + $0x30] sm:$0xf0]  ;;  %3674 = vmatpush.bf16.msra.mxu1 %v4881_v35  ;;  %3649 = vmatpush.bf16.msra.mxu3 %v4337_v45 }
 0x20a   :  { %v6588_v53 = vld [vmem:[#allocation5 + $0x9d4] sm:$0xf]  ;;  %v4305_v63 = vor.u32 %v6276_v25, %v4302_v49 }
 0x20b   :  { %v5550_v54 = vld [vmem:[#allocation5 + $0x9f0] sm:$0xf0]  ;;  %3687 = vmatpush.bf16.msra.mxu2 %v5137_v37  ;;  %3662 = vmatpush.bf16.msra.mxu0 %v4593_v52 }
 0x20c   :  { %v6340_v55 = vld [vmem:[#allocation5 + $0x214] sm:$0xf]  ;;  %v5553_v8 = vor.u32 %v6588_v53, %v5550_v54 }
 0x20d   :  { %v4558_v58 = vld [vmem:[#allocation5 + $0x230] sm:$0xf0]  ;;  %3675 = vmatpush.bf16.msra.mxu1 %v4849_v56  ;;  %3650 = vmatpush.bf16.msra.mxu3 %v4305_v63 }
 0x20e   :  { %v6404_v60 = vld [vmem:[#allocation5 + $0x414] sm:$0xf]  ;;  %v4561_v30 = vor.u32 %v6340_v55, %v4558_v58 }
 0x20f   :  { %v4814_v61 = vld [vmem:[#allocation5 + $0x430] sm:$0xf0]  ;;  %3688 = vmatpush.bf16.msra.mxu2 %v5105_v57 }
 0x210   :  { %v6468_v0 = vld [vmem:[#allocation5 + $0x614] sm:$0xf]  ;;  %v4817_v15 = vor.u32 %v6404_v60, %v4814_v61  ;;  %3663 = vmatpush.bf16.msra.mxu0 %v4561_v30  ;;  %3651 = vmatmul.bf16.vlgmr.msra.gmra.mxu3 %v6960_v2 }
 0x211   :  { %v5070_v28 = vld [vmem:[#allocation5 + $0x630] sm:$0xf0]  ;;  %3695 = vmatpush.bf16.msrb.mxu3 %v5553_v8 }
 0x212   :  { %v6652_v1 = vld [vmem:[#allocation5 + $0xbd4] sm:$0xf]  ;;  %v5073_v17 = vor.u32 %v6468_v0, %v5070_v28  ;;  %3676 = vmatpush.bf16.msra.mxu1 %v4817_v15 }
 0x213   :  { %v5806_v9 = vld [vmem:[#allocation5 + $0xbf0] sm:$0xf0]  ;;  %3664 = vmatmul.bf16.vlgmr.msra.gmra.mxu0 %v6965_v18 }
 0x214   :  { %v6716_v10 = vld [vmem:[#allocation5 + $0xdd4] sm:$0xf]  ;;  %v5809_v22 = vor.u32 %v6652_v1, %v5806_v9  ;;  %3689 = vmatpush.bf16.msra.mxu2 %v5073_v17 }
 0x215   :  { %v6062_v11 = vld [vmem:[#allocation5 + $0xdf0] sm:$0xf0]  ;;  %3677 = vmatmul.bf16.vlgmr.msra.gmra.mxu1 %v6956_v51 }
 0x216   :  { %v6580_v50 = vld [vmem:[#allocation5 + $0x994] sm:$0xf]  ;;  %v6065_v23 = vor.u32 %v6716_v10, %v6062_v11  ;;  %3708 = vmatpush.bf16.msrb.mxu0 %v5809_v22 }
 0x217   :  { %v5518_v13 = vld [vmem:[#allocation5 + $0x9b0] sm:$0xf0]  ;;  %3690 = vmatmul.bf16.vlgmr.msra.gmra.mxu2 %v6962_v6 }
 0x218   :  { %v6572_v26 = vld [vmem:[#allocation5 + $0x954] sm:$0xf]  ;;  %v5521_v27 = vor.u32 %v6580_v50, %v5518_v13  ;;  %3721 = vmatpush.bf16.msrb.mxu1 %v6065_v23  ;;  %3735 = vmatpush.bf16.msrb.mxu2 %v3115_v24  ;;  %v3444_v13 = vpop.f32.mrf.mxu1 }
 0x219   :  { %v6644_v29 = vld [vmem:[#allocation5 + $0xb94] sm:$0xf] }
 0x21a   :  { %v5774_v31 = vld [vmem:[#allocation5 + $0xbb0] sm:$0xf0]  ;;  %3696 = vmatpush.bf16.msrb.mxu3 %v5521_v27  ;;  %v3483_v27 = vpop.f32.mrf.mxu0 }
 0x21b   :  { %v6708_v16 = vld [vmem:[#allocation5 + $0xd94] sm:$0xf]  ;;  %v5777_v37 = vor.u32 %v6644_v29, %v5774_v31 }
 0x21c   :  { %v6030_v32 = vld [vmem:[#allocation5 + $0xdb0] sm:$0xf0] }
 0x21d   :  { %v5486_v33 = vld [vmem:[#allocation5 + $0x970] sm:$0xf0]  ;;  %v6033_v38 = vor.u32 %v6708_v16, %v6030_v32  ;;  %3709 = vmatpush.bf16.msrb.mxu0 %v5777_v37 }
 0x21e   :  { %v6764_v34 = vld [vmem:[#allocation5 + $0xf54] sm:$0xf]  ;;  %v5489_v44 = vor.u32 %v6572_v26, %v5486_v33 }
 0x21f   :  { %v6254_v35 = vld [vmem:[#allocation5 + $0xf70] sm:$0xf0]  ;;  %3722 = vmatpush.bf16.msrb.mxu1 %v6033_v38 }
 0x220   :  { %v6564_v39 = vld [vmem:[#allocation5 + $0x914] sm:$0xf]  ;;  %v6257_v45 = vor.u32 %v6764_v34, %v6254_v35  ;;  %3697 = vmatpush.bf16.msrb.mxu3 %v5489_v44 }
 0x221   :  { %v6636_v43 = vld [vmem:[#allocation5 + $0xb54] sm:$0xf] }
 0x222   :  { %v5742_v46 = vld [vmem:[#allocation5 + $0xb70] sm:$0xf0]  ;;  %3736 = vmatpush.bf16.msrb.mxu2 %v6257_v45 }
 0x223   :  { %v6700_v47 = vld [vmem:[#allocation5 + $0xd54] sm:$0xf]  ;;  %v5745_v14 = vor.u32 %v6636_v43, %v5742_v46 }
 0x224   :  { %v5998_v48 = vld [vmem:[#allocation5 + $0xd70] sm:$0xf0] }
 0x225   :  { %v5454_v20 = vld [vmem:[#allocation5 + $0x930] sm:$0xf0]  ;;  %v6001_v52 = vor.u32 %v6700_v47, %v5998_v48  ;;  %3710 = vmatpush.bf16.msrb.mxu0 %v5745_v14  ;;  %v4532_v14 = vld [vmem:[#allocation5 + $0x1d8] sm:$0xf] }
 0x226   :  { %v6756_v25 = vld [vmem:[#allocation5 + $0xf14] sm:$0xf]  ;;  %v5457_v55 = vor.u32 %v6564_v39, %v5454_v20  ;;  %v3457_v39 = vpop.f32.mrf.mxu2  ;;  %v3470_v20 = vpop.f32.mrf.mxu3 }
 0x227   :  { %v6222_v49 = vld [vmem:[#allocation5 + $0xf30] sm:$0xf0]  ;;  %3723 = vmatpush.bf16.msrb.mxu1 %v6001_v52  ;;  %v3458_v48 = vadd.f32 %v3457_v39, %v3444_v13  ;;  %v6337_v52 = vld [vmem:[#allocation5 + $0x1f4] sm:$0xf0] }
 0x228   :  { %v6556_v53 = vld [vmem:[#allocation5 + $0x8d4] sm:$0xf]  ;;  %v6225_v56 = vor.u32 %v6756_v25, %v6222_v49  ;;  %3698 = vmatpush.bf16.msrb.mxu3 %v5457_v55 }
 0x229   :  { %v6628_v54 = vld [vmem:[#allocation5 + $0xb14] sm:$0xf]  ;;  %v3471_v55 = vadd.f32 %v3470_v20, %v3458_v48  ;;  %v6313_v48 = vld [vmem:[#allocation5 + $0x134] sm:$0xf0] }
 0x22a   :  { %v5710_v57 = vld [vmem:[#allocation5 + $0xb30] sm:$0xf0]  ;;  %3737 = vmatpush.bf16.msrb.mxu2 %v6225_v56  ;;  %v3446_v56 = vpop.f32.mrf.mxu1  ;;  %v4692_v20 = vld [vmem:[#allocation5 + $0x318] sm:$0xf] }
 0x22b   :  { %v6692_v58 = vld [vmem:[#allocation5 + $0xd14] sm:$0xf]  ;;  %v5713_v0 = vor.u32 %v6628_v54, %v5710_v57  ;;  %v6401_v54 = vld [vmem:[#allocation5 + $0x3f4] sm:$0xf0] }
 0x22c   :  { %v5966_v60 = vld [vmem:[#allocation5 + $0xd30] sm:$0xf0]  ;;  %v4948_v56 = vld [vmem:[#allocation5 + $0x518] sm:$0xf] }
 0x22d   :  { %v5422_v61 = vld [vmem:[#allocation5 + $0x8f0] sm:$0xf0]  ;;  %v5969_v28 = vor.u32 %v6692_v58, %v5966_v60  ;;  %3711 = vmatpush.bf16.msrb.mxu0 %v5713_v0 }
 0x22e   :  { %v6748_v62 = vld [vmem:[#allocation5 + $0xed4] sm:$0xf]  ;;  %v5425_v5 = vor.u32 %v6556_v53, %v5422_v61  ;;  %v4788_v53 = vld [vmem:[#allocation5 + $0x3d8] sm:$0xf] }
 0x22f   :  { %v6190_v63 = vld [vmem:[#allocation5 + $0xef0] sm:$0xf0]  ;;  %3724 = vmatpush.bf16.msrb.mxu1 %v5969_v28 }
 0x230   :  { %v6548_v1 = vld [vmem:[#allocation5 + $0x894] sm:$0xf]  ;;  %v6193_v7 = vor.u32 %v6748_v62, %v6190_v63  ;;  %3699 = vmatpush.bf16.msrb.mxu3 %v5425_v5  ;;  %v4533_v5 = vor.u32 %v6337_v52, %v4532_v14  ;;  %v6513_v14 = vld [vmem:[#allocation5 + $0x774] sm:$0xf0] }
 0x231   :  { %v6620_v3 = vld [vmem:[#allocation5 + $0xad4] sm:$0xf] }
 0x232   :  { %v5678_v8 = vld [vmem:[#allocation5 + $0xaf0] sm:$0xf0]  ;;  %3738 = vmatpush.bf16.msrb.mxu2 %v6193_v7  ;;  %v4789_v7 = vor.u32 %v6401_v54, %v4788_v53 }
 0x233   :  { %v6684_v9 = vld [vmem:[#allocation5 + $0xcd4] sm:$0xf]  ;;  %v5681_v59 = vor.u32 %v6620_v3, %v5678_v8  ;;  %v3485_v3 = vpop.f32.mrf.mxu0  ;;  %v4500_v8 = vld [vmem:[#allocation5 + $0x198] sm:$0xf] }
 0x234   :  { %v5934_v10 = vld [vmem:[#allocation5 + $0xcf0] sm:$0xf0] }
 0x235   :  { %v5390_v11 = vld [vmem:[#allocation5 + $0x8b0] sm:$0xf0]  ;;  %v5937_v15 = vor.u32 %v6684_v9, %v5934_v10  ;;  %3712 = vmatpush.bf16.msrb.mxu0 %v5681_v59  ;;  %v5044_v9 = vld [vmem:[#allocation5 + $0x5d8] sm:$0xf] }
 0x236   :  { %v6740_v30 = vld [vmem:[#allocation5 + $0xe94] sm:$0xf]  ;;  %v5393_v22 = vor.u32 %v6548_v1, %v5390_v11  ;;  %v7060_v1 = vadd.f32 %v3483_v27, %v3471_v55  ;;  %v6465_v10 = vld [vmem:[#allocation5 + $0x5f4] sm:$0xf0] }
 0x237   :  { %v6158_v50 = vld [vmem:[#allocation5 + $0xeb0] sm:$0xf0]  ;;  %3725 = vmatpush.bf16.msrb.mxu1 %v5937_v15  ;;  %v6329_v11 = vld [vmem:[#allocation5 + $0x1b4] sm:$0xf0] }
 0x238   :  { %v6540_v17 = vld [vmem:[#allocation5 + $0x854] sm:$0xf]  ;;  %v6161_v23 = vor.u32 %v6740_v30, %v6158_v50  ;;  %3700 = vmatpush.bf16.msrb.mxu3 %v5393_v22  ;;  %v4756_v30 = vld [vmem:[#allocation5 + $0x398] sm:$0xf]  ;;  %v5045_v22 = vor.u32 %v6465_v10, %v5044_v9 }
 0x239   :  { %v6612_v21 = vld [vmem:[#allocation5 + $0xa94] sm:$0xf]  ;;  %v6393_v50 = vld [vmem:[#allocation5 + $0x3b4] sm:$0xf0] }
 0x23a   :  { %v5646_v24 = vld [vmem:[#allocation5 + $0xab0] sm:$0xf0]  ;;  %3739 = vmatpush.bf16.msrb.mxu2 %v6161_v23  ;;  %v5300_v59 = vld [vmem:[#allocation5 + $0x7d8] sm:$0xf]  ;;  %v3472_v23 = vpop.f32.mrf.mxu3 }
 0x23b   :  { %v6676_v26 = vld [vmem:[#allocation5 + $0xc94] sm:$0xf]  ;;  %v5649_v33 = vor.u32 %v6612_v21, %v5646_v24  ;;  %v6529_v15 = vld [vmem:[#allocation5 + $0x7f4] sm:$0xf0]  ;;  %v4501_v24 = vor.u32 %v6329_v11, %v4500_v8 }
 0x23c   :  { %v5902_v29 = vld [vmem:[#allocation5 + $0xcb0] sm:$0xf0]  ;;  %v5012_v27 = vld [vmem:[#allocation5 + $0x598] sm:$0xf] }
 0x23d   :  { %v5358_v31 = vld [vmem:[#allocation5 + $0x870] sm:$0xf0]  ;;  %v5905_v34 = vor.u32 %v6676_v26, %v5902_v29  ;;  %3713 = vmatpush.bf16.msrb.mxu0 %v5649_v33  ;;  %v4757_v26 = vor.u32 %v6393_v50, %v4756_v30  ;;  %v4468_v29 = vld [vmem:[#allocation5 + $0x158] sm:$0xf] }
 0x23e   :  { %v6732_v16 = vld [vmem:[#allocation5 + $0xe54] sm:$0xf]  ;;  %v5361_v43 = vor.u32 %v6540_v17, %v5358_v31  ;;  %v3459_v17 = vpop.f32.mrf.mxu2  ;;  %v6457_v31 = vld [vmem:[#allocation5 + $0x5b4] sm:$0xf0] }
 0x23f   :  { %v6126_v32 = vld [vmem:[#allocation5 + $0xe70] sm:$0xf0]  ;;  %3726 = vmatpush.bf16.msrb.mxu1 %v5905_v34  ;;  %v4724_v33 = vld [vmem:[#allocation5 + $0x358] sm:$0xf] }
 0x240   :  { %v6532_v35 = vld [vmem:[#allocation5 + $0x814] sm:$0xf]  ;;  %v6129_v44 = vor.u32 %v6732_v16, %v6126_v32  ;;  %3701 = vmatpush.bf16.msrb.mxu3 %v5361_v43  ;;  %v5301_v16 = vor.u32 %v6529_v15, %v5300_v59  ;;  %v6321_v32 = vld [vmem:[#allocation5 + $0x174] sm:$0xf0]  ;;  %v3496_v15 = vpop.f32.mrf.mxu1 }
 0x241   :  { %v5326_v37 = vld [vmem:[#allocation5 + $0x830] sm:$0xf0]  ;;  %v6385_v34 = vld [vmem:[#allocation5 + $0x374] sm:$0xf0]  ;;  %v4469_v39 = vor.u32 %v6321_v32, %v4468_v29 }
 0x242   :  { %v6604_v38 = vld [vmem:[#allocation5 + $0xa54] sm:$0xf]  ;;  %3740 = vmatpush.bf16.msrb.mxu2 %v6129_v44  ;;  %v5329_v61 = vor.u32 %v6532_v35, %v5326_v37  ;;  %v5268_v35 = vld [vmem:[#allocation5 + $0x798] sm:$0xf]  ;;  %v4725_v43 = vor.u32 %v6385_v34, %v4724_v33 }
 0x243   :  { %v5614_v45 = vld [vmem:[#allocation5 + $0xa70] sm:$0xf0]  ;;  %v6521_v37 = vld [vmem:[#allocation5 + $0x7b4] sm:$0xf0] }
 0x244   :  { %v6668_v46 = vld [vmem:[#allocation5 + $0xc54] sm:$0xf]  ;;  %v5617_v57 = vor.u32 %v6604_v38, %v5614_v45  ;;  %3702 = vmatpush.bf16.msrb.mxu3 %v5329_v61  ;;  %v5013_v38 = vor.u32 %v6457_v31, %v5012_v27  ;;  %v4436_v44 = vld [vmem:[#allocation5 + $0x118] sm:$0xf] }
 0x245   :  { %v5870_v47 = vld [vmem:[#allocation5 + $0xc70] sm:$0xf0]  ;;  %v4980_v45 = vld [vmem:[#allocation5 + $0x558] sm:$0xf]  ;;  %v4437_v53 = vor.u32 %v6313_v48, %v4436_v44 }
 0x246   :  { %v6724_v25 = vld [vmem:[#allocation5 + $0xe14] sm:$0xf]  ;;  %v5873_v58 = vor.u32 %v6668_v46, %v5870_v47  ;;  %3714 = vmatpush.bf16.msrb.mxu0 %v5617_v57  ;;  %v6449_v46 = vld [vmem:[#allocation5 + $0x574] sm:$0xf0]  ;;  %v5269_v47 = vor.u32 %v6521_v37, %v5268_v35 }
 0x247   :  { %v6094_v49 = vld [vmem:[#allocation5 + $0xe30] sm:$0xf0]  ;;  %3703 = vmatmul.bf16.vlgmr.msrb.gmra.mxu3 %v6971_v40  ;;  %v4981_v52 = vor.u32 %v6449_v46, %v4980_v45  ;;  %v4404_v55 = vld [vmem:[#allocation5 + $0xd8] sm:$0xf]  ;;  %v3522_v46 = vpop.f32.mrf.mxu3 }
 0x248   :  { %v6596_v60 = vld [vmem:[#allocation5 + $0xa14] sm:$0xf]  ;;  %v6097_v62 = vor.u32 %v6724_v25, %v6094_v49  ;;  %3727 = vmatpush.bf16.msrb.mxu1 %v5873_v58  ;;  %3760 = vmatpush.bf16.msra.mxu3 %v4789_v7  ;;  %v6377_v25 = vld [vmem:[#allocation5 + $0x334] sm:$0xf0] }
 0x249   :  { %v5582_v63 = vld [vmem:[#allocation5 + $0xa30] sm:$0xf0]  ;;  %v5236_v49 = vld [vmem:[#allocation5 + $0x758] sm:$0xf]  ;;  %v4693_v54 = vor.u32 %v6377_v25, %v4692_v20 }
 0x24a   :  { %v6660_v0 = vld [vmem:[#allocation5 + $0xc14] sm:$0xf]  ;;  %v5585_v13 = vor.u32 %v6596_v60, %v5582_v63  ;;  %3741 = vmatpush.bf16.msrb.mxu2 %v6097_v62  ;;  %v6441_v57 = vld [vmem:[#allocation5 + $0x534] sm:$0xf0]  ;;  %v5237_v58 = vor.u32 %v6513_v14, %v5236_v49 }
 0x24b   :  { %v5838_v28 = vld [vmem:[#allocation5 + $0xc30] sm:$0xf0]  ;;  %v6305_v60 = vld [vmem:[#allocation5 + $0xf4] sm:$0xf0] }
 0x24c   :  { %v5841_v21 = vor.u32 %v6660_v0, %v5838_v28  ;;  %3715 = vmatpush.bf16.msrb.mxu0 %v5585_v13  ;;  %3761 = vmatpush.bf16.msra.mxu3 %v4757_v26  ;;  %v4660_v61 = vld [vmem:[#allocation5 + $0x2d8] sm:$0xf]  ;;  %v4949_v28 = vor.u32 %v6441_v57, %v4948_v56  ;;  %v4405_v3 = vor.u32 %v6305_v60, %v4404_v55 }
 0x24d   :  { %6271 = vmatmul.msk.bf16.vlgmr.msrb.gmra.mxu2 %vm3094_vm1, %v6973_v41  ;;  %v6369_v62 = vld [vmem:[#allocation5 + $0x2f4] sm:$0xf0] }
 0x24e   :  { %3747 = vmatpush.bf16.msra.mxu2 %v4533_v5  ;;  %3728 = vmatpush.bf16.msrb.mxu1 %v5841_v21  ;;  %v5204_v63 = vld [vmem:[#allocation5 + $0x718] sm:$0xf]  ;;  %v4661_v5 = vor.u32 %v6369_v62, %v4660_v61  ;;  %v3497_v21 = vadd.f32 %v3496_v15, %v7060_v1  ;;  %v3509_v1 = vpop.f32.mrf.mxu2 }
 0x24f   :  { %3716 = vmatmul.bf16.vlgmr.msrb.gmra.mxu0 %v6975_v42  ;;  %v6505_v0 = vld [vmem:[#allocation5 + $0x734] sm:$0xf0] }
 0x250   :  { %3773 = vmatpush.bf16.msra.mxu0 %v5045_v22  ;;  %3762 = vmatpush.bf16.msra.mxu3 %v4725_v43  ;;  %v4372_v7 = vld [vmem:[#allocation5 + $0x98] sm:$0xf]  ;;  %v5205_v10 = vor.u32 %v6505_v0, %v5204_v63  ;;  %v3535_v22 = vpop.f32.mrf.mxu0  ;;  %v3510_v45 = vadd.f32 %v3509_v1, %v3497_v21 }
 0x251   :  { %3729 = vmatmul.bf16.vlgmr.msrb.gmra.mxu1 %v6969_v36  ;;  %v4916_v8 = vld [vmem:[#allocation5 + $0x4d8] sm:$0xf] }
 0x252   :  { %3748 = vmatpush.bf16.msra.mxu2 %v4501_v24  ;;  %3786 = vmatpush.bf16.msra.mxu1 %v5301_v16  ;;  %v6433_v9 = vld [vmem:[#allocation5 + $0x4f4] sm:$0xf0] }
 0x253   :  { %v6297_v11 = vld [vmem:[#allocation5 + $0xb4] sm:$0xf0]  ;;  %v4917_v17 = vor.u32 %v6433_v9, %v4916_v8 }
 0x254   :  { %3774 = vmatpush.bf16.msra.mxu0 %v5013_v38  ;;  %3763 = vmatpush.bf16.msra.mxu3 %v4693_v54  ;;  %v4628_v30 = vld [vmem:[#allocation5 + $0x298] sm:$0xf]  ;;  %v4373_v23 = vor.u32 %v6297_v11, %v4372_v7  ;;  %v3523_v54 = vadd.f32 %v3522_v46, %v3510_v45 }
 0x255   :  { %v6361_v50 = vld [vmem:[#allocation5 + $0x2b4] sm:$0xf0] }
 0x256   :  { %3749 = vmatpush.bf16.msra.mxu2 %v4469_v39  ;;  %3787 = vmatpush.bf16.msra.mxu1 %v5269_v47  ;;  %v5172_v13 = vld [vmem:[#allocation5 + $0x6d8] sm:$0xf]  ;;  %v4629_v24 = vor.u32 %v6361_v50, %v4628_v30 }
 0x257   :  { %v6497_v59 = vld [vmem:[#allocation5 + $0x6f4] sm:$0xf0] }
 0x258   :  { %3775 = vmatpush.bf16.msra.mxu0 %v4981_v52  ;;  %3764 = vmatpush.bf16.msra.mxu3 %v4661_v5  ;;  %v4340_v26 = vld [vmem:[#allocation5 + $0x58] sm:$0xf]  ;;  %v5173_v31 = vor.u32 %v6497_v59, %v5172_v13  ;;  %v3537_v63 = vpop.f32.mrf.mxu0 }
 0x259   :  { %v4884_v29 = vld [vmem:[#allocation5 + $0x498] sm:$0xf] }
 0x25a   :  { %3750 = vmatpush.bf16.msra.mxu2 %v4437_v53  ;;  %3788 = vmatpush.bf16.msra.mxu1 %v5237_v58  ;;  %v6425_v27 = vld [vmem:[#allocation5 + $0x4b4] sm:$0xf0]  ;;  %v3498_v58 = vpop.f32.mrf.mxu1 }
 0x25b   :  { %v6289_v16 = vld [vmem:[#allocation5 + $0x74] sm:$0xf0]  ;;  %v4885_v38 = vor.u32 %v6425_v27, %v4884_v29  ;;  %v3524_v29 = vpop.f32.mrf.mxu3 }
 0x25c   :  { %3776 = vmatpush.bf16.msra.mxu0 %v4949_v28  ;;  %v4596_v32 = vld [vmem:[#allocation5 + $0x258] sm:$0xf]  ;;  %3765 = vmatpush.bf16.msra.mxu3 %v4629_v24  ;;  %v4341_v43 = vor.u32 %v6289_v16, %v4340_v26  ;;  %v3511_v26 = vpop.f32.mrf.mxu2 }
 0x25d   :  { %v6353_v33 = vld [vmem:[#allocation5 + $0x274] sm:$0xf0] }
 0x25e   :  { %3751 = vmatpush.bf16.msra.mxu2 %v4405_v3  ;;  %3789 = vmatpush.bf16.msra.mxu1 %v5205_v10  ;;  %v5140_v34 = vld [vmem:[#allocation5 + $0x698] sm:$0xf]  ;;  %v4597_v44 = vor.u32 %v6353_v33, %v4596_v32  ;;  %v7071_v3 = vadd.f32 %v3535_v22, %v3523_v54 }
 0x25f   :  { %v6489_v35 = vld [vmem:[#allocation5 + $0x6b4] sm:$0xf0] }
 0x260   :  { %v7068_v37 = vld [vmem:[#allocation5 + $0xf98] sm:$0xff]  ;;  %3777 = vmatpush.bf16.msra.mxu0 %v4917_v17  ;;  %v5141_v25 = vor.u32 %v6489_v35, %v5140_v34  ;;  %3766 = vmatpush.bf16.msra.mxu3 %v4597_v44  ;;  %v3548_v26 = vpop.f32.mrf.mxu0 }
 0x261   :  { %v4308_v39 = vld [vmem:[#allocation5 + $0x18] sm:$0xf]  ;;  %v2092_v53 = vunpack.c.l.b16 %v7068_v37 }
 0x262   :  { %3752 = vmatpush.bf16.msra.mxu2 %v4373_v23  ;;  %v6281_v47 = vld [vmem:[#allocation5 + $0x34] sm:$0xf0]  ;;  %3790 = vmatpush.bf16.msra.mxu1 %v5173_v31  ;;  %v3561_v29 = vpop.f32.mrf.mxu1 }
 0x263   :  { %v4852_v48 = vld [vmem:[#allocation5 + $0x458] sm:$0xf]  ;;  %v4309_v0 = vor.u32 %v6281_v47, %v4308_v39  ;;  %v2596_v50 = vpack.c.b16 %v2092_v53, %v2092_v53 }
 0x264   :  { %v6417_v20 = vld [vmem:[#allocation5 + $0x474] sm:$0xf0]  ;;  %3778 = vmatpush.bf16.msra.mxu0 %v4885_v38 }
 0x265   :  { %v4564_v49 = vld [vmem:[#allocation5 + $0x218] sm:$0xf]  ;;  %v4853_v60 = vor.u32 %v6417_v20, %v4852_v48  ;;  %v3118_v16 = vsel %vm3098_vm0, %v2596_v50, 0 }
 0x266   :  { %v6345_v14 = vld [vmem:[#allocation5 + $0x234] sm:$0xf0]  ;;  %3753 = vmatpush.bf16.msra.mxu2 %v4341_v43  ;;  %3791 = vmatpush.bf16.msra.mxu1 %v5141_v25 }
 0x267   :  { %v5108_v52 = vld [vmem:[#allocation5 + $0x658] sm:$0xf]  ;;  %v4565_v28 = vor.u32 %v6345_v14, %v4564_v49 }
 0x268   :  { %v6481_v55 = vld [vmem:[#allocation5 + $0x674] sm:$0xf0]  ;;  %3779 = vmatpush.bf16.msra.mxu0 %v4853_v60 }
 0x269   :  { %v5556_v56 = vld [vmem:[#allocation5 + $0x9d8] sm:$0xf]  ;;  %v5109_v8 = vor.u32 %v6481_v55, %v5108_v52  ;;  %3767 = vmatpush.bf16.msra.mxu3 %v4565_v28 }
 0x26a   :  { %v6593_v57 = vld [vmem:[#allocation5 + $0x9f4] sm:$0xf0]  ;;  %3754 = vmatpush.bf16.msra.mxu2 %v4309_v0 }
 0x26b   :  { %v5812_v61 = vld [vmem:[#allocation5 + $0xbd8] sm:$0xf]  ;;  %v5557_v9 = vor.u32 %v6593_v57, %v5556_v56  ;;  %3792 = vmatpush.bf16.msra.mxu1 %v5109_v8 }
 0x26c   :  { %v6657_v62 = vld [vmem:[#allocation5 + $0xbf4] sm:$0xf0]  ;;  %3768 = vmatmul.bf16.vlgmr.msra.gmra.mxu3 %v6965_v18 }
 0x26d   :  { %v4820_v5 = vld [vmem:[#allocation5 + $0x418] sm:$0xf]  ;;  %v5813_v13 = vor.u32 %v6657_v62, %v5812_v61  ;;  %3755 = vmatmul.bf16.vlgmr.msra.gmra.mxu2 %v6960_v2 }
 0x26e   :  { %v6409_v7 = vld [vmem:[#allocation5 + $0x434] sm:$0xf0]  ;;  %3799 = vmatpush.bf16.msrb.mxu2 %v5557_v9 }
 0x26f   :  { %v5076_v10 = vld [vmem:[#allocation5 + $0x618] sm:$0xf]  ;;  %v4821_v21 = vor.u32 %v6409_v7, %v4820_v5  ;;  %3812 = vmatpush.bf16.msrb.mxu3 %v5813_v13 }
 0x270   :  { %v6068_v11 = vld [vmem:[#allocation5 + $0xdd8] sm:$0xf] }
 0x271   :  { %v6721_v30 = vld [vmem:[#allocation5 + $0xdf4] sm:$0xf0]  ;;  %3780 = vmatpush.bf16.msra.mxu0 %v4821_v21 }
 0x272   :  { %v6473_v59 = vld [vmem:[#allocation5 + $0x634] sm:$0xf0]  ;;  %v6069_v22 = vor.u32 %v6721_v30, %v6068_v11 }
 0x273   :  { %v5524_v15 = vld [vmem:[#allocation5 + $0x998] sm:$0xf]  ;;  %v5077_v27 = vor.u32 %v6473_v59, %v5076_v10 }
 0x274   :  { %v6585_v17 = vld [vmem:[#allocation5 + $0x9b4] sm:$0xf0]  ;;  %3781 = vmatmul.bf16.vlgmr.msra.gmra.mxu0 %v6956_v51 }
 0x275   :  { %v5780_v23 = vld [vmem:[#allocation5 + $0xb98] sm:$0xf]  ;;  %v5525_v31 = vor.u32 %v6585_v17, %v5524_v15  ;;  %3825 = vmatpush.bf16.msrb.mxu0 %v6069_v22  ;;  %3793 = vmatpush.bf16.msra.mxu1 %v5077_v27 }
 0x276   :  { %v6649_v24 = vld [vmem:[#allocation5 + $0xbb4] sm:$0xf0] }
 0x277   :  { %v6036_v32 = vld [vmem:[#allocation5 + $0xd98] sm:$0xf]  ;;  %v5781_v34 = vor.u32 %v6649_v24, %v5780_v23  ;;  %3800 = vmatpush.bf16.msrb.mxu2 %v5525_v31 }
 0x278   :  { %v6713_v33 = vld [vmem:[#allocation5 + $0xdb4] sm:$0xf0]  ;;  %3794 = vmatmul.bf16.vlgmr.msra.gmra.mxu1 %v6962_v6 }
 0x279   :  { %v5492_v35 = vld [vmem:[#allocation5 + $0x958] sm:$0xf]  ;;  %v6037_v45 = vor.u32 %v6713_v33, %v6036_v32  ;;  %3813 = vmatpush.bf16.msrb.mxu3 %v5781_v34  ;;  %3839 = vmatpush.bf16.msrb.mxu1 %v3118_v16  ;;  %v3562_v32 = vadd.f32 %v3561_v29, %v3548_v26  ;;  %v4502_v26 = vld [vmem:[#allocation5 + $0x1b8] sm:$0xf0] }
 0x27a   :  { %v6577_v38 = vld [vmem:[#allocation5 + $0x974] sm:$0xf0]  ;;  %v4758_v29 = vld [vmem:[#allocation5 + $0x3b8] sm:$0xf0] }
 0x27b   :  { %v5748_v1 = vld [vmem:[#allocation5 + $0xb58] sm:$0xf]  ;;  %v5493_v46 = vor.u32 %v6577_v38, %v5492_v35  ;;  %3826 = vmatpush.bf16.msrb.mxu0 %v6037_v45 }
 0x27c   :  { %v6641_v39 = vld [vmem:[#allocation5 + $0xb74] sm:$0xf0] }
 0x27d   :  { %v6260_v43 = vld [vmem:[#allocation5 + $0xf58] sm:$0xf]  ;;  %v5749_v20 = vor.u32 %v6641_v39, %v5748_v1  ;;  %3801 = vmatpush.bf16.msrb.mxu2 %v5493_v46 }
 0x27e   :  { %v6769_v44 = vld [vmem:[#allocation5 + $0xf74] sm:$0xf0] }
 0x27f   :  { %v6004_v47 = vld [vmem:[#allocation5 + $0xd58] sm:$0xf]  ;;  %v6261_v25 = vor.u32 %v6769_v44, %v6260_v43  ;;  %3814 = vmatpush.bf16.msrb.mxu3 %v5749_v20 }
 0x280   :  { %v6705_v48 = vld [vmem:[#allocation5 + $0xd74] sm:$0xf0] }
 0x281   :  { %v5460_v49 = vld [vmem:[#allocation5 + $0x918] sm:$0xf]  ;;  %v6005_v56 = vor.u32 %v6705_v48, %v6004_v47  ;;  %3840 = vmatpush.bf16.msrb.mxu1 %v6261_v25  ;;  %v3574_v25 = vpop.f32.mrf.mxu2 }
 0x282   :  { %v6569_v14 = vld [vmem:[#allocation5 + $0x934] sm:$0xf0] }
 0x283   :  { %v5716_v52 = vld [vmem:[#allocation5 + $0xb18] sm:$0xf]  ;;  %v5461_v57 = vor.u32 %v6569_v14, %v5460_v49  ;;  %3827 = vmatpush.bf16.msrb.mxu0 %v6005_v56  ;;  %v3587_v56 = vpop.f32.mrf.mxu3 }
 0x284   :  { %v6633_v53 = vld [vmem:[#allocation5 + $0xb34] sm:$0xf0] }
 0x285   :  { %v6228_v54 = vld [vmem:[#allocation5 + $0xf18] sm:$0xf]  ;;  %v5717_v61 = vor.u32 %v6633_v53, %v5716_v52  ;;  %3802 = vmatpush.bf16.msrb.mxu2 %v5461_v57 }
 0x286   :  { %v6761_v55 = vld [vmem:[#allocation5 + $0xf34] sm:$0xf0] }
 0x287   :  { %v5972_v58 = vld [vmem:[#allocation5 + $0xd18] sm:$0xf]  ;;  %v6229_v62 = vor.u32 %v6761_v55, %v6228_v54  ;;  %3815 = vmatpush.bf16.msrb.mxu3 %v5717_v61  ;;  %v3575_v55 = vadd.f32 %v3574_v25, %v3562_v32  ;;  %v3550_v61 = vpop.f32.mrf.mxu0 }
 0x288   :  { %v6697_v60 = vld [vmem:[#allocation5 + $0xd34] sm:$0xf0]  ;;  %v4950_v61 = vld [vmem:[#allocation5 + $0x538] sm:$0xf0] }
 0x289   :  { %v5428_v63 = vld [vmem:[#allocation5 + $0x8d8] sm:$0xf]  ;;  %v5973_v9 = vor.u32 %v6697_v60, %v5972_v58  ;;  %3841 = vmatpush.bf16.msrb.mxu1 %v6229_v62  ;;  %v6333_v60 = vld [vmem:[#allocation5 + $0x1dc] sm:$0xf]  ;;  %v3576_v32 = vpop.f32.mrf.mxu2 }
 0x28a   :  { %v6561_v0 = vld [vmem:[#allocation5 + $0x8f4] sm:$0xf0] }
 0x28b   :  { %v5684_v28 = vld [vmem:[#allocation5 + $0xad8] sm:$0xf]  ;;  %v5429_v10 = vor.u32 %v6561_v0, %v5428_v63  ;;  %3828 = vmatpush.bf16.msrb.mxu0 %v5973_v9  ;;  %v4534_v63 = vld [vmem:[#allocation5 + $0x1f8] sm:$0xf0] }
 0x28c   :  { %v6625_v5 = vld [vmem:[#allocation5 + $0xaf4] sm:$0xf0]  ;;  %v6397_v0 = vld [vmem:[#allocation5 + $0x3dc] sm:$0xf] }
 0x28d   :  { %v6196_v7 = vld [vmem:[#allocation5 + $0xed8] sm:$0xf]  ;;  %v5685_v50 = vor.u32 %v6625_v5, %v5684_v28  ;;  %3803 = vmatpush.bf16.msrb.mxu2 %v5429_v10  ;;  %v4790_v28 = vld [vmem:[#allocation5 + $0x3f8] sm:$0xf0]  ;;  %v7078_v5 = vadd.f32 %v3587_v56, %v3575_v55 }
 0x28e   :  { %v6753_v8 = vld [vmem:[#allocation5 + $0xef4] sm:$0xf0]  ;;  %v6461_v9 = vld [vmem:[#allocation5 + $0x5dc] sm:$0xf] }
 0x28f   :  { %v5940_v11 = vld [vmem:[#allocation5 + $0xcd8] sm:$0xf]  ;;  %v6197_v13 = vor.u32 %v6753_v8, %v6196_v7  ;;  %3816 = vmatpush.bf16.msrb.mxu3 %v5685_v50  ;;  %v3563_v7 = vpop.f32.mrf.mxu1  ;;  %v5046_v10 = vld [vmem:[#allocation5 + $0x5f8] sm:$0xf0] }
 0x290   :  { %v6689_v30 = vld [vmem:[#allocation5 + $0xcf4] sm:$0xf0]  ;;  %v4438_v56 = vld [vmem:[#allocation5 + $0x138] sm:$0xf0] }
 0x291   :  { %v5396_v59 = vld [vmem:[#allocation5 + $0x898] sm:$0xf]  ;;  %v5941_v22 = vor.u32 %v6689_v30, %v5940_v11  ;;  %3842 = vmatpush.bf16.msrb.mxu1 %v6197_v13  ;;  %v6501_v7 = vld [vmem:[#allocation5 + $0x71c] sm:$0xf] }
 0x292   :  { %v6553_v15 = vld [vmem:[#allocation5 + $0x8b4] sm:$0xf0] }
 0x293   :  { %v5652_v17 = vld [vmem:[#allocation5 + $0xa98] sm:$0xf]  ;;  %v5397_v27 = vor.u32 %v6553_v15, %v5396_v59  ;;  %3829 = vmatpush.bf16.msrb.mxu0 %v5941_v22  ;;  %v4537_v59 = vor.u32 %v6333_v60, %v4534_v63  ;;  %v4793_v15 = vor.u32 %v6397_v0, %v4790_v28  ;;  %v6389_v22 = vld [vmem:[#allocation5 + $0x39c] sm:$0xf] }
 0x294   :  { %v6617_v21 = vld [vmem:[#allocation5 + $0xab4] sm:$0xf0]  ;;  %v6437_v60 = vld [vmem:[#allocation5 + $0x51c] sm:$0xf] }
 0x295   :  { %v6164_v23 = vld [vmem:[#allocation5 + $0xe98] sm:$0xf]  ;;  %v5653_v33 = vor.u32 %v6617_v21, %v5652_v17  ;;  %3804 = vmatpush.bf16.msrb.mxu2 %v5397_v27  ;;  %v6325_v17 = vld [vmem:[#allocation5 + $0x19c] sm:$0xf] }
 0x296   :  { %v6745_v24 = vld [vmem:[#allocation5 + $0xeb4] sm:$0xf0]  ;;  %v6525_v21 = vld [vmem:[#allocation5 + $0x7dc] sm:$0xf] }
 0x297   :  { %v5908_v31 = vld [vmem:[#allocation5 + $0xc98] sm:$0xf]  ;;  %v6165_v34 = vor.u32 %v6745_v24, %v6164_v23  ;;  %3817 = vmatpush.bf16.msrb.mxu3 %v5653_v33  ;;  %v5302_v23 = vld [vmem:[#allocation5 + $0x7f8] sm:$0xf0]  ;;  %v5049_v24 = vor.u32 %v6461_v9, %v5046_v10  ;;  %v4953_v9 = vor.u32 %v6437_v60, %v4950_v61  ;;  %v3613_v32 = vpop.f32.mrf.mxu1 }
 0x298   :  { %v6681_v16 = vld [vmem:[#allocation5 + $0xcb4] sm:$0xf0]  ;;  %v5305_v33 = vor.u32 %v6525_v21, %v5302_v23  ;;  %v6301_v28 = vld [vmem:[#allocation5 + $0xdc] sm:$0xf]  ;;  %v3600_v21 = vpop.f32.mrf.mxu0 }
 0x299   :  { %v5364_v35 = vld [vmem:[#allocation5 + $0x858] sm:$0xf]  ;;  %v5909_v45 = vor.u32 %v6681_v16, %v5908_v31  ;;  %3843 = vmatpush.bf16.msrb.mxu1 %v6165_v34  ;;  %v6453_v31 = vld [vmem:[#allocation5 + $0x59c] sm:$0xf]  ;;  %v3589_v34 = vpop.f32.mrf.mxu3 }
 0x29a   :  { %v6545_v38 = vld [vmem:[#allocation5 + $0x874] sm:$0xf0]  ;;  %v5014_v16 = vld [vmem:[#allocation5 + $0x5b8] sm:$0xf0] }
 0x29b   :  { %v5620_v1 = vld [vmem:[#allocation5 + $0xa58] sm:$0xf]  ;;  %v5365_v46 = vor.u32 %v6545_v38, %v5364_v35  ;;  %3830 = vmatpush.bf16.msrb.mxu0 %v5909_v45  ;;  %v4505_v35 = vor.u32 %v6325_v17, %v4502_v26  ;;  %v4761_v38 = vor.u32 %v6389_v22, %v4758_v29  ;;  %v4470_v45 = vld [vmem:[#allocation5 + $0x178] sm:$0xf0]  ;;  %v3601_v29 = vadd.f32 %v3600_v21, %v7078_v5 }
 0x29c   :  { %v6609_v39 = vld [vmem:[#allocation5 + $0xa74] sm:$0xf0]  ;;  %v4406_v10 = vld [vmem:[#allocation5 + $0xf8] sm:$0xf0] }
 0x29d   :  { %v6132_v43 = vld [vmem:[#allocation5 + $0xe58] sm:$0xf]  ;;  %v5621_v49 = vor.u32 %v6609_v39, %v5620_v1  ;;  %3805 = vmatpush.bf16.msrb.mxu2 %v5365_v46  ;;  %v6317_v1 = vld [vmem:[#allocation5 + $0x15c] sm:$0xf] }
 0x29e   :  { %v6737_v44 = vld [vmem:[#allocation5 + $0xe74] sm:$0xf0]  ;;  %v6517_v39 = vld [vmem:[#allocation5 + $0x79c] sm:$0xf] }
 0x29f   :  { %v5332_v47 = vld [vmem:[#allocation5 + $0x818] sm:$0xf]  ;;  %v6133_v14 = vor.u32 %v6737_v44, %v6132_v43  ;;  %3818 = vmatpush.bf16.msrb.mxu3 %v5621_v49  ;;  %v5270_v43 = vld [vmem:[#allocation5 + $0x7b8] sm:$0xf0]  ;;  %v5017_v44 = vor.u32 %v6453_v31, %v5014_v16  ;;  %v4473_v49 = vor.u32 %v6317_v1, %v4470_v45 }
 0x2a0   :  { %v5876_v48 = vld [vmem:[#allocation5 + $0xc58] sm:$0xf]  ;;  %v6381_v46 = vld [vmem:[#allocation5 + $0x35c] sm:$0xf]  ;;  %v5273_v25 = vor.u32 %v6517_v39, %v5270_v43 }
 0x2a1   :  { %v6673_v20 = vld [vmem:[#allocation5 + $0xc74] sm:$0xf0]  ;;  %3844 = vmatpush.bf16.msrb.mxu1 %v6133_v14  ;;  %v6293_v23 = vld [vmem:[#allocation5 + $0x9c] sm:$0xf] }
 0x2a2   :  { %v6537_v52 = vld [vmem:[#allocation5 + $0x834] sm:$0xf0]  ;;  %v5877_v62 = vor.u32 %v6673_v20, %v5876_v48  ;;  %v6445_v48 = vld [vmem:[#allocation5 + $0x55c] sm:$0xf] }
 0x2a3   :  { %v5588_v53 = vld [vmem:[#allocation5 + $0xa18] sm:$0xf]  ;;  %v5333_v8 = vor.u32 %v6537_v52, %v5332_v47  ;;  %v4726_v47 = vld [vmem:[#allocation5 + $0x378] sm:$0xf0] }
 0x2a4   :  { %v6601_v54 = vld [vmem:[#allocation5 + $0xa34] sm:$0xf0]  ;;  %3831 = vmatpush.bf16.msrb.mxu0 %v5877_v62  ;;  %v4982_v20 = vld [vmem:[#allocation5 + $0x578] sm:$0xf0]  ;;  %v4729_v14 = vor.u32 %v6381_v46, %v4726_v47 }
 0x2a5   :  { %v6100_v57 = vld [vmem:[#allocation5 + $0xe18] sm:$0xf]  ;;  %v5589_v11 = vor.u32 %v6601_v54, %v5588_v53  ;;  %3806 = vmatpush.bf16.msrb.mxu2 %v5333_v8  ;;  %v6309_v52 = vld [vmem:[#allocation5 + $0x11c] sm:$0xf]  ;;  %v4985_v55 = vor.u32 %v6445_v48, %v4982_v20 }
 0x2a6   :  { %v6729_v58 = vld [vmem:[#allocation5 + $0xe34] sm:$0xf0]  ;;  %v6509_v53 = vld [vmem:[#allocation5 + $0x75c] sm:$0xf]  ;;  %v4441_v63 = vor.u32 %v6309_v52, %v4438_v56 }
 0x2a7   :  { %v6101_v30 = vor.u32 %v6729_v58, %v6100_v57  ;;  %v5844_v50 = vld [vmem:[#allocation5 + $0xc18] sm:$0xf]  ;;  %3819 = vmatpush.bf16.msrb.mxu3 %v5589_v11  ;;  %v5238_v54 = vld [vmem:[#allocation5 + $0x778] sm:$0xf0] }
 0x2a8   :  { %v6665_v13 = vld [vmem:[#allocation5 + $0xc34] sm:$0xf0]  ;;  %3807 = vmatmul.bf16.vlgmr.msrb.gmra.mxu2 %v6971_v40  ;;  %v6373_v57 = vld [vmem:[#allocation5 + $0x31c] sm:$0xf]  ;;  %v5241_v62 = vor.u32 %v6509_v53, %v5238_v54 }
 0x2a9   :  { %v5845_v27 = vor.u32 %v6665_v13, %v5844_v50  ;;  %3845 = vmatpush.bf16.msrb.mxu1 %v6101_v30  ;;  %3864 = vmatpush.bf16.msra.mxu2 %v4793_v15  ;;  %v4694_v58 = vld [vmem:[#allocation5 + $0x338] sm:$0xf0]  ;;  %v4409_v15 = vor.u32 %v6301_v28, %v4406_v10 }
 0x2aa   :  { %3820 = vmatmul.bf16.vlgmr.msrb.gmra.mxu3 %v6975_v42  ;;  %v4697_v0 = vor.u32 %v6373_v57, %v4694_v58  ;;  %v5206_v8 = vld [vmem:[#allocation5 + $0x738] sm:$0xf0] }
 0x2ab   :  { %3877 = vmatpush.bf16.msra.mxu3 %v5049_v24  ;;  %3832 = vmatpush.bf16.msrb.mxu0 %v5845_v27  ;;  %v6365_v11 = vld [vmem:[#allocation5 + $0x2dc] sm:$0xf] }
 0x2ac   :  { %6272 = vmatmul.msk.bf16.vlgmr.msrb.gmra.mxu1 %vm3094_vm1, %v6973_v41  ;;  %v4662_v30 = vld [vmem:[#allocation5 + $0x2f8] sm:$0xf0] }
 0x2ad   :  { %3851 = vmatpush.bf16.msra.mxu1 %v4537_v59  ;;  %3865 = vmatpush.bf16.msra.mxu2 %v4761_v38  ;;  %v6429_v50 = vld [vmem:[#allocation5 + $0x4dc] sm:$0xf]  ;;  %v5209_v59 = vor.u32 %v6501_v7, %v5206_v8  ;;  %v4665_v17 = vor.u32 %v6365_v11, %v4662_v30  ;;  %v2093_v8 = vunpack.c.h.b16 %v7068_v37 }
 0x2ae   :  { %3833 = vmatmul.bf16.vlgmr.msrb.gmra.mxu0 %v6969_v36  ;;  %v4918_v13 = vld [vmem:[#allocation5 + $0x4f8] sm:$0xf0] }
 0x2af   :  { %3890 = vmatpush.bf16.msra.mxu0 %v5305_v33  ;;  %3878 = vmatpush.bf16.msra.mxu3 %v5017_v44  ;;  %v6493_v24 = vld [vmem:[#allocation5 + $0x6dc] sm:$0xf]  ;;  %v4921_v22 = vor.u32 %v6429_v50, %v4918_v13  ;;  %v3615_v50 = vpop.f32.mrf.mxu1  ;;  %v3955_v13 = vmul.f32 %v7010_v4, %v7010_v4 }
 0x2b0   :  { %v5174_v26 = vld [vmem:[#allocation5 + $0x6f8] sm:$0xf0] }
 0x2b1   :  { %3852 = vmatpush.bf16.msra.mxu1 %v4505_v35  ;;  %3866 = vmatpush.bf16.msra.mxu2 %v4729_v14  ;;  %v4374_v27 = vld [vmem:[#allocation5 + $0xb8] sm:$0xf0]  ;;  %v3614_v35 = vadd.f32 %v3613_v32, %v3601_v29  ;;  %v5177_v38 = vor.u32 %v6493_v24, %v5174_v26  ;;  %v3639_v14 = vpop.f32.mrf.mxu3 }
 0x2b2   :  { %v6357_v31 = vld [vmem:[#allocation5 + $0x29c] sm:$0xf]  ;;  %v4377_v1 = vor.u32 %v6293_v23, %v4374_v27 }
 0x2b3   :  { %3891 = vmatpush.bf16.msra.mxu0 %v5273_v25  ;;  %3879 = vmatpush.bf16.msra.mxu3 %v4985_v55  ;;  %v4630_v16 = vld [vmem:[#allocation5 + $0x2b8] sm:$0xf0] }
 0x2b4   :  { %v6421_v33 = vld [vmem:[#allocation5 + $0x49c] sm:$0xf]  ;;  %v4633_v39 = vor.u32 %v6357_v31, %v4630_v16  ;;  %v2597_v31 = vpack.c.b16 %v2093_v8, %v2093_v8 }
 0x2b5   :  { %3853 = vmatpush.bf16.msra.mxu1 %v4473_v49  ;;  %3867 = vmatpush.bf16.msra.mxu2 %v4697_v0  ;;  %v4886_v34 = vld [vmem:[#allocation5 + $0x4b8] sm:$0xf0]  ;;  %v3626_v49 = vpop.f32.mrf.mxu2 }
 0x2b6   :  { %v6285_v43 = vld [vmem:[#allocation5 + $0x5c] sm:$0xf]  ;;  %v4889_v46 = vor.u32 %v6421_v33, %v4886_v34  ;;  %v3627_v55 = vadd.f32 %v3626_v49, %v3614_v35 }
 0x2b7   :  { %3892 = vmatpush.bf16.msra.mxu0 %v5241_v62  ;;  %3880 = vmatpush.bf16.msra.mxu3 %v4953_v9  ;;  %v6485_v44 = vld [vmem:[#allocation5 + $0x69c] sm:$0xf]  ;;  %v3602_v62 = vpop.f32.mrf.mxu0 }
 0x2b8   :  { %v5142_v45 = vld [vmem:[#allocation5 + $0x6b8] sm:$0xf0]  ;;  %v3640_v9 = vadd.f32 %v3639_v14, %v3627_v55 }
 0x2b9   :  { %3854 = vmatpush.bf16.msra.mxu1 %v4441_v63  ;;  %3868 = vmatpush.bf16.msra.mxu2 %v4665_v17  ;;  %v4342_v47 = vld [vmem:[#allocation5 + $0x78] sm:$0xf0]  ;;  %v5145_v52 = vor.u32 %v6485_v44, %v5142_v45  ;;  %v3641_v44 = vpop.f32.mrf.mxu3 }
 0x2ba   :  { %v6349_v5 = vld [vmem:[#allocation5 + $0x25c] sm:$0xf]  ;;  %v4345_v56 = vor.u32 %v6285_v43, %v4342_v47  ;;  %v3959_v23 = vmul.f32 %v3640_v9, %v3640_v9  ;;  %v3121_v47 = vsel %vm3098_vm0, %v2597_v31, 0 }
 0x2bb   :  { %3893 = vmatpush.bf16.msra.mxu0 %v5209_v59  ;;  %3881 = vmatpush.bf16.msra.mxu3 %v4921_v22  ;;  %v4598_v48 = vld [vmem:[#allocation5 + $0x278] sm:$0xf0] }
 0x2bc   :  { %v6413_v20 = vld [vmem:[#allocation5 + $0x45c] sm:$0xf]  ;;  %v4601_v57 = vor.u32 %v6349_v5, %v4598_v48  ;;  %v7089_v16 = vadd.f32 %v3959_v23, %v3955_v13 }
 0x2bd   :  { %3855 = vmatpush.bf16.msra.mxu1 %v4409_v15  ;;  %v4854_v25 = vld [vmem:[#allocation5 + $0x478] sm:$0xf0]  ;;  %3869 = vmatpush.bf16.msra.mxu2 %v4633_v39  ;;  %v3628_v45 = vpop.f32.mrf.mxu2 }
 0x2be   :  { %v6277_v53 = vld [vmem:[#allocation5 + $0x1c] sm:$0xf]  ;;  %v4857_v63 = vor.u32 %v6413_v20, %v4854_v25 }
 0x2bf   :  { %3894 = vmatpush.bf16.msra.mxu0 %v5177_v38  ;;  %v4310_v54 = vld [vmem:[#allocation5 + $0x38] sm:$0xf0]  ;;  %3882 = vmatpush.bf16.msra.mxu3 %v4889_v46 }
 0x2c0   :  { %v6341_v58 = vld [vmem:[#allocation5 + $0x21c] sm:$0xf]  ;;  %v4313_v24 = vor.u32 %v6277_v53, %v4310_v54 }
 0x2c1   :  { %3856 = vmatpush.bf16.msra.mxu1 %v4377_v1  ;;  %v6477_v60 = vld [vmem:[#allocation5 + $0x65c] sm:$0xf]  ;;  %3870 = vmatpush.bf16.msra.mxu2 %v4601_v57 }
 0x2c2   :  { %v5110_v61 = vld [vmem:[#allocation5 + $0x678] sm:$0xf0] }
 0x2c3   :  { %v4566_v0 = vld [vmem:[#allocation5 + $0x238] sm:$0xf0]  ;;  %3895 = vmatpush.bf16.msra.mxu0 %v5145_v52  ;;  %v5113_v59 = vor.u32 %v6477_v60, %v5110_v61  ;;  %3883 = vmatpush.bf16.msra.mxu3 %v4857_v63 }
 0x2c4   :  { %v6405_v28 = vld [vmem:[#allocation5 + $0x41c] sm:$0xf]  ;;  %v4569_v26 = vor.u32 %v6341_v58, %v4566_v0 }
 0x2c5   :  { %v4822_v7 = vld [vmem:[#allocation5 + $0x438] sm:$0xf0]  ;;  %3857 = vmatpush.bf16.msra.mxu1 %v4345_v56 }
 0x2c6   :  { %v6589_v10 = vld [vmem:[#allocation5 + $0x9dc] sm:$0xf]  ;;  %v4825_v29 = vor.u32 %v6405_v28, %v4822_v7  ;;  %3871 = vmatpush.bf16.msra.mxu2 %v4569_v26 }
 0x2c7   :  { %v5558_v11 = vld [vmem:[#allocation5 + $0x9f8] sm:$0xf0]  ;;  %3896 = vmatpush.bf16.msra.mxu0 %v5113_v59 }
 0x2c8   :  { %v6653_v30 = vld [vmem:[#allocation5 + $0xbdc] sm:$0xf]  ;;  %v5561_v27 = vor.u32 %v6589_v10, %v5558_v11  ;;  %3884 = vmatpush.bf16.msra.mxu3 %v4825_v29 }
 0x2c9   :  { %v5814_v15 = vld [vmem:[#allocation5 + $0xbf8] sm:$0xf0]  ;;  %3858 = vmatpush.bf16.msra.mxu1 %v4313_v24  ;;  %3872 = vmatmul.bf16.vlgmr.msra.gmra.mxu2 %v6965_v18 }
 0x2ca   :  { %v6717_v17 = vld [vmem:[#allocation5 + $0xddc] sm:$0xf]  ;;  %v5817_v32 = vor.u32 %v6653_v30, %v5814_v15 }
 0x2cb   :  { %v6070_v21 = vld [vmem:[#allocation5 + $0xdf8] sm:$0xf0]  ;;  %3885 = vmatmul.bf16.vlgmr.msra.gmra.mxu3 %v6956_v51 }
 0x2cc   :  { %v6469_v22 = vld [vmem:[#allocation5 + $0x61c] sm:$0xf]  ;;  %v6073_v4 = vor.u32 %v6717_v17, %v6070_v21  ;;  %3916 = vmatpush.bf16.msrb.mxu2 %v5817_v32  ;;  %3859 = vmatmul.bf16.vlgmr.msra.gmra.mxu1 %v6960_v2 }
 0x2cd   :  { %v5078_v37 = vld [vmem:[#allocation5 + $0x638] sm:$0xf0]  ;;  %3903 = vmatpush.bf16.msrb.mxu1 %v5561_v27 }
 0x2ce   :  { %v6581_v33 = vld [vmem:[#allocation5 + $0x99c] sm:$0xf]  ;;  %v5081_v38 = vor.u32 %v6469_v22, %v5078_v37  ;;  %3929 = vmatpush.bf16.msrb.mxu3 %v6073_v4 }
 0x2cf   :  { %v5526_v34 = vld [vmem:[#allocation5 + $0x9b8] sm:$0xf0] }
 0x2d0   :  { %v6645_v35 = vld [vmem:[#allocation5 + $0xb9c] sm:$0xf]  ;;  %v5529_v46 = vor.u32 %v6581_v33, %v5526_v34  ;;  %3897 = vmatpush.bf16.msra.mxu0 %v5081_v38  ;;  %v7096_v34 = vpop.f32.mrf.mxu0 }
 0x2d1   :  { %v5782_v1 = vld [vmem:[#allocation5 + $0xbb8] sm:$0xf0] }
 0x2d2   :  { %v6709_v39 = vld [vmem:[#allocation5 + $0xd9c] sm:$0xf]  ;;  %v5785_v20 = vor.u32 %v6645_v35, %v5782_v1  ;;  %3904 = vmatpush.bf16.msrb.mxu1 %v5529_v46  ;;  %v7098_v35 = vpop.f32.mrf.mxu1 }
 0x2d3   :  { %v6038_v43 = vld [vmem:[#allocation5 + $0xdb8] sm:$0xf0]  ;;  %3898 = vmatmul.bf16.vlgmr.msra.gmra.mxu0 %v6962_v6 }
 0x2d4   :  { %v6765_v5 = vld [vmem:[#allocation5 + $0xf5c] sm:$0xf]  ;;  %v6041_v25 = vor.u32 %v6709_v39, %v6038_v43  ;;  %3943 = vmatpush.bf16.msrb.mxu0 %v3121_v47  ;;  %3917 = vmatpush.bf16.msrb.mxu2 %v5785_v20 }
 0x2d5   :  { %v6262_v48 = vld [vmem:[#allocation5 + $0xf78] sm:$0xf0] }
 0x2d6   :  { %v6573_v49 = vld [vmem:[#allocation5 + $0x95c] sm:$0xf]  ;;  %v6265_v56 = vor.u32 %v6765_v5, %v6262_v48  ;;  %3930 = vmatpush.bf16.msrb.mxu3 %v6041_v25 }
 0x2d7   :  { %v5494_v14 = vld [vmem:[#allocation5 + $0x978] sm:$0xf0] }
 0x2d8   :  { %v6637_v52 = vld [vmem:[#allocation5 + $0xb5c] sm:$0xf]  ;;  %v5497_v57 = vor.u32 %v6573_v49, %v5494_v14  ;;  %3944 = vmatpush.bf16.msrb.mxu0 %v6265_v56  ;;  %v3652_v14 = vpop.f32.mrf.mxu3 }
 0x2d9   :  { %v5750_v53 = vld [vmem:[#allocation5 + $0xb78] sm:$0xf0] }
 0x2da   :  { %v6701_v54 = vld [vmem:[#allocation5 + $0xd5c] sm:$0xf]  ;;  %v5753_v61 = vor.u32 %v6637_v52, %v5750_v53  ;;  %3905 = vmatpush.bf16.msrb.mxu1 %v5497_v57  ;;  %v7100_v52 = vpop.f32.mrf.mxu2 }
 0x2db   :  { %v6006_v55 = vld [vmem:[#allocation5 + $0xd78] sm:$0xf0] }
 0x2dc   :  { %v6757_v58 = vld [vmem:[#allocation5 + $0xf1c] sm:$0xf]  ;;  %v6009_v62 = vor.u32 %v6701_v54, %v6006_v55  ;;  %3918 = vmatpush.bf16.msrb.mxu2 %v5753_v61 }
 0x2dd   :  { %v6230_v60 = vld [vmem:[#allocation5 + $0xf38] sm:$0xf0] }
 0x2de   :  { %v6565_v63 = vld [vmem:[#allocation5 + $0x91c] sm:$0xf]  ;;  %v6233_v51 = vor.u32 %v6757_v58, %v6230_v60  ;;  %3931 = vmatpush.bf16.msrb.mxu3 %v6009_v62 }
 0x2df   :  { %v5462_v0 = vld [vmem:[#allocation5 + $0x938] sm:$0xf0] }
 0x2e0   :  { %v6629_v28 = vld [vmem:[#allocation5 + $0xb1c] sm:$0xf]  ;;  %v5465_v9 = vor.u32 %v6565_v63, %v5462_v0  ;;  %3945 = vmatpush.bf16.msrb.mxu0 %v6233_v51 }
 0x2e1   :  { %v5718_v18 = vld [vmem:[#allocation5 + $0xb38] sm:$0xf0] }
 0x2e2   :  { %v6693_v7 = vld [vmem:[#allocation5 + $0xd1c] sm:$0xf]  ;;  %v5721_v30 = vor.u32 %v6629_v28, %v5718_v18  ;;  %3906 = vmatpush.bf16.msrb.mxu1 %v5465_v9  ;;  %v3667_v28 = vpop.f32.mrf.mxu0  ;;  %v3680_v18 = vpop.f32.mrf.mxu1 }
 0x2e3   :  { %v5974_v8 = vld [vmem:[#allocation5 + $0xd38] sm:$0xf0]  ;;  %v4003_v18 = vld [vmem:[#allocation7 + $0x120] sm:$0xff] }
 0x2e4   :  { %v6749_v10 = vld [vmem:[#allocation5 + $0xedc] sm:$0xf]  ;;  %v5977_v50 = vor.u32 %v6693_v7, %v5974_v8  ;;  %3919 = vmatpush.bf16.msrb.mxu2 %v5721_v30  ;;  %v3995_v30 = vld [vmem:[#allocation7 + $0xe0] sm:$0xff] }
 0x2e5   :  { %v6198_v11 = vld [vmem:[#allocation5 + $0xef8] sm:$0xf0] }
 0x2e6   :  { %v6557_v13 = vld [vmem:[#allocation5 + $0x8dc] sm:$0xf]  ;;  %v6201_v23 = vor.u32 %v6749_v10, %v6198_v11  ;;  %3932 = vmatpush.bf16.msrb.mxu3 %v5977_v50  ;;  %v3997_v10 = vld [vmem:[#allocation7 + $0xf0] sm:$0xff]  ;;  %v3654_v50 = vpop.f32.mrf.mxu3 }
 0x2e7   :  { %v5430_v59 = vld [vmem:[#allocation5 + $0x8f8] sm:$0xf0]  ;;  %v4029_v11 = vld [vmem:[#allocation7 + $0x1f0] sm:$0xff] }
 0x2e8   :  { %v6621_v15 = vld [vmem:[#allocation5 + $0xadc] sm:$0xf]  ;;  %v5433_v6 = vor.u32 %v6557_v13, %v5430_v59  ;;  %3946 = vmatpush.bf16.msrb.mxu0 %v6201_v23  ;;  %v3693_v13 = vpop.f32.mrf.mxu2  ;;  %v4027_v59 = vld [vmem:[#allocation7 + $0x1e0] sm:$0xff]  ;;  %v3666_v23 = vadd.f32 %v7096_v34, %v3652_v14  ;;  %v3981_v34 = vld [vmem:[#allocation7 + $0x70] sm:$0xff] }
 0x2e9   :  { %v5686_v17 = vld [vmem:[#allocation5 + $0xaf8] sm:$0xf0]  ;;  %v3999_v13 = vld [vmem:[#allocation7 + $0x100] sm:$0xff] }
 0x2ea   :  { %v6685_v2 = vld [vmem:[#allocation5 + $0xcdc] sm:$0xf]  ;;  %v5689_v22 = vor.u32 %v6621_v15, %v5686_v17  ;;  %3907 = vmatpush.bf16.msrb.mxu1 %v5433_v6  ;;  %v3993_v15 = vld [vmem:[#allocation7 + $0xd0] sm:$0xff]  ;;  %v4023_v6 = vld [vmem:[#allocation7 + $0x1c0] sm:$0xff] }
 0x2eb   :  { %v5942_v21 = vld [vmem:[#allocation5 + $0xcf8] sm:$0xf0]  ;;  %v4025_v17 = vld [vmem:[#allocation7 + $0x1d0] sm:$0xff] }
 0x2ec   :  { %v6741_v24 = vld [vmem:[#allocation5 + $0xe9c] sm:$0xf]  ;;  %v5945_v37 = vor.u32 %v6685_v2, %v5942_v21  ;;  %3920 = vmatpush.bf16.msrb.mxu2 %v5689_v22  ;;  %v3991_v2 = vld [vmem:[#allocation7 + $0xc0] sm:$0xff]  ;;  %v4061_v21 = vld [vmem:[#allocation7 + $0x2f0] sm:$0xff] }
 0x2ed   :  { %v6166_v26 = vld [vmem:[#allocation5 + $0xeb8] sm:$0xf0]  ;;  %v3987_v22 = vld [vmem:[#allocation7 + $0xa0] sm:$0xff] }
 0x2ee   :  { %v6549_v29 = vld [vmem:[#allocation5 + $0x89c] sm:$0xf]  ;;  %v6169_v38 = vor.u32 %v6741_v24, %v6166_v26  ;;  %3933 = vmatpush.bf16.msrb.mxu3 %v5945_v37  ;;  %v3989_v24 = vld [vmem:[#allocation7 + $0xb0] sm:$0xff] }
 0x2ef   :  { %v5398_v27 = vld [vmem:[#allocation5 + $0x8b8] sm:$0xf0]  ;;  %v4021_v26 = vld [vmem:[#allocation7 + $0x1b0] sm:$0xff] }
 0x2f0   :  { %v6613_v31 = vld [vmem:[#allocation5 + $0xa9c] sm:$0xf]  ;;  %v5401_v1 = vor.u32 %v6549_v29, %v5398_v27  ;;  %3947 = vmatpush.bf16.msrb.mxu0 %v6169_v38  ;;  %v3985_v37 = vld [vmem:[#allocation7 + $0x90] sm:$0xff]  ;;  %v4055_v29 = vld [vmem:[#allocation7 + $0x2c0] sm:$0xff]  ;;  %v3730_v38 = vpop.f32.mrf.mxu1  ;;  %v3743_v14 = vpop.f32.mrf.mxu2 }
 0x2f1   :  { %v5654_v32 = vld [vmem:[#allocation5 + $0xab8] sm:$0xf0]  ;;  %v4017_v27 = vld [vmem:[#allocation7 + $0x190] sm:$0xff] }
 0x2f2   :  { %v6677_v4 = vld [vmem:[#allocation5 + $0xc9c] sm:$0xf]  ;;  %v5657_v44 = vor.u32 %v6613_v31, %v5654_v32  ;;  %3908 = vmatpush.bf16.msrb.mxu1 %v5401_v1  ;;  %v3983_v31 = vld [vmem:[#allocation7 + $0x80] sm:$0xff]  ;;  %v4053_v32 = vld [vmem:[#allocation7 + $0x2b0] sm:$0xff] }
 0x2f3   :  { %v5910_v33 = vld [vmem:[#allocation5 + $0xcb8] sm:$0xf0]  ;;  %v4051_v1 = vld [vmem:[#allocation7 + $0x2a0] sm:$0xff] }
 0x2f4   :  { %v6733_v39 = vld [vmem:[#allocation5 + $0xe5c] sm:$0xf]  ;;  %v5913_v45 = vor.u32 %v6677_v4, %v5910_v33  ;;  %3921 = vmatpush.bf16.msrb.mxu2 %v5657_v44  ;;  %v4015_v33 = vld [vmem:[#allocation7 + $0x180] sm:$0xff]  ;;  %v3704_v44 = vpop.f32.mrf.mxu3 }
 0x2f5   :  { %v6134_v43 = vld [vmem:[#allocation5 + $0xe78] sm:$0xf0] }
 0x2f6   :  { %v6541_v46 = vld [vmem:[#allocation5 + $0x85c] sm:$0xf]  ;;  %v6137_v49 = vor.u32 %v6733_v39, %v6134_v43  ;;  %3934 = vmatpush.bf16.msrb.mxu3 %v5913_v45  ;;  %v4013_v39 = vld [vmem:[#allocation7 + $0x170] sm:$0xff]  ;;  %v3979_v43 = vld [vmem:[#allocation7 + $0x60] sm:$0xff] }
 0x2f7   :  { %v5366_v47 = vld [vmem:[#allocation5 + $0x878] sm:$0xf0]  ;;  %v4049_v45 = vld [vmem:[#allocation7 + $0x290] sm:$0xff] }
 0x2f8   :  { %v6605_v5 = vld [vmem:[#allocation5 + $0xa5c] sm:$0xf]  ;;  %v5369_v53 = vor.u32 %v6541_v46, %v5366_v47  ;;  %3948 = vmatpush.bf16.msrb.mxu0 %v6137_v49  ;;  %v4011_v47 = vld [vmem:[#allocation7 + $0x160] sm:$0xff] }
 0x2f9   :  { %v5622_v48 = vld [vmem:[#allocation5 + $0xa78] sm:$0xf0]  ;;  %v3975_v49 = vld [vmem:[#allocation7 + $0x40] sm:$0xff] }
 0x2fa   :  { %v6669_v20 = vld [vmem:[#allocation5 + $0xc5c] sm:$0xf]  ;;  %v5625_v56 = vor.u32 %v6605_v5, %v5622_v48  ;;  %3909 = vmatpush.bf16.msrb.mxu1 %v5369_v53  ;;  %v3977_v5 = vld [vmem:[#allocation7 + $0x50] sm:$0xff]  ;;  %v4047_v48 = vld [vmem:[#allocation7 + $0x280] sm:$0xff] }
 0x2fb   :  { %v5878_v25 = vld [vmem:[#allocation5 + $0xc78] sm:$0xf0] }
 0x2fc   :  { %v6725_v54 = vld [vmem:[#allocation5 + $0xe1c] sm:$0xf]  ;;  %v5881_v57 = vor.u32 %v6669_v20, %v5878_v25  ;;  %3922 = vmatpush.bf16.msrb.mxu2 %v5625_v56  ;;  %v4009_v25 = vld [vmem:[#allocation7 + $0x150] sm:$0xff]  ;;  %v3732_v56 = vpop.f32.mrf.mxu1 }
 0x2fd   :  { %v6102_v55 = vld [vmem:[#allocation5 + $0xe38] sm:$0xf0] }
 0x2fe   :  { %v6533_v58 = vld [vmem:[#allocation5 + $0x81c] sm:$0xf]  ;;  %v6105_v7 = vor.u32 %v6725_v54, %v6102_v55  ;;  %3935 = vmatpush.bf16.msrb.mxu3 %v5881_v57  ;;  %v4007_v54 = vld [vmem:[#allocation7 + $0x140] sm:$0xff]  ;;  %v3973_v55 = vld [vmem:[#allocation7 + $0x30] sm:$0xff] }
 0x2ff   :  { %v5334_v60 = vld [vmem:[#allocation5 + $0x838] sm:$0xf0] }
 0x300   :  { %v6597_v61 = vld [vmem:[#allocation5 + $0xa1c] sm:$0xf]  ;;  %v5337_v8 = vor.u32 %v6533_v58, %v5334_v60  ;;  %3949 = vmatpush.bf16.msrb.mxu0 %v6105_v7  ;;  %v4043_v58 = vld [vmem:[#allocation7 + $0x260] sm:$0xff]  ;;  %v3969_v7 = vld [vmem:[#allocation7 + $0x10] sm:$0xff] }
 0x301   :  { %v5590_v62 = vld [vmem:[#allocation5 + $0xa38] sm:$0xf0] }
 0x302   :  { %v6661_v63 = vld [vmem:[#allocation5 + $0xc1c] sm:$0xf]  ;;  %v5593_v51 = vor.u32 %v6597_v61, %v5590_v62  ;;  %3910 = vmatpush.bf16.msrb.mxu1 %v5337_v8  ;;  %v4005_v61 = vld [vmem:[#allocation7 + $0x130] sm:$0xff]  ;;  %v3971_v62 = vld [vmem:[#allocation7 + $0x20] sm:$0xff] }
 0x303   :  { %v5846_v0 = vld [vmem:[#allocation5 + $0xc38] sm:$0xf0]  ;;  %6273 = vmatmul.msk.bf16.vlgmr.msrb.gmra.mxu0 %vm3094_vm1, %v6973_v41  ;;  %v4057_v41 = vld [vmem:[#allocation7 + $0x2d0] sm:$0xff]  ;;  %v4039_v8 = vld [vmem:[#allocation7 + $0x240] sm:$0xff] }
 0x304   :  { %v5849_v9 = vor.u32 %v6661_v63, %v5846_v0  ;;  %4101 = vmatpush.msra.mxu0 %v3997_v10  ;;  %3923 = vmatpush.bf16.msrb.mxu2 %v5593_v51  ;;  %v3706_v63 = vpop.f32.mrf.mxu3  ;;  %v4041_v0 = vld [vmem:[#allocation7 + $0x250] sm:$0xff]  ;;  %v3956_v51 = vmul.f32 %v7028_v19, %v7028_v19  ;;  %v3967_v10 = vld [vmem:[#allocation7] sm:$0xff]  ;;  %v3974_v56 = vld [vmem:[#allocation7 + $0x38] sm:$0xff] }
 0x305   :  { %3911 = vmatmul.bf16.vlgmr.msrb.gmra.mxu1 %v6971_v40  ;;  %v4059_v40 = vld [vmem:[#allocation7 + $0x2e0] sm:$0xff]  ;;  %v4033_v19 = vld [vmem:[#allocation7 + $0x210] sm:$0xff]  ;;  %v3972_v63 = vld [vmem:[#allocation7 + $0x28] sm:$0xff] }
 0x306   :  { %3936 = vmatpush.bf16.msrb.mxu3 %v5849_v9  ;;  %4121 = vmatpush.msra.mxu1 %v4029_v11  ;;  %v4001_v9 = vld [vmem:[#allocation7 + $0x110] sm:$0xff]  ;;  %v3745_v11 = vpop.f32.mrf.mxu2 }
 0x307   :  { %4102 = vmatpush.msra.mxu0 %v3995_v30  ;;  %3924 = vmatmul.bf16.vlgmr.msrb.gmra.mxu2 %v6975_v42  ;;  %v4019_v42 = vld [vmem:[#allocation7 + $0x1a0] sm:$0xff]  ;;  %v4037_v30 = vld [vmem:[#allocation7 + $0x230] sm:$0xff]  ;;  %v3968_v11 = vld [vmem:[#allocation7 + $0x8] sm:$0xff] }
 0x308   :  { %4122 = vmatpush.msra.mxu1 %v4027_v59  ;;  %4141 = vmatpush.msra.mxu2 %v4061_v21  ;;  %v3998_v59 = vld [vmem:[#allocation7 + $0xf8] sm:$0xff]  ;;  %v4028_v21 = vld [vmem:[#allocation7 + $0x1e8] sm:$0xff] }
 0x309   :  { %3937 = vmatmul.bf16.vlgmr.msrb.gmra.mxu3 %v6969_v36  ;;  %4103 = vmatpush.msra.mxu0 %v3993_v15  ;;  %v3679_v36 = vadd.f32 %v7098_v35, %v3666_v23  ;;  %v3717_v35 = vpop.f32.mrf.mxu0  ;;  %v4035_v15 = vld [vmem:[#allocation7 + $0x220] sm:$0xff]  ;;  %v3994_v23 = vld [vmem:[#allocation7 + $0xd8] sm:$0xff] }
 0x30a   :  { %4123 = vmatpush.msra.mxu1 %v4025_v17  ;;  %4142 = vmatpush.msra.mxu2 %v4059_v40  ;;  %v4030_v17 = vld [vmem:[#allocation7 + $0x1f8] sm:$0xff] }
 0x30b   :  { %4104 = vmatpush.msra.mxu0 %v3991_v2  ;;  %v3692_v4 = vadd.f32 %v7100_v52, %v3679_v36  ;;  %v4045_v52 = vld [vmem:[#allocation7 + $0x270] sm:$0xff]  ;;  %v3996_v2 = vld [vmem:[#allocation7 + $0xe8] sm:$0xff]  ;;  %v4026_v40 = vld [vmem:[#allocation7 + $0x1d8] sm:$0xff] }
 0x30c   :  { %4124 = vmatpush.msra.mxu1 %v4023_v6  ;;  %4143 = vmatpush.msra.mxu2 %v4057_v41  ;;  %v4031_v6 = vld [vmem:[#allocation7 + $0x200] sm:$0xff]  ;;  %v4024_v41 = vld [vmem:[#allocation7 + $0x1c8] sm:$0xff]  ;;  %v3990_v36 = vld [vmem:[#allocation7 + $0xb8] sm:$0xff] }
 0x30d   :  { %4105 = vmatpush.msra.mxu0 %v3989_v24  ;;  %v3705_v46 = vadd.f32 %v3704_v44, %v3692_v4  ;;  %v4062_v24 = vld [vmem:[#allocation7 + $0x2f8] sm:$0xff] }
 0x30e   :  { %4125 = vmatpush.msra.mxu1 %v4021_v26  ;;  %4144 = vmatpush.msra.mxu2 %v4055_v29  ;;  %v3992_v26 = vld [vmem:[#allocation7 + $0xc8] sm:$0xff]  ;;  %v4054_v4 = vld [vmem:[#allocation7 + $0x2b8] sm:$0xff]  ;;  %v7120_v44 = vpop.f32.mrf.mxu2 }
 0x30f   :  { %4106 = vmatpush.msra.mxu0 %v3987_v22  ;;  %v3718_v20 = vadd.f32 %v3717_v35, %v3705_v46  ;;  %v4060_v22 = vld [vmem:[#allocation7 + $0x2e8] sm:$0xff]  ;;  %v4050_v46 = vld [vmem:[#allocation7 + $0x298] sm:$0xff] }
 0x310   :  { %4126 = vmatpush.msra.mxu1 %v4019_v42  ;;  %4145 = vmatpush.msra.mxu2 %v4053_v32  ;;  %v4058_v42 = vld [vmem:[#allocation7 + $0x2d8] sm:$0xff]  ;;  %v3988_v29 = vld [vmem:[#allocation7 + $0xa8] sm:$0xff] }
 0x311   :  { %4107 = vmatpush.msra.mxu0 %v3985_v37  ;;  %v3731_v53 = vadd.f32 %v3730_v38, %v3718_v20  ;;  %v3719_v57 = vpop.f32.mrf.mxu0  ;;  %v4022_v37 = vld [vmem:[#allocation7 + $0x1b8] sm:$0xff]  ;;  %v7118_v38 = vpop.f32.mrf.mxu1  ;;  %v4012_v20 = vld [vmem:[#allocation7 + $0x168] sm:$0xff] }
 0x312   :  { %4127 = vmatpush.msra.mxu1 %v4017_v27  ;;  %4146 = vmatpush.msra.mxu2 %v4051_v1  ;;  %v4056_v27 = vld [vmem:[#allocation7 + $0x2c8] sm:$0xff]  ;;  %v3986_v32 = vld [vmem:[#allocation7 + $0x98] sm:$0xff] }
 0x313   :  { %4108 = vmatpush.msra.mxu0 %v3983_v31  ;;  %v3744_v60 = vadd.f32 %v3743_v14, %v3731_v53  ;;  %v4020_v31 = vld [vmem:[#allocation7 + $0x1a8] sm:$0xff]  ;;  %v4046_v53 = vld [vmem:[#allocation7 + $0x278] sm:$0xff] }
 0x314   :  { %4128 = vmatpush.msra.mxu1 %v4015_v33  ;;  %4147 = vmatpush.msra.mxu2 %v4049_v45  ;;  %v4018_v33 = vld [vmem:[#allocation7 + $0x198] sm:$0xff]  ;;  %v4052_v1 = vld [vmem:[#allocation7 + $0x2a8] sm:$0xff]  ;;  %v7122_v45 = vpop.f32.mrf.mxu3 }
 0x315   :  { %4109 = vmatpush.msra.mxu0 %v3981_v34  ;;  %v3960_v28 = vmul.f32 %v3744_v60, %v3744_v60  ;;  %v3984_v34 = vld [vmem:[#allocation7 + $0x88] sm:$0xff] }
 0x316   :  { %4129 = vmatpush.msra.mxu1 %v4013_v39  ;;  %4148 = vmatpush.msra.mxu2 %v4047_v48  ;;  %v4016_v39 = vld [vmem:[#allocation7 + $0x188] sm:$0xff]  ;;  %v3758_v57 = vpop.f32.mrf.mxu2 }
 0x317   :  { %4110 = vmatpush.msra.mxu0 %v3979_v43  ;;  %v7112_v50 = vadd.f32 %v3960_v28, %v3956_v51  ;;  %v3982_v43 = vld [vmem:[#allocation7 + $0x78] sm:$0xff]  ;;  %v4048_v48 = vld [vmem:[#allocation7 + $0x288] sm:$0xff] }
 0x318   :  { %4130 = vmatpush.msra.mxu1 %v4011_v47  ;;  %4149 = vmatpush.msra.mxu2 %v4045_v52  ;;  %v4014_v47 = vld [vmem:[#allocation7 + $0x178] sm:$0xff]  ;;  %v3976_v14 = vld [vmem:[#allocation7 + $0x48] sm:$0xff] }
 0x319   :  { %4111 = vmatpush.msra.mxu0 %v3977_v5  ;;  %v7116_v35 = vpop.f32.mrf.mxu0  ;;  %v3980_v5 = vld [vmem:[#allocation7 + $0x68] sm:$0xff]  ;;  %v4038_v51 = vld [vmem:[#allocation7 + $0x238] sm:$0xff] }
 0x31a   :  { %4131 = vmatpush.msra.mxu1 %v4009_v25  ;;  %4150 = vmatpush.msra.mxu2 %v4043_v58  ;;  %v3978_v25 = vld [vmem:[#allocation7 + $0x58] sm:$0xff]  ;;  %v4044_v58 = vld [vmem:[#allocation7 + $0x268] sm:$0xff] }
 0x31b   :  { %4112 = vmatpush.msra.mxu0 %v3975_v49  ;;  %v4010_v49 = vld [vmem:[#allocation7 + $0x158] sm:$0xff]  ;;  %v4040_v28 = vld [vmem:[#allocation7 + $0x248] sm:$0xff] }
 0x31c   :  { %4132 = vmatpush.msra.mxu1 %v4007_v54  ;;  %4151 = vmatpush.msra.mxu2 %v4041_v0  ;;  %v3797_v54 = vpop.f32.mrf.mxu1  ;;  %v3771_v60 = vpop.f32.mrf.mxu3  ;;  %v4093_v0 = vld [vmem:[#allocation7 + $0x3f0] sm:$0xff]  ;;  %v4076_v57 = vld [vmem:[#allocation7 + $0x368] sm:$0xff] }
 0x31d   :  { %4113 = vmatpush.msra.mxu0 %v3973_v55  ;;  %v4008_v55 = vld [vmem:[#allocation7 + $0x148] sm:$0xff]  ;;  %4161 = vmatpush.msra.mxu3 %v4093_v0 }
 0x31e   :  { %4133 = vmatpush.msra.mxu1 %v4005_v61  ;;  %4152 = vmatpush.msra.mxu2 %v4039_v8  ;;  %v4042_v61 = vld [vmem:[#allocation7 + $0x258] sm:$0xff] }
 0x31f   :  { %4114 = vmatpush.msra.mxu0 %v3971_v62  ;;  %v4006_v62 = vld [vmem:[#allocation7 + $0x138] sm:$0xff] }
 0x320   :  { %4134 = vmatpush.msra.mxu1 %v4003_v18  ;;  %4153 = vmatpush.msra.mxu2 %v4037_v30  ;;  %v4091_v18 = vld [vmem:[#allocation7 + $0x3e0] sm:$0xff]  ;;  %v3970_v8 = vld [vmem:[#allocation7 + $0x18] sm:$0xff]  ;;  %v4036_v30 = vld [vmem:[#allocation7 + $0x228] sm:$0xff] }
 0x321   :  { %4115 = vmatpush.msra.mxu0 %v3969_v7  ;;  %v3784_v52 = vpop.f32.mrf.mxu0  ;;  %v4004_v7 = vld [vmem:[#allocation7 + $0x128] sm:$0xff]  ;;  %4162 = vmatpush.msra.mxu3 %v4091_v18 }
 0x322   :  { %4135 = vmatpush.msra.mxu1 %v4001_v9  ;;  %4154 = vmatpush.msra.mxu2 %v4035_v15  ;;  %v4089_v9 = vld [vmem:[#allocation7 + $0x3d0] sm:$0xff]  ;;  %v4034_v15 = vld [vmem:[#allocation7 + $0x218] sm:$0xff]  ;;  %v4068_v18 = vld [vmem:[#allocation7 + $0x328] sm:$0xff] }
 0x323   :  { %4116 = vmatpush.msra.mxu0 %v3967_v10  ;;  %v4002_v10 = vld [vmem:[#allocation7 + $0x118] sm:$0xff]  ;;  %4163 = vmatpush.msra.mxu3 %v4089_v9 }
 0x324   :  { %4117 = vmatmul.f32.vlgmr.msra.gmra.mxu0 %v7089_v16  ;;  %4136 = vmatpush.msra.mxu1 %v3999_v13  ;;  %v4000_v13 = vld [vmem:[#allocation7 + $0x108] sm:$0xff]  ;;  %v4082_v52 = vld [vmem:[#allocation7 + $0x398] sm:$0xff] }
 0x325   :  { %4181 = vmatpush.msrb.mxu0 %v3998_v59  ;;  %4137 = vmatmul.f32.vlgmr.msra.gmra.mxu1 %v7112_v50  ;;  %v4087_v59 = vld [vmem:[#allocation7 + $0x3c0] sm:$0xff] }
 0x326   :  { %4155 = vmatpush.msra.mxu2 %v4033_v19  ;;  %4201 = vmatpush.msrb.mxu1 %v4030_v17  ;;  %v4085_v17 = vld [vmem:[#allocation7 + $0x3b0] sm:$0xff]  ;;  %v3770_v19 = vadd.f32 %v7122_v45, %v7120_v44 }
 0x327   :  { %4182 = vmatpush.msrb.mxu0 %v3996_v2  ;;  %v4032_v2 = vld [vmem:[#allocation7 + $0x208] sm:$0xff]  ;;  %4164 = vmatpush.msra.mxu3 %v4087_v59  ;;  %v4065_v44 = vld [vmem:[#allocation7 + $0x310] sm:$0xff] }
 0x328   :  { %4156 = vmatpush.msra.mxu2 %v4031_v6  ;;  %4202 = vmatpush.msrb.mxu1 %v4028_v21  ;;  %v4083_v21 = vld [vmem:[#allocation7 + $0x3a0] sm:$0xff]  ;;  %v3783_v6 = vadd.f32 %v7116_v35, %v3770_v19 }
 0x329   :  { %4183 = vmatpush.msrb.mxu0 %v3994_v23  ;;  %4165 = vmatpush.msra.mxu3 %v4085_v17  ;;  %v4081_v23 = vld [vmem:[#allocation7 + $0x390] sm:$0xff]  ;;  %v4067_v35 = vld [vmem:[#allocation7 + $0x320] sm:$0xff] }
 0x32a   :  { %4221 = vmatpush.msrb.mxu2 %v4062_v24  ;;  %4203 = vmatpush.msrb.mxu1 %v4026_v40  ;;  %v4079_v24 = vld [vmem:[#allocation7 + $0x380] sm:$0xff]  ;;  %v4077_v40 = vld [vmem:[#allocation7 + $0x370] sm:$0xff] }
 0x32b   :  { %4184 = vmatpush.msrb.mxu0 %v3992_v26  ;;  %4166 = vmatpush.msra.mxu3 %v4083_v21  ;;  %v3834_v26 = vpop.f32.mrf.mxu0 }
 0x32c   :  { %4222 = vmatpush.msrb.mxu2 %v4060_v22  ;;  %4204 = vmatpush.msrb.mxu1 %v4024_v41  ;;  %v3796_v22 = vadd.f32 %v7118_v38, %v3783_v6  ;;  %v4075_v41 = vld [vmem:[#allocation7 + $0x360] sm:$0xff]  ;;  %v3957_v38 = vmul.f32 %v7053_v12, %v7053_v12  ;;  %v4084_v12 = vld [vmem:[#allocation7 + $0x3a8] sm:$0xff]  ;;  %v3958_v6 = vmul.f32 %v7071_v3, %v7071_v3 }
 0x32d   :  { %4185 = vmatpush.msrb.mxu0 %v3990_v36  ;;  %4167 = vmatpush.msra.mxu3 %v4081_v23  ;;  %v3808_v36 = vpop.f32.mrf.mxu2 }
 0x32e   :  { %4223 = vmatpush.msrb.mxu2 %v4058_v42  ;;  %4205 = vmatpush.msrb.mxu1 %v4022_v37  ;;  %v3821_v42 = vpop.f32.mrf.mxu3  ;;  %v4073_v37 = vld [vmem:[#allocation7 + $0x350] sm:$0xff] }
 0x32f   :  { %4186 = vmatpush.msrb.mxu0 %v3988_v29  ;;  %4168 = vmatpush.msra.mxu3 %v4079_v24 }
 0x330   :  { %4224 = vmatpush.msrb.mxu2 %v4056_v27  ;;  %4206 = vmatpush.msrb.mxu1 %v4020_v31  ;;  %v4071_v27 = vld [vmem:[#allocation7 + $0x340] sm:$0xff] }
 0x331   :  { %4187 = vmatpush.msrb.mxu0 %v3986_v32  ;;  %4169 = vmatpush.msra.mxu3 %v4077_v40 }
 0x332   :  { %4225 = vmatpush.msrb.mxu2 %v4054_v4  ;;  %4207 = vmatpush.msrb.mxu1 %v4018_v33  ;;  %v4069_v4 = vld [vmem:[#allocation7 + $0x330] sm:$0xff] }
 0x333   :  { %4188 = vmatpush.msrb.mxu0 %v3984_v34  ;;  %4170 = vmatpush.msra.mxu3 %v4075_v41  ;;  %v3836_v33 = vpop.f32.mrf.mxu0 }
 0x334   :  { %4226 = vmatpush.msrb.mxu2 %v4052_v1  ;;  %4208 = vmatpush.msrb.mxu1 %v4016_v39 }
 0x335   :  { %4189 = vmatpush.msrb.mxu0 %v3982_v43  ;;  %4171 = vmatpush.msra.mxu3 %v4073_v37  ;;  %v3810_v1 = vpop.f32.mrf.mxu2 }
 0x336   :  { %4227 = vmatpush.msrb.mxu2 %v4050_v46  ;;  %4209 = vmatpush.msrb.mxu1 %v4014_v47  ;;  %v3823_v43 = vpop.f32.mrf.mxu3  ;;  %v4063_v46 = vld [vmem:[#allocation7 + $0x300] sm:$0xff]  ;;  %v4094_v47 = vld [vmem:[#allocation7 + $0x3f8] sm:$0xff] }
 0x337   :  { %4190 = vmatpush.msrb.mxu0 %v3980_v5  ;;  %4172 = vmatpush.msra.mxu3 %v4071_v27  ;;  %v4092_v5 = vld [vmem:[#allocation7 + $0x3e8] sm:$0xff] }
 0x338   :  { %4228 = vmatpush.msrb.mxu2 %v4048_v48  ;;  %4210 = vmatpush.msrb.mxu1 %v4012_v20  ;;  %v4090_v48 = vld [vmem:[#allocation7 + $0x3d8] sm:$0xff]  ;;  %v4088_v20 = vld [vmem:[#allocation7 + $0x3c8] sm:$0xff] }
 0x339   :  { %4191 = vmatpush.msrb.mxu0 %v3978_v25  ;;  %4173 = vmatpush.msra.mxu3 %v4069_v4  ;;  %v4086_v25 = vld [vmem:[#allocation7 + $0x3b8] sm:$0xff] }
 0x33a   :  { %4229 = vmatpush.msrb.mxu2 %v4046_v53  ;;  %4211 = vmatpush.msrb.mxu1 %v4010_v49 }
 0x33b   :  { %4192 = vmatpush.msrb.mxu0 %v3976_v14  ;;  %4174 = vmatpush.msra.mxu3 %v4067_v35 }
 0x33c   :  { %4230 = vmatpush.msrb.mxu2 %v4044_v58  ;;  %4212 = vmatpush.msrb.mxu1 %v4008_v55  ;;  %v4080_v55 = vld [vmem:[#allocation7 + $0x388] sm:$0xff] }
 0x33d   :  { %4193 = vmatpush.msrb.mxu0 %v3974_v56  ;;  %4175 = vmatpush.msra.mxu3 %v4065_v44  ;;  %v4078_v56 = vld [vmem:[#allocation7 + $0x378] sm:$0xff] }
 0x33e   :  { %4231 = vmatpush.msrb.mxu2 %v4042_v61  ;;  %4213 = vmatpush.msrb.mxu1 %v4006_v62  ;;  %v4074_v61 = vld [vmem:[#allocation7 + $0x358] sm:$0xff]  ;;  %v4072_v62 = vld [vmem:[#allocation7 + $0x348] sm:$0xff] }
 0x33f   :  { %4194 = vmatpush.msrb.mxu0 %v3972_v63  ;;  %4176 = vmatpush.msra.mxu3 %v4063_v46 }
 0x340   :  { %4232 = vmatpush.msrb.mxu2 %v4040_v28  ;;  %4214 = vmatpush.msrb.mxu1 %v4004_v7  ;;  %v4070_v28 = vld [vmem:[#allocation7 + $0x338] sm:$0xff] }
 0x341   :  { %4195 = vmatpush.msrb.mxu0 %v3970_v8  ;;  %4241 = vmatpush.msrb.mxu3 %v4094_v47  ;;  %v4066_v7 = vld [vmem:[#allocation7 + $0x318] sm:$0xff]  ;;  %v4064_v8 = vld [vmem:[#allocation7 + $0x308] sm:$0xff] }
 0x342   :  { %4233 = vmatpush.msrb.mxu2 %v4038_v51  ;;  %4215 = vmatpush.msrb.mxu1 %v4002_v10 }
 0x343   :  { %4196 = vmatpush.msrb.mxu0 %v3968_v11  ;;  %4242 = vmatpush.msrb.mxu3 %v4092_v5 }
 0x344   :  { %4197 = vmatmul.f32.vlgmr.msrb.gmra.mxu0 %v7089_v16  ;;  %4234 = vmatpush.msrb.mxu2 %v4036_v30  ;;  %v3847_v16 = vpop.f32.mrf.mxu1 }
 0x345   :  { %4216 = vmatpush.msrb.mxu1 %v4000_v13  ;;  %4243 = vmatpush.msrb.mxu3 %v4090_v48 }
 0x346   :  { %4217 = vmatmul.f32.vlgmr.msrb.gmra.mxu1 %v7112_v50  ;;  %4235 = vmatpush.msrb.mxu2 %v4034_v15  ;;  %v3809_v50 = vadd.f32 %v3808_v36, %v3796_v22  ;;  %v4095_v22 = vld [vmem:[#allocation8] sm:$0x3] }
 0x347   :  { %4244 = vmatpush.msrb.mxu3 %v4088_v20  ;;  %v4097_v41 = vperm.slane %v4095_v22, 0  ;;  %v4098_v27 = vperm.slane %v4095_v22, 1 }
 0x348   :  { %4236 = vmatpush.msrb.mxu2 %v4032_v2  ;;  %v3822_v29 = vadd.f32 %v3821_v42, %v3809_v50 }
 0x349   :  { %4245 = vmatpush.msrb.mxu3 %v4086_v25 }
 0x34a   :  { %v3835_v32 = vadd.f32 %v3834_v26, %v3822_v29 }
 0x34b   :  { %4246 = vmatpush.msrb.mxu3 %v4084_v12 }
 0x34c   :  { %v3849_v31 = vpop.f32.mrf.mxu1  ;;  %v3848_v34 = vadd.f32 %v3847_v16, %v3835_v32  ;;  %v3873_v53 = vpop.f32.mrf.mxu2 }
 0x34d   :  { %4247 = vmatpush.msrb.mxu3 %v4082_v52 }
 0x34e   :  { %v3961_v39 = vmul.f32 %v3848_v34, %v3848_v34  ;;  %v3886_v54 = vpop.f32.mrf.mxu3 }
 0x34f   :  { %4248 = vmatpush.msrb.mxu3 %v4080_v55 }
 0x350   :  { %v3965_v45 = vadd.f32 %v3961_v39, %v3957_v38  ;;  %v3899_v14 = vpop.f32.mrf.mxu0 }
 0x351   :  { %4249 = vmatpush.msrb.mxu3 %v4078_v56 }
 0x352   :  { %4157 = vmatmul.f32.vlgmr.msra.gmra.mxu2 %v3965_v45 }
 0x353   :  { %4250 = vmatpush.msrb.mxu3 %v4076_v57 }
 0x354   :  { %v3860_v49 = vpop.f32.mrf.mxu1  ;;  %v3875_v63 = vpop.f32.mrf.mxu2 }
 0x355   :  { %4251 = vmatpush.msrb.mxu3 %v4074_v61  ;;  %v3874_v51 = vadd.f32 %v3873_v53, %v3860_v49 }
 0x356   :  { %v3888_v0 = vpop.f32.mrf.mxu3 }
 0x357   :  { %4252 = vmatpush.msrb.mxu3 %v4072_v62  ;;  %v3887_v9 = vadd.f32 %v3886_v54, %v3874_v51 }
 0x358   :  { %v3901_v60 = vpop.f32.mrf.mxu0 }
 0x359   :  { %4253 = vmatpush.msrb.mxu3 %v4070_v28  ;;  %v3900_v30 = vadd.f32 %v3899_v14, %v3887_v9 }
 0x35a   :  { %4237 = vmatmul.f32.vlgmr.msrb.gmra.mxu2 %v3965_v45 }
 0x35b   :  { %4254 = vmatpush.msrb.mxu3 %v4068_v18 }
 0x35c   :  { %v3862_v58 = vpop.f32.mrf.mxu1 }
 0x35d   :  { %4255 = vmatpush.msrb.mxu3 %v4066_v7 }
 0x35f   :  { %4256 = vmatpush.msrb.mxu3 %v4064_v8 }
 0x380   :  { %v3951_v11 = vpop.f32.mrf.mxu0 }
 0x382   :  { %v3912_v10 = vpop.f32.mrf.mxu1 }
 0x383   :  { %v3913_v13 = vadd.f32 %v3912_v10, %v3900_v30 }
 0x388   :  { %v3953_v19 = vpop.f32.mrf.mxu0 }
 0x38a   :  { %v3925_v59 = vpop.f32.mrf.mxu2  ;;  %v3914_v2 = vpop.f32.mrf.mxu1 }
 0x38b   :  { %v3926_v17 = vadd.f32 %v3925_v59, %v3913_v13 }
 0x38c   :  { %v3938_v15 = vpop.f32.mrf.mxu3 }
 0x38d   :  { %v3939_v21 = vadd.f32 %v3938_v15, %v3926_v17 }
 0x38f   :  { %v3952_v23 = vadd.f32 %v3951_v11, %v3939_v21 }
 0x391   :  { %v3962_v24 = vmul.f32 %v3952_v23, %v3952_v23 }
 0x392   :  { %v3927_v16 = vpop.f32.mrf.mxu2 }
 0x393   :  { %v3966_v26 = vadd.f32 %v3962_v24, %v3958_v6 }
 0x394   :  { %v3940_v40 = vpop.f32.mrf.mxu3 }
 0x395   :  { %4177 = vmatmul.f32.vlgmr.msra.gmra.mxu3 %v3966_v26 }
 0x39d   :  { %4257 = vmatmul.f32.vlgmr.msrb.gmra.mxu3 %v3966_v26 }
 0x3a1   :  { %v4118_v36 = vpop.f32.mrf.mxu0 }
 0x3a2   :  { %v4119_v50 = vadd.f32 %v4118_v36, %v4097_v41  ;;  %v4138_v37 = vpop.f32.mrf.mxu1 }
 0x3a4   :  { %v4139_v29 = vadd.f32 %v4138_v37, %v4119_v50 }
 0x3c1   :  { %v4198_v31 = vpop.f32.mrf.mxu0 }
 0x3c2   :  { %v4199_v33 = vadd.f32 %v4198_v31, %v4098_v27 }
 0x3c3   :  { %v4218_v3 = vpop.f32.mrf.mxu1 }
 0x3c4   :  { %v4219_v1 = vadd.f32 %v4218_v3, %v4199_v33 }
 0x3d5   :  { %v4158_v42 = vpop.f32.mrf.mxu2 }
 0x3d6   :  { %v4159_v32 = vadd.f32 %v4158_v42, %v4139_v29 }
 0x3dd   :  { %v4238_v35 = vpop.f32.mrf.mxu2 }
 0x3de   :  { %v4239_v38 = vadd.f32 %v4238_v35, %v4219_v1 }
 0x418   :  { %v4178_v4 = vpop.f32.mrf.mxu3 }
 0x419   :  { %v4179_v34 = vadd.f32 %v4178_v4, %v4159_v32 }
 0x41b   :  { %4261 = vst [vmem:[#allocation10] sm:$0xff] %v4179_v34 }
 0x420   :  { %v4258_v39 = vpop.f32.mrf.mxu3 }
 0x421   :  { %v4259_v43 = vadd.f32 %v4258_v39, %v4239_v38 }
 0x423   :  { %4262 = vst [vmem:[#allocation10 + $0x8] sm:$0xff] %v4259_v43 }
 0x424   :  { %4273 = dma.vmem_to_hbm [thread:$0]  %s4269_s3, 256, %s4271_s13, [#allocation4]  }
 0x425   :  { %6905 = dma.done.wait [#allocation4], 256  }
 0x426   :  { %6906 = vsyncadd [#allocation4], 4294967040 }
 0x427   :  { %4278 = vsyncpa [#allocation3], 1 }
 0x428   :  { %4279 = vsyncpa [#allocation6], 1 }
 0x429   :  { %4280 = vsyncpa [#allocation9], 1 }
 0x42a   :  { %4281 = vsyncpa [#allocation4], 1 }

</bundles_post_ra>
